<compile_context>
chip_gen: v5e
topology: v5e:2x2
jax: 0.10.0
libtpu: 0.0.40
codegen_flags: <defaults>
</compile_context>

<pallas_src>
import jax
import jax.numpy as jnp
from jax.experimental import pallas as pl
from jax.experimental.pallas import tpu as pltpu

HIDDEN = 64            # per-head hidden channels (nn.Conv2d(in, 64, 3))
NH = 3 * HIDDEN        # 192 fused hidden channels (scale | color | opacity)
OUT_CH = 8             # 3 + 3 + 1 real output channels, padded to 8


def gaussian_decoder_kernel(x_ref, w1_ref, b1_ref, w2t_ref, b2t_ref,
                            out_ref, xpad_ref, patches_ref):
    H, W, Cin = x_ref.shape

    # In-VMEM zero-padded halo: avoids a separate HBM pad pass over the input.
    xpad_ref[...] = jnp.zeros_like(xpad_ref)
    xpad_ref[1:H + 1, 1:W + 1, :] = x_ref[...].astype(xpad_ref.dtype)
    xpad = xpad_ref[...]                                     # (H+2, W+2, Cin) f32

    # Shared im2col, built once and reused by all three (fused) heads.
    for k in range(9):
        dy, dx = k // 3, k % 3
        patches_ref[:, k * Cin:(k + 1) * Cin] = (
            xpad[dy:dy + H, dx:dx + W, :]
            .reshape(H * W, Cin)
            .astype(patches_ref.dtype))

    # Fused 3x3 conv for all heads: single K=9*Cin, N=192 bf16 MXU matmul, f32 acc.
    h = jnp.dot(patches_ref[...], w1_ref[...],
                preferred_element_type=jnp.float32)          # (H*W, 192)
    h = jnp.maximum(h + b1_ref[...], 0.0)                    # bias + ReLU in f32

    # Fused 1x1 convs (block-diagonal weights), emitted channel-major via a
    # q·k^T-style NT contraction so the output store is lane-dense: (8, H*W).
    o = jax.lax.dot_general(
        w2t_ref[...], h,
        dimension_numbers=(((1,), (1,)), ((), ())),
        preferred_element_type=jnp.float32)                  # (8, H*W)
    out_ref[...] = jax.nn.sigmoid(o + b2t_ref[...]).astype(out_ref.dtype)


def make_params(key, in_channels):
    """Deterministic synthetic parameters (shapes match the PyTorch module)."""
    ks = jax.random.split(key, 12)
    params = []
    i = 0
    for cout in (3, 3, 1):  # scale, color, opacity heads
        w1 = jax.random.normal(ks[i], (3, 3, in_channels, HIDDEN), jnp.float32) \
            * (1.0 / jnp.sqrt(9.0 * in_channels)); i += 1
        b1 = jax.random.normal(ks[i], (1, HIDDEN), jnp.float32) * 0.01; i += 1
        w2 = jax.random.normal(ks[i], (HIDDEN, cout), jnp.float32) \
            * (1.0 / jnp.sqrt(float(HIDDEN))); i += 1
        b2 = jax.random.normal(ks[i], (1, cout), jnp.float32) * 0.01; i += 1
        params.append((w1, b1, w2, b2))
    return params


def gaussian_decoder(x_nchw, params):
    """x_nchw: (N, Cin, H, W) float32.  Returns (scale, color, opacity) in NCHW f32."""
    N, Cin, H, W = x_nchw.shape

    # NHWC + bf16 cast (single fused XLA pass); NO spatial padding in HBM.
    x = jnp.transpose(x_nchw, (0, 2, 3, 1)).astype(jnp.bfloat16)

    # Concatenate the three heads' first-layer weights -> one (9*Cin, 192) matmul.
    w1_cat = jnp.concatenate([p[0] for p in params], axis=-1)        # (3,3,Cin,192)
    w1_cat = w1_cat.reshape(9 * Cin, NH).astype(jnp.bfloat16)
    b1_cat = jnp.concatenate([p[1] for p in params], axis=-1)        # (1,192) f32

    # Block-diagonal, transposed second-layer weights, padded to 8 output rows
    # (row 7 is all-zero and discarded by the wrapper).
    w2_t = jnp.zeros((OUT_CH, NH), jnp.float32)
    b2_t = jnp.zeros((OUT_CH, 1), jnp.float32)
    row = 0
    for i, (_, _, w2, b2) in enumerate(params):
        cout = w2.shape[1]
        w2_t = w2_t.at[row:row + cout, i * HIDDEN:(i + 1) * HIDDEN].set(w2.T)
        b2_t = b2_t.at[row:row + cout, 0].set(b2[0])
        row += cout

    # TODO(synk): for large H*W / 512-channel feature maps, add row tiling with a
    # 1-row halo (manual make_async_copy) so the im2col scratch stays within VMEM
    # (v7x: 64 MiB) and v7x's two TensorCores are busy even when N == 1.
    out = pl.pallas_call(
        gaussian_decoder_kernel,
        out_shape=jax.ShapeDtypeStruct((N, OUT_CH, H * W), jnp.float32),
        grid_spec=pltpu.PrefetchScalarGridSpec(
            num_scalar_prefetch=0,
            grid=(N,),
            in_specs=[
                pl.BlockSpec((None, H, W, Cin), lambda b: (b, 0, 0, 0)),
                pl.BlockSpec((9 * Cin, NH), lambda b: (0, 0)),
                pl.BlockSpec((1, NH), lambda b: (0, 0)),
                pl.BlockSpec((OUT_CH, NH), lambda b: (0, 0)),
                pl.BlockSpec((OUT_CH, 1), lambda b: (0, 0)),
            ],
            out_specs=pl.BlockSpec((None, OUT_CH, H * W), lambda b: (b, 0, 0)),
            scratch_shapes=[
                pltpu.VMEM((H + 2, W + 2, Cin), jnp.float32),     # zero-halo image
                pltpu.VMEM((H * W, 9 * Cin), jnp.bfloat16),       # shared im2col
            ],
        ),
        compiler_params=pltpu.CompilerParams(
            dimension_semantics=("parallel",)),
    )(x, w1_cat, b1_cat, w2_t, b2_t)

    # Channel-major output is already NCHW-flattened: slice + reshape only.
    scale = out[:, 0:3, :].reshape(N, 3, H, W)
    color = out[:, 3:6, :].reshape(N, 3, H, W)
    opacity = out[:, 6:7, :].reshape(N, 1, H, W)
    return scale, color, opacity


def gaussian_decoder_ref(x_nchw, params):
    """Pure-JAX f32 reference (lax conv) for correctness checking."""
    x = jnp.transpose(x_nchw, (0, 2, 3, 1))  # NHWC
    outs = []
    for (w1, b1, w2, b2) in params:
        h = jax.lax.conv_general_dilated(
            x, w1, window_strides=(1, 1), padding="SAME",
            dimension_numbers=("NHWC", "HWIO", "NHWC"))
        h = jnp.maximum(h + b1.reshape(1, 1, 1, -1), 0.0)
        o = jnp.einsum("nhwc,cd->nhwd", h, w2) + b2.reshape(1, 1, 1, -1)
        outs.append(jnp.transpose(jax.nn.sigmoid(o), (0, 3, 1, 2)))
    return tuple(outs)


if __name__ == "__main__":
    key = jax.random.PRNGKey(0)
    k_x, k_p = jax.random.split(key)

    N, Cin, H, W = 2, 32, 16, 16
    x = jax.random.normal(k_x, (N, Cin, H, W), jnp.float32)
    params = make_params(k_p, Cin)

    scale, color, opacity = jax.block_until_ready(gaussian_decoder(x, params))
    scale_r, color_r, opacity_r = gaussian_decoder_ref(x, params)

    for got, want in ((scale, scale_r), (color, color_r), (opacity, opacity_r)):
        assert got.shape == want.shape and got.dtype == want.dtype
        err = float(jnp.max(jnp.abs(got - want)))
        # bf16 MXU operands (f32 accumulation) -> relaxed from the old 1e-4.
        assert err < 2e-2, err

    print("KERNEL_OK")
</pallas_src>

<mosaic_0001>
module attributes {stable_mosaic.version = 11 : i64} {
  func.func @gaussian_decoder_kernel(%arg0: i32, %arg1: memref<1x16x16x32xbf16, #tpu.memory_space<vmem>>, %arg2: memref<288x192xbf16, #tpu.memory_space<vmem>>, %arg3: memref<1x192xf32, #tpu.memory_space<vmem>>, %arg4: memref<8x192xf32, #tpu.memory_space<vmem>>, %arg5: memref<8x1xf32, #tpu.memory_space<vmem>>, %arg6: memref<1x8x256xf32, #tpu.memory_space<vmem>>, %arg7: memref<18x18x32xf32, #tpu.memory_space<vmem>>, %arg8: memref<256x288xbf16, #tpu.memory_space<vmem>>) attributes {dimension_semantics = [#tpu.dimension_semantics<parallel>], iteration_bounds = array<i64: 2>, scalar_prefetch = 0 : i64, scratch_operands = 2 : i64, tpu.core_type = #tpu.core_type<tc>, window_params = [{transform_indices = @transform_0, window_bounds = array<i64: 1, 16, 16, 32>}, {pipeline_mode = #tpu.pipeline_mode<synchronous>, transform_indices = @transform_1, window_bounds = array<i64: 288, 192>}, {pipeline_mode = #tpu.pipeline_mode<synchronous>, transform_indices = @transform_2, window_bounds = array<i64: 1, 192>}, {pipeline_mode = #tpu.pipeline_mode<synchronous>, transform_indices = @transform_3, window_bounds = array<i64: 8, 192>}, {pipeline_mode = #tpu.pipeline_mode<synchronous>, transform_indices = @transform_4, window_bounds = array<i64: 8, 1>}, {transform_indices = @transform_5, window_bounds = array<i64: 1, 8, 256>}]} {
    %cst = arith.constant 0.000000e+00 : f32
    %0 = vector.broadcast %cst : f32 to vector<18x18x32xf32>
    %c0 = arith.constant 0 : index
    %c0_0 = arith.constant 0 : index
    %c0_1 = arith.constant 0 : index
    %1 = vector.load %arg7[%c0, %c0_0, %c0_1] : memref<18x18x32xf32, #tpu.memory_space<vmem>>, vector<18x18x32xf32>
    tpu.vector_store %arg7[%c0, %c0_0, %c0_1], %0 {strides = array<i32>} : memref<18x18x32xf32, #tpu.memory_space<vmem>>, vector<18x18x32xf32>,
    %c0_2 = arith.constant 0 : index
    %c0_3 = arith.constant 0 : index
    %c0_4 = arith.constant 0 : index
    %c0_5 = arith.constant 0 : index
    %2 = vector.load %arg1[%c0_2, %c0_3, %c0_4, %c0_5] : memref<1x16x16x32xbf16, #tpu.memory_space<vmem>>, vector<1x16x16x32xbf16>
    %3 = vector.shape_cast %2 : vector<1x16x16x32xbf16> to vector<16x16x32xbf16>
    %4 = arith.extf %3 : vector<16x16x32xbf16> to vector<16x16x32xf32>
    %c1 = arith.constant 1 : index
    %c1_6 = arith.constant 1 : index
    %c0_7 = arith.constant 0 : index
    %5 = vector.load %arg7[%c1, %c1_6, %c0_7] : memref<18x18x32xf32, #tpu.memory_space<vmem>>, vector<16x16x32xf32>
    tpu.vector_store %arg7[%c1, %c1_6, %c0_7], %4 {strides = array<i32>} : memref<18x18x32xf32, #tpu.memory_space<vmem>>, vector<16x16x32xf32>,
    %c0_8 = arith.constant 0 : index
    %c0_9 = arith.constant 0 : index
    %c0_10 = arith.constant 0 : index
    %6 = vector.load %arg7[%c0_8, %c0_9, %c0_10] : memref<18x18x32xf32, #tpu.memory_space<vmem>>, vector<18x18x32xf32>
    %7 = vector.extract_strided_slice %6 {offsets = [0, 0, 0], sizes = [16, 16, 32], strides = [1, 1, 1]} : vector<18x18x32xf32> to vector<16x16x32xf32>
    %8 = vector.shape_cast %7 : vector<16x16x32xf32> to vector<256x32xf32>
    %9 = arith.truncf %8 : vector<256x32xf32> to vector<256x32xbf16>
    %c0_11 = arith.constant 0 : index
    %c0_12 = arith.constant 0 : index
    %10 = vector.load %arg8[%c0_11, %c0_12] : memref<256x288xbf16, #tpu.memory_space<vmem>>, vector<256x32xbf16>
    tpu.vector_store %arg8[%c0_11, %c0_12], %9 {strides = array<i32>} : memref<256x288xbf16, #tpu.memory_space<vmem>>, vector<256x32xbf16>,
    %11 = vector.extract_strided_slice %6 {offsets = [0, 1, 0], sizes = [16, 16, 32], strides = [1, 1, 1]} : vector<18x18x32xf32> to vector<16x16x32xf32>
    %12 = vector.shape_cast %11 : vector<16x16x32xf32> to vector<256x32xf32>
    %13 = arith.truncf %12 : vector<256x32xf32> to vector<256x32xbf16>
    %c0_13 = arith.constant 0 : index
    %c32 = arith.constant 32 : index
    %14 = vector.load %arg8[%c0_13, %c32] : memref<256x288xbf16, #tpu.memory_space<vmem>>, vector<256x32xbf16>
    tpu.vector_store %arg8[%c0_13, %c32], %13 {strides = array<i32>} : memref<256x288xbf16, #tpu.memory_space<vmem>>, vector<256x32xbf16>,
    %15 = vector.extract_strided_slice %6 {offsets = [0, 2, 0], sizes = [16, 16, 32], strides = [1, 1, 1]} : vector<18x18x32xf32> to vector<16x16x32xf32>
    %16 = vector.shape_cast %15 : vector<16x16x32xf32> to vector<256x32xf32>
    %17 = arith.truncf %16 : vector<256x32xf32> to vector<256x32xbf16>
    %c0_14 = arith.constant 0 : index
    %c64 = arith.constant 64 : index
    %18 = vector.load %arg8[%c0_14, %c64] : memref<256x288xbf16, #tpu.memory_space<vmem>>, vector<256x32xbf16>
    tpu.vector_store %arg8[%c0_14, %c64], %17 {strides = array<i32>} : memref<256x288xbf16, #tpu.memory_space<vmem>>, vector<256x32xbf16>,
    %19 = vector.extract_strided_slice %6 {offsets = [1, 0, 0], sizes = [16, 16, 32], strides = [1, 1, 1]} : vector<18x18x32xf32> to vector<16x16x32xf32>
    %20 = vector.shape_cast %19 : vector<16x16x32xf32> to vector<256x32xf32>
    %21 = arith.truncf %20 : vector<256x32xf32> to vector<256x32xbf16>
    %c0_15 = arith.constant 0 : index
    %c96 = arith.constant 96 : index
    %22 = vector.load %arg8[%c0_15, %c96] : memref<256x288xbf16, #tpu.memory_space<vmem>>, vector<256x32xbf16>
    tpu.vector_store %arg8[%c0_15, %c96], %21 {strides = array<i32>} : memref<256x288xbf16, #tpu.memory_space<vmem>>, vector<256x32xbf16>,
    %23 = vector.extract_strided_slice %6 {offsets = [1, 1, 0], sizes = [16, 16, 32], strides = [1, 1, 1]} : vector<18x18x32xf32> to vector<16x16x32xf32>
    %24 = vector.shape_cast %23 : vector<16x16x32xf32> to vector<256x32xf32>
    %25 = arith.truncf %24 : vector<256x32xf32> to vector<256x32xbf16>
    %c0_16 = arith.constant 0 : index
    %c128 = arith.constant 128 : index
    %26 = vector.load %arg8[%c0_16, %c128] : memref<256x288xbf16, #tpu.memory_space<vmem>>, vector<256x32xbf16>
    tpu.vector_store %arg8[%c0_16, %c128], %25 {strides = array<i32>} : memref<256x288xbf16, #tpu.memory_space<vmem>>, vector<256x32xbf16>,
    %27 = vector.extract_strided_slice %6 {offsets = [1, 2, 0], sizes = [16, 16, 32], strides = [1, 1, 1]} : vector<18x18x32xf32> to vector<16x16x32xf32>
    %28 = vector.shape_cast %27 : vector<16x16x32xf32> to vector<256x32xf32>
    %29 = arith.truncf %28 : vector<256x32xf32> to vector<256x32xbf16>
    %c0_17 = arith.constant 0 : index
    %c160 = arith.constant 160 : index
    %30 = vector.load %arg8[%c0_17, %c160] : memref<256x288xbf16, #tpu.memory_space<vmem>>, vector<256x32xbf16>
    tpu.vector_store %arg8[%c0_17, %c160], %29 {strides = array<i32>} : memref<256x288xbf16, #tpu.memory_space<vmem>>, vector<256x32xbf16>,
    %31 = vector.extract_strided_slice %6 {offsets = [2, 0, 0], sizes = [16, 16, 32], strides = [1, 1, 1]} : vector<18x18x32xf32> to vector<16x16x32xf32>
    %32 = vector.shape_cast %31 : vector<16x16x32xf32> to vector<256x32xf32>
    %33 = arith.truncf %32 : vector<256x32xf32> to vector<256x32xbf16>
    %c0_18 = arith.constant 0 : index
    %c192 = arith.constant 192 : index
    %34 = vector.load %arg8[%c0_18, %c192] : memref<256x288xbf16, #tpu.memory_space<vmem>>, vector<256x32xbf16>
    tpu.vector_store %arg8[%c0_18, %c192], %33 {strides = array<i32>} : memref<256x288xbf16, #tpu.memory_space<vmem>>, vector<256x32xbf16>,
    %35 = vector.extract_strided_slice %6 {offsets = [2, 1, 0], sizes = [16, 16, 32], strides = [1, 1, 1]} : vector<18x18x32xf32> to vector<16x16x32xf32>
    %36 = vector.shape_cast %35 : vector<16x16x32xf32> to vector<256x32xf32>
    %37 = arith.truncf %36 : vector<256x32xf32> to vector<256x32xbf16>
    %c0_19 = arith.constant 0 : index
    %c224 = arith.constant 224 : index
    %38 = vector.load %arg8[%c0_19, %c224] : memref<256x288xbf16, #tpu.memory_space<vmem>>, vector<256x32xbf16>
    tpu.vector_store %arg8[%c0_19, %c224], %37 {strides = array<i32>} : memref<256x288xbf16, #tpu.memory_space<vmem>>, vector<256x32xbf16>,
    %39 = vector.extract_strided_slice %6 {offsets = [2, 2, 0], sizes = [16, 16, 32], strides = [1, 1, 1]} : vector<18x18x32xf32> to vector<16x16x32xf32>
    %40 = vector.shape_cast %39 : vector<16x16x32xf32> to vector<256x32xf32>
    %41 = arith.truncf %40 : vector<256x32xf32> to vector<256x32xbf16>
    %c0_20 = arith.constant 0 : index
    %c256 = arith.constant 256 : index
    %42 = vector.load %arg8[%c0_20, %c256] : memref<256x288xbf16, #tpu.memory_space<vmem>>, vector<256x32xbf16>
    tpu.vector_store %arg8[%c0_20, %c256], %41 {strides = array<i32>} : memref<256x288xbf16, #tpu.memory_space<vmem>>, vector<256x32xbf16>,
    %c0_21 = arith.constant 0 : index
    %c0_22 = arith.constant 0 : index
    %43 = vector.load %arg8[%c0_21, %c0_22] : memref<256x288xbf16, #tpu.memory_space<vmem>>, vector<256x288xbf16>
    %c0_23 = arith.constant 0 : index
    %c0_24 = arith.constant 0 : index
    %44 = vector.load %arg2[%c0_23, %c0_24] : memref<288x192xbf16, #tpu.memory_space<vmem>>, vector<288x192xbf16>
    %cst_25 = arith.constant dense<0.000000e+00> : vector<256x192xf32>
    %45 = tpu.matmul %43, %44, %cst_25 {dimension_numbers = #tpu.dot_dimension_numbers<[1], [0], [0], [1], [0, 0, 1, 1], [], []>} : vector<256x288xbf16>, vector<288x192xbf16>, vector<256x192xf32> -> vector<256x192xf32>
    %c0_26 = arith.constant 0 : index
    %c0_27 = arith.constant 0 : index
    %46 = vector.load %arg3[%c0_26, %c0_27] : memref<1x192xf32, #tpu.memory_space<vmem>>, vector<1x192xf32>
    %47 = vector.broadcast %46 : vector<1x192xf32> to vector<256x192xf32>
    %48 = arith.addf %45, %47 : vector<256x192xf32>
    %cst_28 = arith.constant 0.000000e+00 : f32
    %49 = vector.broadcast %cst_28 : f32 to vector<256x192xf32>
    %50 = arith.maximumf %48, %49 : vector<256x192xf32>
    %c0_29 = arith.constant 0 : index
    %c0_30 = arith.constant 0 : index
    %51 = vector.load %arg4[%c0_29, %c0_30] : memref<8x192xf32, #tpu.memory_space<vmem>>, vector<8x192xf32>
    %cst_31 = arith.constant dense<0.000000e+00> : vector<8x256xf32>
    %52 = tpu.matmul %51, %50, %cst_31 {dimension_numbers = #tpu.dot_dimension_numbers<[1], [1], [0], [0], [0, 0, 1, 0], [], []>} : vector<8x192xf32>, vector<256x192xf32>, vector<8x256xf32> -> vector<8x256xf32>
    %c0_32 = arith.constant 0 : index
    %c0_33 = arith.constant 0 : index
    %53 = vector.load %arg5[%c0_32, %c0_33] : memref<8x1xf32, #tpu.memory_space<vmem>>, vector<8x1xf32>
    %54 = vector.broadcast %53 : vector<8x1xf32> to vector<8x256xf32>
    %55 = arith.addf %52, %54 : vector<8x256xf32>
    %56 = arith.negf %55 : vector<8x256xf32>
    %57 = math.exp %56 : vector<8x256xf32>
    %cst_34 = arith.constant 1.000000e+00 : f32
    %58 = vector.broadcast %cst_34 : f32 to vector<8x256xf32>
    %59 = arith.addf %58, %57 : vector<8x256xf32>
    %60 = arith.divf %58, %59 : vector<8x256xf32>
    %c0_35 = arith.constant 0 : index
    %c0_36 = arith.constant 0 : index
    %c0_37 = arith.constant 0 : index
    %61 = vector.load %arg6[%c0_35, %c0_36, %c0_37] : memref<1x8x256xf32, #tpu.memory_space<vmem>>, vector<1x8x256xf32>
    %62 = vector.shape_cast %61 : vector<1x8x256xf32> to vector<8x256xf32>
    %63 = vector.shape_cast %60 : vector<8x256xf32> to vector<1x8x256xf32>
    tpu.vector_store %arg6[%c0_35, %c0_36, %c0_37], %63 {strides = array<i32>} : memref<1x8x256xf32, #tpu.memory_space<vmem>>, vector<1x8x256xf32>,
    return
  }
  func.func @transform_0(%arg0: i32) -> (i32, i32, i32, i32) {
    %c0_i32 = arith.constant 0 : i32
    %c0_i32_0 = arith.constant 0 : i32
    %c0_i32_1 = arith.constant 0 : i32
    %c0_i32_2 = arith.constant 0 : i32
    return %arg0, %c0_i32, %c0_i32_0, %c0_i32_1 : i32, i32, i32, i32
  }
  func.func @transform_1(%arg0: i32) -> (i32, i32) {
    %c0_i32 = arith.constant 0 : i32
    %c0_i32_0 = arith.constant 0 : i32
    %c0_i32_1 = arith.constant 0 : i32
    return %c0_i32, %c0_i32_0 : i32, i32
  }
  func.func @transform_2(%arg0: i32) -> (i32, i32) {
    %c0_i32 = arith.constant 0 : i32
    %c0_i32_0 = arith.constant 0 : i32
    %c0_i32_1 = arith.constant 0 : i32
    return %c0_i32, %c0_i32_0 : i32, i32
  }
  func.func @transform_3(%arg0: i32) -> (i32, i32) {
    %c0_i32 = arith.constant 0 : i32
    %c0_i32_0 = arith.constant 0 : i32
    %c0_i32_1 = arith.constant 0 : i32
    return %c0_i32, %c0_i32_0 : i32, i32
  }
  func.func @transform_4(%arg0: i32) -> (i32, i32) {
    %c0_i32 = arith.constant 0 : i32
    %c0_i32_0 = arith.constant 0 : i32
    %c0_i32_1 = arith.constant 0 : i32
    return %c0_i32, %c0_i32_0 : i32, i32
  }
  func.func @transform_5(%arg0: i32) -> (i32, i32, i32) {
    %c0_i32 = arith.constant 0 : i32
    %c0_i32_0 = arith.constant 0 : i32
    %c0_i32_1 = arith.constant 0 : i32
    return %arg0, %c0_i32, %c0_i32_0 : i32, i32, i32
  }
}

</mosaic_0001>

<bundles_post_ra>
// kernel: tpu_custom_call.1
= control target key start
LH: loop header
LB: loop body
LE: loop exit
PB: predicated region body
PF: predicated region fallthrough
CT: control target
= control target key end

     0   :  { %10 = vsyncpa [#allocation5], 0  ;;  %s6456_s0 = inlined_call_operand.hbm [shape: bf16[2,16,16,32], index: 0, kind: input, shape index: {}]   ;;  %s6457_s1 = inlined_call_operand.hbm [shape: bf16[288,192], index: 1, kind: input, shape index: {}]   ;;  %s6458_s2 = inlined_call_operand.vmem [shape: f32[1,192], index: 2, kind: input, shape index: {}]   ;;  %s6459_s3 = inlined_call_operand.hbm [shape: f32[8,192], index: 3, kind: input, shape index: {}]   ;;  %s6460_s4 = inlined_call_operand.vmem [shape: f32[8,1], index: 4, kind: input, shape index: {}]   ;;  %s6461_s5 = inlined_call_operand.hbm [shape: f32[2,8,256], index: 5, kind: output, shape index: {}]  }
   0x1   :  { %12 = vsyncpa [#allocation5 + $0x1], 0 }
   0x2   :  { %13 = vsyncpa [#allocation8], 0 }
   0x3   :  { %14 = vsyncpa [#allocation6], 0 }
   0x4   :  { %16 = vsyncpa [#allocation6 + $0x1], 0  ;;  %s4275_s18 = smov 0   ;;  %s4277_s19 = smov 0  }
   0x5   :  { %s4279_s20 = smov 0   ;;  %s4281_s21 = smov 0  }
   0x6 LB: > { %s4296_s22 = sadd.s32 4294967295, %s4232_s21   ;;  %s3378_s23 = sadd.s32 4294967294, %s4232_s21   ;;  %s4232_s21 = sphi %s4281_s21, %s6747_s21   ;;  %s4228_s20 = sphi %s4279_s20, %s6746_s20   ;;  %s4224_s19 = sphi %s4277_s19, %s6745_s19   ;;  %s4220_s18 = sphi %s4275_s18, %s6744_s18  }
   0x7   : > { %p42_p0 = scmp.ne.s32.totalorder %s4224_s19, %s4220_s18  ;;  %p43_p1 = scmp.eq.s32.totalorder %s4296_s22, 0 }
   0x8   : > { %p150_p2 = scmp.eq.s32.totalorder %s4296_s22, 1  ;;  %p156_p3 = scmp.eq.s32.totalorder %s3378_s23, 1 }
   0x9   : > { %p4305_p4 = por %p43_p1, %p42_p0  ;;  %p3379_p5 = scmp.ge.s32.totalorder %s4232_s21, 1 }
   0xa   : > { %p4310_p6 = por %p156_p3, %p42_p0  ;;  %p163_p7 = scmp.lt.s32.totalorder %s4232_s21, 3 }
   0xb   : > { %s174_s28 = sshll.u32 %s6457_s1, 4  ;;  %s4234_s30 = smov [#allocation7]   ;;  %s175_s28 = int_to_ptr.hbm [resolvable:$true] %s174_s28 }
   0xc   : > { %p4318_p8 = pnand %p3379_p5, %p163_p7  ;;  %s176_s6 = sshll.u32 %s4234_s30, 4  ;;  %s177_s6 = int_to_ptr.vmem [resolvable:$true] %s176_s6 }
   0xd   : > { %s192_s9 = sshll.u32 %s6459_s3, 4  ;;  %s4235_s10 = smov 128   ;;  %s193_s9 = int_to_ptr.hbm [resolvable:$true] %s192_s9 }
   0xe   : > { %p3987_p9 = pneg %p4318_p8  ;;  %s4236_s11 = smov 8  }
   0xf   : > { %s4237_s12 = smov [#allocation9]   ;;  %s4331_s14 = sadd.s32 1, %s4232_s21  }
  0x10   : > { %p3988_p10 = pnand %p3987_p9, %p43_p1  ;;  %s194_s13 = sshll.u32 %s4237_s12, 4  ;;  %s195_s13 = int_to_ptr.vmem [resolvable:$true] %s194_s13 }
  0x11   : > { %s29_s15 = sadd.s32 1, %s4228_s20  ;;  %s26_s16 = ssub.s32 %s4232_s21, %s4331_s14 }
  0x12   : > { %3990 = dma.hbm_to_vmem [thread:$0]  (!%p3988_p10), %s175_s28, 4608, %s177_s6, [#allocation8], %s4235_s10, %s4235_s10, %s4236_s11  }
  0x13   : > { %3993 = dma.hbm_to_vmem [thread:$0]  (!%p3988_p10), %s193_s9, 256, %s195_s13, [#allocation8]  }
  0x14   : > { %p36_p12 = scmp.ne.s32.totalorder %s4228_s20, %s4224_s19  ;;  %p27_p13 = scmp.eq.s32.totalorder %s26_s16, 0 }
  0x15   : > { %p37_p0 = scmp.eq.s32.totalorder %s4232_s21, 0  ;;  %p4004_p5 = scmp.lt.s32.totalorder %s4232_s21, 2 }
  0x16   : > { %p4341_p3 = por %p150_p2, %p36_p12  ;;  %s208_s26 = sand.u32 1, %s4228_s20  }
  0x17   : > { %s4347_s23 = scalar_select %p27_p13, %s4228_s20, %s29_s15  }
  0x18   : > { %p38_p7 = por %p37_p0, %p36_p12  ;;  %s3383_s27 = sshll.u32 %s208_s26, 7 }
  0x19   : > { %s3800_s28 = sshll.u32 %s4232_s21, 7  ;;  %s212_s8 = scalar_lea.vmem [#allocation4], %s3383_s27 }
  0x1a   : > { %s217_s7 = scalar_lea.hbm %s6456_s0, %s3800_s28  ;;  %s220_s9 = sshll.u32 %s212_s8, 4  ;;  %s221_s9 = int_to_ptr.vmem [resolvable:$true] %s220_s9 }
  0x1b   : > { %s218_s10 = sshll.u32 %s217_s7, 4  ;;  %p4354_p2 = pnand %p4004_p5, %p38_p7  ;;  %s219_s10 = int_to_ptr.hbm [resolvable:$true] %s218_s10 }
  0x1c   : > { %s209_s12 = scalar_lea.sflag [#allocation5], %s208_s26  ;;  %s4132_s13 = sshra.s32 %s219_s10, 4  ;;  %s4133_s13 = int_to_ptr.hbm [resolvable:$true] %s4132_s13 }
  0x1d   : > { %s4134_s15 = scalar_lea.hbm %s4133_s13, 128  ;;  %p4136_p10 = pneg %p4354_p2 }
  0x1e   : > { %p4135_p9 = scmp.ne.s32.totalorder %s4133_s13, %s4134_s15  ;;  %s4139_s28 = scalar_lea.hbm %s6456_s0, 256 }
  0x1f   : > { %p4140_p0 = scmp.lt.s32.totalorder %s4133_s13, %s6456_s0  ;;  %p4141_p5 = scmp.lt.s32.totalorder %s4139_s28, %s4134_s15 }
  0x20   : > { %p4137_p12 = pnand %p4136_p10, %p4135_p9 }
  0x21   : > { %p4142_p7 = por %p4141_p5, %p4140_p0 }
  0x22   : > { %p4138_p13 = pneg %p4137_p12 }
  0x24   : > { %p4143_p11 = pnand %p4142_p7, %p4138_p13 }
  0x26   : > { %4146 = shalt.err (!%p4143_p11)
}
  0x27   : > { %s4238_s26 = smov 64   ;;  %s4239_s7 = smov 4  }
  0x28   : > { %3997 = dma.hbm_to_vmem [thread:$0]  (!%p4354_p2), %s219_s10, 2048, %s221_s9, %s209_s12, %s4238_s26, %s4238_s26, %s4239_s7  }
  0x29   : > { %232 = sbr.rel (%p4318_p8) target bundleno = 1118 (0x45e), region = 40 }
  0x2e   : > { %s4371_s8 = sand.u32 1, %s4224_s19  }
  0x2f   : > { %s3387_s16 = sshll.u32 %s4371_s8, 7  ;;  %s235_s13 = scalar_lea.sflag [#allocation5], %s4371_s8 }
  0x30   : > { %s4375_s15 = scalar_lea.vmem [#allocation4], %s3387_s16 }
  0x31   : > { %4207 = dma.done.wait (%p4305_p4), %s235_s13, 2048  }
  0x32   : > { %4209 = vsyncadd (%p4305_p4), %s235_s13, 4294965248 }
  0x33   : > { %4211 = dma.done.wait (%p43_p1), [#allocation8], 4864  }
  0x34   : > { %4213 = vsyncadd (%p43_p1), [#allocation8], 4294962432  ;;  %vm277_vm0 = vcmask 261120   ;;  %v4240_v0 = vmov 0.0   ;;  %vm903_vm1 = vcmask 1045504   ;;  %vm597_vm2 = vcmask 1046528  }
  0x35   : > { %278 = vst.msk [vmem:[#allocation2] sm:$0xff] %vm277_vm0, %v4240_v0  ;;  %s4241_s24 = smov 64   ;;  %s4242_s29 = smov 32   ;;  %vm280_vm3 = vcmask 254976   ;;  %v3887_v18 = vld [vmem:[%s4375_s15] sm:$0xff]   ;;  %v3950_v19 = vld [vmem:[%s4375_s15 + $0x8] sm:$0xff]  }
  0x36   : > { %279 = vst.msk [vmem:[#allocation2 + $0x8] sm:$0xff] %vm277_vm0, %v4240_v0  ;;  %v3888_v20 = vunpack.c.l.bf16 %v3887_v18  ;;  %v3889_v21 = vunpack.c.h.bf16 %v3887_v18  ;;  %v3892_v22 = vunpack.c.l.bf16 %v3950_v19  ;;  %v3893_v23 = vunpack.c.h.bf16 %v3950_v19  ;;  %v3951_v24 = vld [vmem:[%s4375_s15 + $0x10] sm:$0xff]   ;;  %v3961_v27 = vld [vmem:[%s4375_s15 + $0x60] sm:$0xff]   ;;  %v3884_v33 = vld [vmem:[#allocation7 + $0x114] sm:$0xf0]  ;;  %s4243_s9 = smov 96  }
  0x37   : > { %282 = vst.msk [vmem:[#allocation2 + $0x18] sm:$0xff] %vm277_vm0, %v4240_v0  ;;  %v3896_v28 = vunpack.c.l.bf16 %v3951_v24  ;;  %vm516_vm4 = vcmask 257024   ;;  %v3897_v29 = vunpack.c.h.bf16 %v3951_v24  ;;  %v3936_v30 = vunpack.c.l.bf16 %v3961_v27  ;;  %v3721_v32 = vld [vmem:[#allocation7 + $0x110] sm:$0xf]  ;;  %s3390_s28 = sshll.u32 %s4371_s8, 4  ;;  %s3885_s6 = sshll.u32 %s4296_s22, 4 }
  0x38   : > { %283 = vst.msk [vmem:[#allocation2 + $0x20] sm:$0xff] %vm277_vm0, %v4240_v0  ;;  %v3937_v31 = vunpack.c.h.bf16 %v3961_v27  ;;  %v3722_v35 = vor.u32 %v3884_v33, %v3721_v32  ;;  %vm870_vm5 = vcmask 519424   ;;  %vm1176_vm6 = vcmask 781824   ;;  %s6418_s30 = scalar_lea.vmem [#allocation10], %s3390_s28  ;;  %s3284_s16 = scalar_lea.hbm %s6461_s5, %s3885_s6 }
  0x39   : > { %285 = vst.msk [vmem:[#allocation2 + $0x30] sm:$0xff] %vm277_vm0, %v4240_v0  ;;  %vm1339_vm7 = vcmask 1044224   ;;  %vm3052_vm8 = vcmask 523264   ;;  %s3286_s13 = sshll.u32 %s6418_s30, 4  ;;  %s3273_s22 = scalar_lea.sflag [#allocation6], %s4371_s8  ;;  %s3287_s13 = int_to_ptr.vmem [resolvable:$true] %s3286_s13 }
  0x3a   : > { %286 = vst.msk [vmem:[#allocation2 + $0x38] sm:$0xff] %vm277_vm0, %v4240_v0  ;;  %3973 = vmatpush.bf16.msra.mxu3 %v3722_v35  ;;  %2630 = vmatpush.bf16.msra.mxu2 %v3722_v35  ;;  %s4182_s11 = scalar_lea.hbm %s6461_s5, 32 }
  0x3b   : > { %288 = vst.msk [vmem:[#allocation2 + $0x48] sm:$0xff] %vm277_vm0, %v4240_v0 }
  0x3c   : > { %v4399_v1 = vld [vmem:[#allocation2] sm:$0xff]  ;;  %289 = vst.msk [vmem:[#allocation2 + $0x50] sm:$0xff] %vm277_vm0, %v4240_v0 }
  0x3d   : > { %v4403_v2 = vld [vmem:[#allocation2 + $0x8] sm:$0xff]  ;;  %v904_v3 = vrot.slane %v4399_v1, 2  ;;  %291 = vst.msk [vmem:[#allocation2 + $0x60] sm:$0xff] %vm277_vm0, %v4240_v0  ;;  %v598_v4 = vrot.slane %v4399_v1, 1  ;;  %v484_v25 = vpack.c.bf16 %v4399_v1, %v4399_v1 }
  0x3e   : > { %v905_v5 = vrot.slane %v4403_v2, 2  ;;  %292 = vst.msk [vmem:[#allocation2 + $0x68] sm:$0xff] %vm277_vm0, %v4240_v0  ;;  %v599_v6 = vrot.slane %v4403_v2, 1  ;;  %v485_v26 = vpack.c.bf16 %v4403_v2, %v4403_v2 }
  0x3f   : > { %294 = vst.msk [vmem:[#allocation2 + $0x78] sm:$0xff] %vm277_vm0, %v4240_v0 }
  0x40   : > { %v906_v7 = vsel %vm903_vm1, %v904_v3, %v905_v5  ;;  %295 = vst.msk [vmem:[#allocation2 + $0x80] sm:$0xff] %vm277_vm0, %v4240_v0  ;;  %v600_v8 = vsel %vm597_vm2, %v598_v4, %v599_v6 }
  0x41   : > { %v1016_v9 = vpack.c.bf16 %v906_v7, %v906_v7  ;;  %297 = vst.msk [vmem:[#allocation2 + $0x90] sm:$0xff] %vm277_vm0, %v4240_v0  ;;  %v710_v10 = vpack.c.bf16 %v600_v8, %v600_v8 }
  0x42   : > { %298 = vst.msk [vmem:[#allocation2 + $0x98] sm:$0xff] %vm277_vm0, %v4240_v0 }
  0x43   : > { %1080 = vrot.lane.b32.xlu1 %v1016_v9, %s4241_s24  ;;  %300 = vst.msk [vmem:[#allocation2 + $0xa8] sm:$0xff] %vm277_vm0, %v4240_v0  ;;  %774 = vrot.lane.b32.xlu0 %v710_v10, %s4242_s29  ;;  %v3882_v10 = vld [vmem:[#allocation7 + $0x104] sm:$0xf0] }
  0x44   : > { %301 = vst.msk [vmem:[#allocation2 + $0xb0] sm:$0xff] %vm277_vm0, %v4240_v0 }
  0x45   : > { %303 = vst.msk [vmem:[#allocation2 + $0xc0] sm:$0xff] %vm277_vm0, %v4240_v0 }
  0x46   : > { %304 = vst.msk [vmem:[#allocation2 + $0xc8] sm:$0xff] %vm277_vm0, %v4240_v0 }
  0x47   : > { %306 = vst.msk [vmem:[#allocation2 + $0xd8] sm:$0xff] %vm277_vm0, %v4240_v0 }
  0x48   : > { %307 = vst.msk [vmem:[#allocation2 + $0xe0] sm:$0xff] %vm277_vm0, %v4240_v0 }
  0x49   : > { %309 = vst.msk [vmem:[#allocation2 + $0xf0] sm:$0xff] %vm277_vm0, %v4240_v0 }
  0x4a   : > { %310 = vst.msk [vmem:[#allocation2 + $0xf8] sm:$0xff] %vm277_vm0, %v4240_v0 }
  0x4b   : > { %312 = vst.msk [vmem:[#allocation2 + $0x108] sm:$0xff] %vm277_vm0, %v4240_v0 }
  0x4c   : > { %313 = vst.msk [vmem:[#allocation2 + $0x110] sm:$0xff] %vm277_vm0, %v4240_v0 }
  0x4d   : > { %315 = vst.msk [vmem:[#allocation2 + $0x120] sm:$0xff] %vm277_vm0, %v4240_v0 }
  0x4e   : > { %316 = vst.msk [vmem:[#allocation2 + $0x128] sm:$0xff] %vm277_vm0, %v4240_v0 }
  0x4f   : > { %318 = vst.msk [vmem:[#allocation2 + $0x138] sm:$0xff] %vm277_vm0, %v4240_v0 }
  0x50   : > { %319 = vst.msk [vmem:[#allocation2 + $0x140] sm:$0xff] %vm277_vm0, %v4240_v0 }
  0x51   : > { %321 = vst.msk [vmem:[#allocation2 + $0x150] sm:$0xff] %vm277_vm0, %v4240_v0 }
  0x52   : > { %322 = vst.msk [vmem:[#allocation2 + $0x158] sm:$0xff] %vm277_vm0, %v4240_v0 }
  0x53   : > { %324 = vst.msk [vmem:[#allocation2 + $0x168] sm:$0xff] %vm277_vm0, %v4240_v0 }
  0x54   : > { %325 = vst.msk [vmem:[#allocation2 + $0x170] sm:$0xff] %vm277_vm0, %v4240_v0 }
  0x55   : > { %327 = vst.msk [vmem:[#allocation2 + $0x180] sm:$0xff] %vm277_vm0, %v4240_v0 }
  0x56   : > { %328 = vst.msk [vmem:[#allocation2 + $0x188] sm:$0xff] %vm277_vm0, %v4240_v0 }
  0x57   : > { %330 = vst.msk [vmem:[#allocation2 + $0x198] sm:$0xff] %vm277_vm0, %v4240_v0 }
  0x58   : > { %331 = vst.msk [vmem:[#allocation2 + $0x1a0] sm:$0xff] %vm277_vm0, %v4240_v0 }
  0x59   : > { %281 = vst.msk [vmem:[#allocation2 + $0x10] sm:$0x3] %vm280_vm3, %v4240_v0 }
  0x5a   : > { %284 = vst.msk [vmem:[#allocation2 + $0x28] sm:$0x3] %vm280_vm3, %v4240_v0 }
  0x5b   : > { %287 = vst.msk [vmem:[#allocation2 + $0x40] sm:$0x3] %vm280_vm3, %v4240_v0 }
  0x5c   : > { %290 = vst.msk [vmem:[#allocation2 + $0x58] sm:$0x3] %vm280_vm3, %v4240_v0 }
  0x5d   : > { %293 = vst.msk [vmem:[#allocation2 + $0x70] sm:$0x3] %vm280_vm3, %v4240_v0 }
  0x5e   : > { %296 = vst.msk [vmem:[#allocation2 + $0x88] sm:$0x3] %vm280_vm3, %v4240_v0 }
  0x5f   : > { %299 = vst.msk [vmem:[#allocation2 + $0xa0] sm:$0x3] %vm280_vm3, %v4240_v0 }
  0x60   : > { %v432_v11 = vld [vmem:[#allocation2 + $0x10] sm:$0x3]  ;;  %302 = vst.msk [vmem:[#allocation2 + $0xb8] sm:$0x3] %vm280_vm3, %v4240_v0 }
  0x61   : > { %v907_v12 = vrot.slane %v432_v11, 2  ;;  %305 = vst.msk [vmem:[#allocation2 + $0xd0] sm:$0x3] %vm280_vm3, %v4240_v0  ;;  %v601_v13 = vrot.slane %v432_v11, 1 }
  0x62   : > { %308 = vst.msk [vmem:[#allocation2 + $0xe8] sm:$0x3] %vm280_vm3, %v4240_v0 }
  0x63   : > { %v908_v14 = vsel %vm903_vm1, %v905_v5, %v907_v12  ;;  %311 = vst.msk [vmem:[#allocation2 + $0x100] sm:$0x3] %vm280_vm3, %v4240_v0  ;;  %v602_v15 = vsel %vm597_vm2, %v599_v6, %v601_v13  ;;  %v3713_v5 = vld [vmem:[#allocation7 + $0x100] sm:$0xf] }
  0x64   : > { %v1017_v16 = vpack.c.bf16 %v908_v14, %v908_v14  ;;  %314 = vst.msk [vmem:[#allocation2 + $0x118] sm:$0x3] %vm280_vm3, %v4240_v0  ;;  %v711_v17 = vpack.c.bf16 %v602_v15, %v602_v15  ;;  %v3714_v14 = vor.u32 %v3882_v10, %v3713_v5 }
  0x65   : > { %317 = vst.msk [vmem:[#allocation2 + $0x130] sm:$0x3] %vm280_vm3, %v4240_v0 }
  0x66   : > { %1082 = vrot.lane.b32.xlu1 %v1017_v16, %s4241_s24  ;;  %320 = vst.msk [vmem:[#allocation2 + $0x148] sm:$0x3] %vm280_vm3, %v4240_v0  ;;  %776 = vrot.lane.b32.xlu0 %v711_v17, %s4242_s29 }
  0x67   : > { %323 = vst.msk [vmem:[#allocation2 + $0x160] sm:$0x3] %vm280_vm3, %v4240_v0  ;;  %3974 = vmatpush.bf16.msra.mxu3 %v3714_v14  ;;  %2631 = vmatpush.bf16.msra.mxu2 %v3714_v14 }
  0x68   : > { %326 = vst.msk [vmem:[#allocation2 + $0x178] sm:$0x3] %vm280_vm3, %v4240_v0 }
  0x69   : > { %329 = vst.msk [vmem:[#allocation2 + $0x190] sm:$0x3] %vm280_vm3, %v4240_v0 }
  0x6a   : > { %332 = vst.msk [vmem:[#allocation2 + $0x1a8] sm:$0x3] %vm280_vm3, %v4240_v0 }
  0x6b   : > { %398 = vst.msk [vmem:[#allocation2 + $0x19] sm:$0xff] %vm277_vm0, %v3888_v20 }
  0x6c   : > { %399 = vst.msk [vmem:[#allocation2 + $0x21] sm:$0xff] %vm277_vm0, %v3889_v21 }
  0x6d   : > { %400 = vst.msk [vmem:[#allocation2 + $0x31] sm:$0xff] %vm277_vm0, %v3892_v22  ;;  %v3952_v22 = vld [vmem:[%s4375_s15 + $0x18] sm:$0xff]  }
  0x6e   : > { %401 = vst.msk [vmem:[#allocation2 + $0x39] sm:$0xff] %vm277_vm0, %v3893_v23  ;;  %v3900_v33 = vunpack.c.l.bf16 %v3952_v22  ;;  %v3901_v35 = vunpack.c.h.bf16 %v3952_v22 }
  0x6f   : > { %517 = vst.msk [vmem:[#allocation3] sm:$0xf] %vm516_vm4, %v484_v25 }
  0x70   : > { %518 = vst.msk [vmem:[#allocation3 + $0xc] sm:$0xf] %vm516_vm4, %v485_v26 }
  0x71   : > { %402 = vst.msk [vmem:[#allocation2 + $0x49] sm:$0xff] %vm277_vm0, %v3896_v28 }
  0x72   : > { %v433_v34 = vld [vmem:[#allocation2 + $0x18] sm:$0xff]  ;;  %403 = vst.msk [vmem:[#allocation2 + $0x51] sm:$0xff] %vm277_vm0, %v3897_v29 }
  0x73   : > { %v434_v36 = vld [vmem:[#allocation2 + $0x20] sm:$0xff]  ;;  %v435_v37 = vld [vmem:[#allocation2 + $0x28] sm:$0x3]  ;;  %v603_v38 = vrot.slane %v433_v34, 1  ;;  %v486_v39 = vpack.c.bf16 %v433_v34, %v433_v34  ;;  %422 = vst.msk [vmem:[#allocation2 + $0x139] sm:$0xff] %vm277_vm0, %v3936_v30  ;;  %v909_v56 = vrot.slane %v433_v34, 2 }
  0x74   : > { %v604_v40 = vrot.slane %v434_v36, 1  ;;  %v606_v41 = vrot.slane %v435_v37, 1  ;;  %v4526_v42 = vld [vmem:[#allocation2 + $0x30] sm:$0xff]  ;;  %v910_v43 = vrot.slane %v434_v36, 2  ;;  %v912_v44 = vrot.slane %v435_v37, 2  ;;  %423 = vst.msk [vmem:[#allocation2 + $0x141] sm:$0xff] %vm277_vm0, %v3937_v31 }
  0x75   : > { %v4531_v45 = vpack.c.bf16 %v4526_v42, %v4526_v42  ;;  %v608_v46 = vrot.slane %v4526_v42, 1  ;;  %1243 = vrot.lane.b32.xlu2 %v486_v39, %s4243_s9  ;;  %519 = vst.msk [vmem:[#allocation3 + $0x18] sm:$0xf] %vm516_vm4, %v486_v39  ;;  %v4536_v47 = vld [vmem:[#allocation2 + $0x38] sm:$0xff]  ;;  %v438_v50 = vld [vmem:[#allocation2 + $0x40] sm:$0x3]  ;;  %v487_v52 = vpack.c.bf16 %v434_v36, %v434_v36 }
  0x76   : > { %v607_v48 = vsel %vm597_vm2, %v604_v40, %v606_v41  ;;  %v605_v49 = vsel %vm597_vm2, %v603_v38, %v604_v40  ;;  %v609_v51 = vrot.slane %v4536_v47, 1  ;;  %v611_v55 = vrot.slane %v438_v50, 1  ;;  %v3962_v37 = vld [vmem:[%s4375_s15 + $0x68] sm:$0xff]   ;;  %404 = vst.msk [vmem:[#allocation2 + $0x61] sm:$0xff] %vm277_vm0, %v3900_v33 }
  0x77   : > { %v713_v53 = vpack.c.bf16 %v607_v48, %v607_v48  ;;  %v712_v54 = vpack.c.bf16 %v605_v49, %v605_v49  ;;  %521 = vst.msk [vmem:[#allocation3 + $0x30] sm:$0xf] %vm516_vm4, %v4531_v45  ;;  %v913_v57 = vsel %vm903_vm1, %v910_v43, %v912_v44  ;;  %v915_v60 = vrot.slane %v4536_v47, 2  ;;  %v3958_v41 = vld [vmem:[%s4375_s15 + $0x48] sm:$0xff]   ;;  %v3963_v44 = vld [vmem:[%s4375_s15 + $0x70] sm:$0xff]  }
  0x78   : > { %v610_v58 = vsel %vm597_vm2, %v608_v46, %v609_v51  ;;  %520 = vst.msk [vmem:[#allocation3 + $0x24] sm:$0xf] %vm516_vm4, %v487_v52  ;;  %v4546_v59 = vld [vmem:[#allocation2 + $0x48] sm:$0xff]  ;;  %v917_v61 = vrot.slane %v438_v50, 2  ;;  %v612_v62 = vsel %vm597_vm2, %v609_v51, %v611_v55  ;;  %v4562_v6 = vpack.c.bf16 %v913_v57, %v913_v57 }
  0x79   : > { %780 = vrot.lane.b32.xlu1 %v713_v53, %s4242_s29  ;;  %778 = vrot.lane.b32.xlu0 %v712_v54, %s4242_s29  ;;  %1384 = vst.msk [vmem:[#allocation3 + $0x4] sm:$0xf] %vm516_vm4, %v712_v54  ;;  %v4553_v63 = vpack.c.bf16 %v610_v58, %v610_v58  ;;  %v4555_v0 = vld [vmem:[#allocation2 + $0x50] sm:$0xff]  ;;  %v441_v1 = vld [vmem:[#allocation2 + $0x58] sm:$0x3]  ;;  %v4558_v2 = vpack.c.bf16 %v612_v62, %v612_v62  ;;  %v613_v3 = vrot.slane %v4546_v59, 1  ;;  %v3940_v40 = vunpack.c.l.bf16 %v3962_v37 }
  0x7a   : > { %1385 = vst.msk [vmem:[#allocation3 + $0x10] sm:$0xf] %vm516_vm4, %v713_v53  ;;  %v918_v4 = vsel %vm903_vm1, %v915_v60, %v917_v61  ;;  %v4568_v7 = vpack.c.bf16 %v4546_v59, %v4546_v59  ;;  %v614_v8 = vrot.slane %v4555_v0, 1  ;;  %v616_v9 = vrot.slane %v441_v1, 1  ;;  %v4580_v15 = vld [vmem:[#allocation2 + $0x138] sm:$0xff] }
  0x7b   : > { %1386 = vst.msk [vmem:[#allocation3 + $0x1c] sm:$0xf] %vm516_vm4, %v4553_v63  ;;  %v4573_v11 = vpack.c.bf16 %v918_v4, %v918_v4  ;;  %v911_v12 = vsel %vm903_vm1, %v909_v56, %v910_v43  ;;  %v4578_v13 = vpack.c.bf16 %v4536_v47, %v4536_v47  ;;  %v4582_v16 = vld [vmem:[#allocation2 + $0x140] sm:$0xff]  ;;  %v471_v17 = vld [vmem:[#allocation2 + $0x148] sm:$0x3]  ;;  %v969_v20 = vrot.slane %v4580_v15, 2 }
  0x7c   : > { %1387 = vst.msk [vmem:[#allocation3 + $0x28] sm:$0xf] %vm516_vm4, %v4558_v2  ;;  %v617_v18 = vsel %vm597_vm2, %v614_v8, %v616_v9  ;;  %v615_v19 = vsel %vm597_vm2, %v613_v3, %v614_v8  ;;  %v970_v21 = vrot.slane %v4582_v16, 2  ;;  %v914_v23 = vrot.slane %v4526_v42, 2  ;;  %v3953_v3 = vld [vmem:[%s4375_s15 + $0x20] sm:$0xff]  }
  0x7d   : > { %1245 = vrot.lane.b32.xlu2 %v487_v52, %s4243_s9  ;;  %523 = vst.msk [vmem:[#allocation3 + $0x48] sm:$0xf] %vm516_vm4, %v4568_v7  ;;  %v4595_v24 = vpack.c.bf16 %v617_v18, %v617_v18  ;;  %v972_v25 = vrot.slane %v471_v17, 2  ;;  %v920_v26 = vrot.slane %v4555_v0, 2  ;;  %v4598_v27 = vpack.c.bf16 %v615_v19, %v615_v19  ;;  %v4655_v53 = vld [vmem:[#allocation2 + $0x60] sm:$0xff] }
  0x7e   : > { %1841 = vst.msk [vmem:[#allocation3 + $0x14] sm:$0xf] %vm516_vm4, %v4573_v11  ;;  %v971_v28 = vsel %vm903_vm1, %v969_v20, %v970_v21  ;;  %v922_v29 = vrot.slane %v441_v1, 2  ;;  %v4603_v30 = vpack.c.bf16 %v911_v12, %v911_v12  ;;  %v916_v38 = vsel %vm903_vm1, %v914_v23, %v915_v60 }
  0x7f   : > { %522 = vst.msk [vmem:[#allocation3 + $0x3c] sm:$0xf] %vm516_vm4, %v4578_v13  ;;  %v973_v31 = vsel %vm903_vm1, %v970_v21, %v972_v25  ;;  %v4608_v32 = vpack.c.bf16 %v971_v28, %v971_v28  ;;  %v4634_v42 = vpack.c.bf16 %v916_v38, %v916_v38  ;;  %v3941_v43 = vunpack.c.h.bf16 %v3962_v37 }
  0x80   : > { %1389 = vst.msk [vmem:[#allocation3 + $0x40] sm:$0xf] %vm516_vm4, %v4595_v24  ;;  %v4616_v34 = vpack.c.bf16 %v973_v31, %v973_v31  ;;  %v923_v36 = vsel %vm903_vm1, %v920_v26, %v922_v29  ;;  %v3924_v46 = vunpack.c.l.bf16 %v3958_v41  ;;  %v4643_v47 = vpack.c.bf16 %v4555_v0, %v4555_v0 }
  0x81   : > { %6523 = vst [vmem:[#allocation14_spill] sm:$0xff] %v4608_v32  ;;  %1247 = vrot.lane.b32.xlu1 %v4531_v45, %s4243_s9  ;;  %1086 = vrot.lane.b32.xlu0 %v4562_v6, %s4241_s24  ;;  %v4628_v39 = vpack.c.bf16 %v923_v36, %v923_v36  ;;  %v3925_v48 = vunpack.c.h.bf16 %v3958_v41  ;;  %v3944_v50 = vunpack.c.l.bf16 %v3963_v44  ;;  %v3945_v54 = vunpack.c.h.bf16 %v3963_v44 }
  0x82   : > { %1388 = vst.msk [vmem:[#allocation3 + $0x34] sm:$0xf] %vm516_vm4, %v4598_v27  ;;  %v919_v55 = vrot.slane %v4546_v59, 2  ;;  %v4661_v56 = vpack.c.bf16 %v4655_v53, %v4655_v53  ;;  %v618_v57 = vrot.slane %v4655_v53, 1  ;;  %v3904_v4 = vunpack.c.l.bf16 %v3953_v3 }
  0x83   : > { %6524 = vst [vmem:[#allocation15_spill] sm:$0xff] %v4616_v34  ;;  %v3905_v5 = vunpack.c.h.bf16 %v3953_v3 }
  0x84   : > { %1862 = vst.msk [vmem:[#allocation3 + $0x110] sm:$0xf] %vm516_vm4, %v4608_v32  ;;  %v921_v20 = vsel %vm903_vm1, %v919_v55, %v920_v26 }
  0x85   : > { %1863 = vst.msk [vmem:[#allocation3 + $0x11c] sm:$0xf] %vm516_vm4, %v4616_v34  ;;  %1084 = vrot.lane.b32.xlu2 %v4603_v30, %s4241_s24  ;;  %v4715_v33 = vpack.c.bf16 %v921_v20, %v921_v20 }
  0x86   : > { %405 = vst.msk [vmem:[#allocation2 + $0x69] sm:$0xff] %vm277_vm0, %v3901_v35 }
  0x87   : > { %1843 = vst.msk [vmem:[#allocation3 + $0x2c] sm:$0xf] %vm516_vm4, %v4628_v39 }
  0x88   : > { %1840 = vst.msk [vmem:[#allocation3 + $0x8] sm:$0xf] %vm516_vm4, %v4634_v42 }
  0x89   : > { %424 = vst.msk [vmem:[#allocation2 + $0x151] sm:$0xff] %vm277_vm0, %v3940_v40  ;;  %784 = vrot.lane.b32.xlu1 %v4558_v2, %s4242_s29  ;;  %782 = vrot.lane.b32.xlu0 %v4553_v63, %s4242_s29  ;;  %v3959_v40 = vld [vmem:[%s4375_s15 + $0x50] sm:$0xff]  }
  0x8a   : > { %425 = vst.msk [vmem:[#allocation2 + $0x159] sm:$0xff] %vm277_vm0, %v3941_v43  ;;  %v3928_v41 = vunpack.c.l.bf16 %v3959_v40 }
  0x8b   : > { %v3533_v49 = vld [vmem:[#allocation3 + $0x110] sm:$0xf]  ;;  %524 = vst.msk [vmem:[#allocation3 + $0x54] sm:$0xf] %vm516_vm4, %v4643_v47 }
  0x8c   : > { %v3836_v51 = vld [vmem:[#allocation3 + $0x118] sm:$0xf0]  ;;  %416 = vst.msk [vmem:[#allocation2 + $0xf1] sm:$0xff] %vm277_vm0, %v3924_v46 }
  0x8d   : > { %v4653_v52 = vor.u32 %v3836_v51, %v3533_v49  ;;  %6526 = vst [vmem:[#allocation17_spill] sm:$0xff] %v4661_v56  ;;  %v4664_v58 = vld [vmem:[#allocation2 + $0x68] sm:$0xff]  ;;  %v444_v60 = vld [vmem:[#allocation2 + $0x70] sm:$0x3]  ;;  %1249 = vrot.lane.b32.xlu2 %v4578_v13, %s4243_s9 }
  0x8e   : > { %417 = vst.msk [vmem:[#allocation2 + $0xf9] sm:$0xff] %vm277_vm0, %v3925_v48  ;;  %v619_v61 = vrot.slane %v4664_v58, 1  ;;  %v621_v59 = vrot.slane %v444_v60, 1  ;;  %v925_v62 = vrot.slane %v4664_v58, 2  ;;  %v927_v1 = vrot.slane %v444_v60, 2 }
  0x8f   : > { %6525 = vst [vmem:[#allocation16_spill] sm:$0xff] %v4653_v52  ;;  %3738 = vmatmul.msk.bf16.vlgmr.msra.gmra.mxu3 %vm277_vm0, %v4653_v52  ;;  %v3954_v52 = vld [vmem:[%s4375_s15 + $0x28] sm:$0xff]  }
  0x90   : > { %426 = vst.msk [vmem:[#allocation2 + $0x169] sm:$0xff] %vm277_vm0, %v3944_v50  ;;  %v622_v8 = vsel %vm597_vm2, %v619_v61, %v621_v59  ;;  %v620_v9 = vsel %vm597_vm2, %v618_v57, %v619_v61  ;;  %v4679_v10 = vld [vmem:[#allocation2 + $0x150] sm:$0xff]  ;;  %v928_v12 = vsel %vm903_vm1, %v925_v62, %v927_v1  ;;  %v3964_v61 = vld [vmem:[%s4375_s15 + $0x78] sm:$0xff]   ;;  %v4765_v59 = vpack.c.bf16 %v4664_v58, %v4664_v58 }
  0x91   : > { %525 = vst.msk [vmem:[#allocation3 + $0x60] sm:$0xf] %vm516_vm4, %v4661_v56  ;;  %v4685_v14 = vpack.c.bf16 %v622_v8, %v622_v8  ;;  %v4687_v17 = vld [vmem:[#allocation2 + $0x158] sm:$0xff]  ;;  %v474_v18 = vld [vmem:[#allocation2 + $0x160] sm:$0x3]  ;;  %v974_v19 = vrot.slane %v4679_v10, 2  ;;  %1251 = vrot.lane.b32.xlu1 %v4568_v7, %s4243_s9  ;;  %1090 = vrot.lane.b32.xlu0 %v4573_v11, %s4241_s24  ;;  %v4698_v21 = vpack.c.bf16 %v620_v9, %v620_v9  ;;  %v3929_v9 = vunpack.c.h.bf16 %v3959_v40 }
  0x92   : > { %427 = vst.msk [vmem:[#allocation2 + $0x171] sm:$0xff] %vm277_vm0, %v3945_v54  ;;  %v975_v22 = vrot.slane %v4687_v17, 2  ;;  %v977_v23 = vrot.slane %v474_v18, 2  ;;  %v4706_v25 = vpack.c.bf16 %v928_v12, %v928_v12  ;;  %v3948_v20 = vunpack.c.l.bf16 %v3964_v61 }
  0x93   : > { %6527 = vst [vmem:[#allocation18_spill] sm:$0xff] %v4685_v14  ;;  %v4704_v0 = vld [vmem:[#allocation2 + $0xf0] sm:$0xff] }
  0x94   : > { %406 = vst.msk [vmem:[#allocation2 + $0x79] sm:$0xff] %vm277_vm0, %v3904_v4  ;;  %v976_v26 = vsel %vm903_vm1, %v974_v19, %v975_v22  ;;  %v978_v28 = vsel %vm903_vm1, %v975_v22, %v977_v23  ;;  %v648_v31 = vrot.slane %v4704_v0, 1  ;;  %v924_v4 = vrot.slane %v4655_v53, 2 }
  0x95   : > { %6528 = vst [vmem:[#allocation19_spill] sm:$0xff] %v4698_v21  ;;  %v4712_v29 = vld [vmem:[#allocation2 + $0xf8] sm:$0xff]  ;;  %v4717_v35 = vpack.c.bf16 %v976_v26, %v976_v26  ;;  %v4719_v36 = vpack.c.bf16 %v978_v28, %v978_v28  ;;  %1088 = vrot.lane.b32.xlu2 %v4634_v42, %s4241_s24  ;;  %v462_v12 = vld [vmem:[#allocation2 + $0x100] sm:$0x3] }
  0x96   : > { %407 = vst.msk [vmem:[#allocation2 + $0x81] sm:$0xff] %vm277_vm0, %v3905_v5  ;;  %v649_v37 = vrot.slane %v4712_v29, 1  ;;  %v6462_v18 = vrot.slane %v4712_v29, 2  ;;  %v957_v19 = vrot.slane %v462_v12, 2  ;;  %v926_v40 = vsel %vm903_vm1, %v924_v4, %v925_v62 }
  0x97   : > { %1391 = vst.msk [vmem:[#allocation3 + $0x58] sm:$0xf] %vm516_vm4, %v4685_v14  ;;  %v4724_v38 = vld [vmem:[#allocation2 + $0x168] sm:$0xff]  ;;  %v4810_v58 = vpack.c.bf16 %v926_v40, %v926_v40 }
  0x98   : > { %6529 = vst [vmem:[#allocation20_spill] sm:$0xff] %v4706_v25  ;;  %v650_v43 = vsel %vm597_vm2, %v648_v31, %v649_v37  ;;  %v979_v48 = vrot.slane %v4724_v38, 2  ;;  %v958_v23 = vsel %vm903_vm1, %v6462_v18, %v957_v19 }
  0x99   : > { %1390 = vst.msk [vmem:[#allocation3 + $0x4c] sm:$0xf] %vm516_vm4, %v4698_v21  ;;  %v476_v44 = vld [vmem:[#allocation2 + $0x170] sm:$0xff]  ;;  %v477_v46 = vld [vmem:[#allocation2 + $0x178] sm:$0x3]  ;;  %v4739_v49 = vpack.c.bf16 %v650_v43, %v650_v43  ;;  %788 = vrot.lane.b32.xlu1 %v4595_v24, %s4242_s29  ;;  %786 = vrot.lane.b32.xlu0 %v4598_v27, %s4242_s29  ;;  %v4793_v31 = vpack.c.bf16 %v958_v23, %v958_v23 }
  0x9a   : > { %1845 = vst.msk [vmem:[#allocation3 + $0x44] sm:$0xf] %vm516_vm4, %v4706_v25  ;;  %v980_v51 = vrot.slane %v476_v44, 2  ;;  %v982_v54 = vrot.slane %v477_v46, 2  ;;  %v3949_v44 = vunpack.c.h.bf16 %v3964_v61  ;;  %v651_v61 = vrot.slane %v462_v12, 1 }
  0x9b   : > { %1842 = vst.msk [vmem:[#allocation3 + $0x20] sm:$0xf] %vm516_vm4, %v4715_v33  ;;  %v4741_v50 = vld [vmem:[#allocation2 + $0x78] sm:$0xff]  ;;  %v3641_v23 = vld [vmem:[#allocation7 + $0x70] sm:$0xf] }
  0x9c   : > { %1864 = vst.msk [vmem:[#allocation3 + $0x128] sm:$0xf] %vm516_vm4, %v4717_v35  ;;  %v4747_v57 = vpack.c.bf16 %v4741_v50, %v4741_v50  ;;  %v981_v1 = vsel %vm903_vm1, %v979_v48, %v980_v51  ;;  %v983_v3 = vsel %vm903_vm1, %v980_v51, %v982_v54  ;;  %v623_v46 = vrot.slane %v4741_v50, 1 }
  0x9d   : > { %1865 = vst.msk [vmem:[#allocation3 + $0x134] sm:$0xf] %vm516_vm4, %v4719_v36  ;;  %v4743_v55 = vld [vmem:[#allocation2 + $0x80] sm:$0xff]  ;;  %v4772_v5 = vpack.c.bf16 %v981_v1, %v981_v1  ;;  %v4774_v8 = vpack.c.bf16 %v983_v3, %v983_v3  ;;  %1253 = vrot.lane.b32.xlu2 %v4643_v47, %s4243_s9  ;;  %v447_v62 = vld [vmem:[#allocation2 + $0x88] sm:$0x3]  ;;  %v652_v4 = vsel %vm597_vm2, %v649_v37, %v651_v61 }
  0x9e   : > { %6530 = vst [vmem:[#allocation21_spill] sm:$0xff] %v4739_v49  ;;  %v4758_v60 = vpack.c.bf16 %v4743_v55, %v4743_v55  ;;  %v626_v48 = vrot.slane %v447_v62, 1  ;;  %v3864_v37 = vld [vmem:[#allocation7 + $0x74] sm:$0xf0] }
  0x9f   : > { %6531 = vst [vmem:[#allocation22_spill] sm:$0xff] %v4747_v57  ;;  %v3642_v40 = vor.u32 %v3864_v37, %v3641_v23  ;;  %v954_v23 = vrot.slane %v4704_v0, 2  ;;  %v3908_v37 = vunpack.c.l.bf16 %v3954_v52 }
  0xa0   : > { %418 = vst.msk [vmem:[#allocation2 + $0x109] sm:$0xff] %vm277_vm0, %v3928_v41  ;;  %v624_v41 = vrot.slane %v4743_v55, 1 }
  0xa1   : > { %1402 = vst.msk [vmem:[#allocation3 + $0xdc] sm:$0xf] %vm516_vm4, %v4739_v49  ;;  %1255 = vrot.lane.b32.xlu1 %v4661_v56, %s4243_s9  ;;  %1094 = vrot.lane.b32.xlu0 %v4628_v39, %s4241_s24 }
  0xa2   : > { %6532 = vst [vmem:[#allocation23_spill] sm:$0xff] %v4758_v60  ;;  %v627_v51 = vsel %vm597_vm2, %v624_v41, %v626_v48  ;;  %v625_v1 = vsel %vm597_vm2, %v623_v46, %v624_v41  ;;  %v3863_v41 = vld [vmem:[#allocation7 + $0x74] sm:$0xf]  ;;  %2446 = vmatpush.bf16.msra.mxu0 %v3642_v40  ;;  %3965 = vmatpush.bf16.msra.mxu1 %v3642_v40  ;;  %v3909_v46 = vunpack.c.h.bf16 %v3954_v52  ;;  %v6543_v52 = vrot.slane %v4712_v29, 2 }
  0xa3   : > { %527 = vst.msk [vmem:[#allocation3 + $0x78] sm:$0xf] %vm516_vm4, %v4747_v57  ;;  %v3545_v53 = vld [vmem:[#allocation3 + $0x128] sm:$0xf]  ;;  %v4823_v54 = vpack.c.bf16 %v627_v51, %v627_v51  ;;  %v4828_v3 = vpack.c.bf16 %v625_v1, %v625_v1 }
  0xa4   : > { %528 = vst.msk [vmem:[#allocation3 + $0x84] sm:$0xf] %vm516_vm4, %v4758_v60  ;;  %v3839_v22 = vld [vmem:[#allocation3 + $0x130] sm:$0xf0] }
  0xa5   : > { %6533 = vst [vmem:[#allocation24_spill] sm:$0xff] %v4774_v8  ;;  %v4788_v26 = vor.u32 %v3839_v22, %v3545_v53  ;;  %1092 = vrot.lane.b32.xlu2 %v4715_v33, %s4241_s24 }
  0xa6   : > { %526 = vst.msk [vmem:[#allocation3 + $0x6c] sm:$0xf] %vm516_vm4, %v4765_v59 }
  0xa7   : > { %1866 = vst.msk [vmem:[#allocation3 + $0x140] sm:$0xf] %vm516_vm4, %v4772_v5  ;;  %v4790_v28 = vld [vmem:[#allocation2 + $0x108] sm:$0xff]  ;;  %3739 = vmatmul.msk.bf16.gmra.mxu3 %vm277_vm0, %v4788_v26 }
  0xa8   : > { %1867 = vst.msk [vmem:[#allocation3 + $0x14c] sm:$0xf] %vm516_vm4, %v4774_v8  ;;  %v4801_v43 = vpack.c.bf16 %v4790_v28, %v4790_v28  ;;  %v653_v19 = vrot.slane %v4790_v28, 1 }
  0xa9   : > { %6534 = vst [vmem:[#allocation25_spill] sm:$0xff] %v4788_v26  ;;  %792 = vrot.lane.b32.xlu1 %v4685_v14, %s4242_s29  ;;  %790 = vrot.lane.b32.xlu0 %v4698_v21, %s4242_s29  ;;  %v932_v26 = vrot.slane %v447_v62, 2  ;;  %v3855_v21 = vld [vmem:[#allocation7 + $0x34] sm:$0xf] }
  0xaa   : > { %419 = vst.msk [vmem:[#allocation2 + $0x111] sm:$0xff] %vm277_vm0, %v3929_v9 }
  0xab   : > { %6535 = vst [vmem:[#allocation26_spill] sm:$0xff] %v4793_v31 }
  0xac   : > { %6536 = vst [vmem:[#allocation27_spill] sm:$0xff] %v4801_v43 }
  0xad   : > { %428 = vst.msk [vmem:[#allocation2 + $0x181] sm:$0xff] %vm277_vm0, %v3948_v20  ;;  %v4834_v20 = vpack.c.bf16 %v652_v4, %v652_v4  ;;  %1257 = vrot.lane.b32.xlu2 %v4765_v59, %s4243_s9 }
  0xae   : > { %1857 = vst.msk [vmem:[#allocation3 + $0xd4] sm:$0xf] %vm516_vm4, %v4793_v31  ;;  %v3557_v12 = vld [vmem:[#allocation3 + $0x140] sm:$0xf] }
  0xaf   : > { %6537 = vst [vmem:[#allocation28_spill] sm:$0xff] %v4810_v58  ;;  %v3842_v22 = vld [vmem:[#allocation3 + $0x148] sm:$0xf0] }
  0xb0   : > { %539 = vst.msk [vmem:[#allocation3 + $0x108] sm:$0xf] %vm516_vm4, %v4801_v43  ;;  %v4852_v14 = vor.u32 %v3842_v22, %v3557_v12  ;;  %v481_v12 = vld [vmem:[#allocation2 + $0x198] sm:$0xff]  ;;  %v482_v22 = vld [vmem:[#allocation2 + $0x1a0] sm:$0xff] }
  0xb1   : > { %1844 = vst.msk [vmem:[#allocation3 + $0x38] sm:$0xf] %vm516_vm4, %v4810_v58  ;;  %v4845_v1 = vld [vmem:[#allocation2 + $0x110] sm:$0xff]  ;;  %814 = vrot.lane.b32.xlu1 %v4739_v49, %s4242_s29  ;;  %1098 = vrot.lane.b32.xlu0 %v4706_v25, %s4241_s24 }
  0xb2   : > { %429 = vst.msk [vmem:[#allocation2 + $0x189] sm:$0xff] %vm277_vm0, %v3949_v44  ;;  %v3643_v44 = vld [vmem:[#allocation7 + $0x78] sm:$0xf0]  ;;  %v6466_v18 = vrot.slane %v4845_v1, 1 }
  0xb3   : > { %1393 = vst.msk [vmem:[#allocation3 + $0x70] sm:$0xf] %vm516_vm4, %v4823_v54  ;;  %v3646_v61 = vor.u32 %v3863_v41, %v3643_v44 }
  0xb4   : > { %v478_v9 = vld [vmem:[#allocation2 + $0x180] sm:$0xff]  ;;  %6538 = vst [vmem:[#allocation29_spill] sm:$0xff] %v4834_v20  ;;  %v655_v62 = vsel %vm597_vm2, %v653_v19, %v6466_v18  ;;  %v3633_v19 = vld [vmem:[#allocation7 + $0x60] sm:$0xf] }
  0xb5   : > { %v1416_v53 = vrot.slane %v478_v9, 2  ;;  %1392 = vst.msk [vmem:[#allocation3 + $0x64] sm:$0xf] %vm516_vm4, %v4828_v3  ;;  %2713 = vmatpush.bf16.msrb.mxu3 %v3646_v61  ;;  %1096 = vrot.lane.b32.xlu2 %v4810_v58, %s4241_s24  ;;  %v3609_v58 = vld [vmem:[#allocation7 + $0x30] sm:$0xf] }
  0xb6   : > { %1403 = vst.msk [vmem:[#allocation3 + $0xe8] sm:$0xf] %vm516_vm4, %v4834_v20 }
  0xb7   : > { %6539 = vst [vmem:[#allocation30_spill] sm:$0xff] %v4852_v14  ;;  %3740 = vmatmul.msk.bf16.gmra.mxu3 %vm277_vm0, %v4852_v14  ;;  %v3859_v14 = vld [vmem:[#allocation7 + $0x54] sm:$0xf] }
  0xb8   : > { %408 = vst.msk [vmem:[#allocation2 + $0x91] sm:$0xff] %vm277_vm0, %v3908_v37  ;;  %v3861_v37 = vld [vmem:[#allocation7 + $0x64] sm:$0xf] }
  0xb9   : > { %v479_v48 = vld [vmem:[#allocation2 + $0x188] sm:$0xff]  ;;  %v480_v51 = vld [vmem:[#allocation2 + $0x190] sm:$0x3]  ;;  %409 = vst.msk [vmem:[#allocation2 + $0x99] sm:$0xff] %vm277_vm0, %v3909_v46  ;;  %1261 = vrot.lane.b32.xlu1 %v4758_v60, %s4243_s9  ;;  %1259 = vrot.lane.b32.xlu0 %v4747_v57, %s4243_s9  ;;  %v3857_v57 = vld [vmem:[#allocation7 + $0x44] sm:$0xf] }
  0xba   : > { %v1417_v4 = vrot.slane %v479_v48, 2  ;;  %v1419_v9 = vrot.slane %v480_v51, 2  ;;  %v6542_v51 = vrot.slane %v4743_v55, 2  ;;  %v3619_v60 = vld [vmem:[#allocation7 + $0x48] sm:$0xf0] }
  0xbc   : > { %v1418_v41 = vsel %vm903_vm1, %v1416_v53, %v1417_v4  ;;  %v1420_v44 = vsel %vm903_vm1, %v1417_v4, %v1419_v9  ;;  %v933_v61 = vsel %vm903_vm1, %v6542_v51, %v932_v26  ;;  %v956_v53 = vsel %vm903_vm1, %v954_v23, %v6543_v52  ;;  %v483_v4 = vld [vmem:[#allocation2 + $0x1a8] sm:$0x3]  ;;  %v3862_v9 = vld [vmem:[#allocation7 + $0x64] sm:$0xf0]  ;;  %v3625_v51 = vld [vmem:[#allocation7 + $0x50] sm:$0xf] }
  0xbd   : > { %v4859_v48 = vpack.c.bf16 %v1418_v41, %v1418_v41  ;;  %v4861_v40 = vpack.c.bf16 %v1420_v44, %v1420_v44  ;;  %v4877_v26 = vpack.c.bf16 %v655_v62, %v655_v62  ;;  %v4883_v46 = vpack.c.bf16 %v933_v61, %v933_v61  ;;  %v3635_v41 = vld [vmem:[#allocation7 + $0x68] sm:$0xf0]  ;;  %v3860_v52 = vld [vmem:[#allocation7 + $0x54] sm:$0xf0]  ;;  %v3627_v61 = vld [vmem:[#allocation7 + $0x58] sm:$0xf0]  ;;  %816 = vrot.lane.b32.xlu2 %v4834_v20, %s4242_s29 }
  0xbe   : > { %v3634_v23 = vor.u32 %v3862_v9, %v3633_v19  ;;  %v4887_v44 = vpack.c.bf16 %v956_v53, %v956_v53  ;;  %v3638_v62 = vor.u32 %v3861_v37, %v3635_v41  ;;  %v3626_v18 = vor.u32 %v3860_v52, %v3625_v51  ;;  %v3960_v37 = vld [vmem:[%s4375_s15 + $0x58] sm:$0xff]   ;;  %v775_v52 = vpop.permute.xlu0 %774 }
  0xbf   : > { %6540 = vst [vmem:[#allocation31_spill] sm:$0xff] %v4859_v48  ;;  %v1831_v53 = vrot.slane %v481_v12, 2  ;;  %v1832_v19 = vrot.slane %v482_v22, 2  ;;  %v1834_v9 = vrot.slane %v483_v4, 2  ;;  %v3630_v41 = vor.u32 %v3859_v14, %v3627_v61 }
  0xc0   : > { %6541 = vst [vmem:[#allocation32_spill] sm:$0xff] %v4861_v40  ;;  %2447 = vmatpush.bf16.msra.mxu0 %v3634_v23  ;;  %3966 = vmatpush.bf16.msra.mxu1 %v3634_v23  ;;  %v4898_v49 = vld [vmem:[#allocation2 + $0x98] sm:$0xff]  ;;  %v929_v14 = vrot.slane %v4741_v50, 2  ;;  %v4920_v4 = vpack.c.bf16 %v4845_v1, %v4845_v1  ;;  %v3933_v25 = vunpack.c.h.bf16 %v3960_v37  ;;  %v450_v20 = vld [vmem:[#allocation2 + $0xa0] sm:$0x3] }
  0xc1   : > { %1868 = vst.msk [vmem:[#allocation3 + $0x158] sm:$0xf] %vm516_vm4, %v4859_v48  ;;  %2714 = vmatpush.bf16.msrb.mxu3 %v3638_v62  ;;  %v3932_v48 = vunpack.c.l.bf16 %v3960_v37  ;;  %v1833_v51 = vsel %vm903_vm1, %v1831_v53, %v1832_v19  ;;  %v4907_v62 = vpack.c.bf16 %v4898_v49, %v4898_v49  ;;  %v1835_v12 = vsel %vm903_vm1, %v1832_v19, %v1834_v9  ;;  %v3858_v53 = vld [vmem:[#allocation7 + $0x44] sm:$0xf0] }
  0xc2   : > { %6544 = vst [vmem:[#allocation33_spill] sm:$0xff] %v4877_v26  ;;  %v1838_v50 = vpack.c.bf16 %v1833_v51, %v1833_v51  ;;  %v1839_v19 = vpack.c.bf16 %v1835_v12, %v1835_v12  ;;  %v3856_v51 = vld [vmem:[#allocation7 + $0x34] sm:$0xf0]  ;;  %1283 = vrot.lane.b32.xlu1 %v4801_v43, %s4243_s9  ;;  %1122 = vrot.lane.b32.xlu0 %v4793_v31, %s4241_s24  ;;  %v3595_v43 = vld [vmem:[#allocation7 + $0x18] sm:$0xf0] }
  0xc3   : > { %1869 = vst.msk [vmem:[#allocation3 + $0x164] sm:$0xf] %vm516_vm4, %v4861_v40  ;;  %v4896_v40 = vld [vmem:[#allocation2 + $0x90] sm:$0xff]  ;;  %v3610_v12 = vor.u32 %v3856_v51, %v3609_v58 }
  0xc4   : > { %1404 = vst.msk [vmem:[#allocation3 + $0xf4] sm:$0xf] %vm516_vm4, %v4877_v26  ;;  %v4902_v23 = vpack.c.bf16 %v4896_v40, %v4896_v40  ;;  %2448 = vmatpush.bf16.msra.mxu0 %v3626_v18  ;;  %3967 = vmatpush.bf16.msra.mxu1 %v3626_v18  ;;  %v1081_v18 = vpop.permute.xlu1 %1080 }
  0xc5   : > { %6545 = vst [vmem:[#allocation34_spill] sm:$0xff] %v4887_v44  ;;  %2715 = vmatpush.bf16.msrb.mxu3 %v3630_v41  ;;  %v3622_v41 = vor.u32 %v3857_v57, %v3619_v60  ;;  %v6480_v57 = vrot.slane %v4845_v1, 2  ;;  %v6548_v60 = vrot.slane %v4743_v55, 2  ;;  %v3853_v55 = vld [vmem:[#allocation7 + $0x24] sm:$0xf]  ;;  %1120 = vrot.lane.b32.xlu2 %v4887_v44, %s4241_s24 }
  0xc6   : > { %1847 = vst.msk [vmem:[#allocation3 + $0x5c] sm:$0xf] %vm516_vm4, %v4883_v46 }
  0xc7   : > { %1856 = vst.msk [vmem:[#allocation3 + $0xc8] sm:$0xf] %vm516_vm4, %v4887_v44 }
  0xc8   : > { %420 = vst.msk [vmem:[#allocation2 + $0x121] sm:$0xff] %vm277_vm0, %v3932_v48  ;;  %v3569_v22 = vld [vmem:[#allocation3 + $0x158] sm:$0xf]  ;;  %v3617_v48 = vld [vmem:[#allocation7 + $0x40] sm:$0xf] }
  0xc9   : > { %529 = vst.msk [vmem:[#allocation3 + $0x90] sm:$0xf] %vm516_vm4, %v4902_v23  ;;  %v3618_v9 = vor.u32 %v3858_v53, %v3617_v48  ;;  %2716 = vmatpush.bf16.msrb.mxu3 %v3622_v41  ;;  %v465_v53 = vld [vmem:[#allocation2 + $0x118] sm:$0x3]  ;;  %v3603_v41 = vld [vmem:[#allocation7 + $0x28] sm:$0xf0] }
  0xca   : > { %6546 = vst [vmem:[#allocation35_spill] sm:$0xff] %v4920_v4  ;;  %v3845_v61 = vld [vmem:[#allocation3 + $0x160] sm:$0xf0]  ;;  %v962_v58 = vrot.slane %v465_v53, 2  ;;  %796 = vrot.lane.b32.xlu1 %v4823_v54, %s4242_s29  ;;  %794 = vrot.lane.b32.xlu0 %v4828_v3, %s4242_s29 }
  0xcb   : > { %530 = vst.msk [vmem:[#allocation3 + $0x9c] sm:$0xf] %vm516_vm4, %v4907_v62  ;;  %v4930_v56 = vor.u32 %v3845_v61, %v3569_v22  ;;  %2449 = vmatpush.bf16.msra.mxu0 %v3618_v9  ;;  %3968 = vmatpush.bf16.msra.mxu1 %v3618_v9  ;;  %v931_v22 = vsel %vm903_vm1, %v929_v14, %v6548_v60  ;;  %v629_v14 = vrot.slane %v4898_v49, 1  ;;  %v3593_v60 = vld [vmem:[#allocation7 + $0x10] sm:$0xf] }
  0xcc   : > { %540 = vst.msk [vmem:[#allocation3 + $0x114] sm:$0xf] %vm516_vm4, %v4920_v4 }
  0xcd   : > { %871 = vst.msk [vmem:[#allocation3] sm:$0xf] %vm870_vm5, %v775_v52  ;;  %v3611_v52 = vld [vmem:[#allocation7 + $0x38] sm:$0xf0]  ;;  %3741 = vmatmul.msk.bf16.gmra.mxu3 %vm277_vm0, %v4930_v56  ;;  %1285 = vrot.lane.b32.xlu2 %v4920_v4, %s4243_s9 }
  0xce   : > { %1177 = vst.msk [vmem:[#allocation3] sm:$0xf] %vm1176_vm6, %v1081_v18  ;;  %v3614_v37 = vor.u32 %v3855_v21, %v3611_v52  ;;  %v4949_v21 = vpack.c.bf16 %v931_v22, %v931_v22  ;;  %v3601_v18 = vld [vmem:[#allocation7 + $0x20] sm:$0xf]  ;;  %v3606_v52 = vor.u32 %v3853_v55, %v3603_v41  ;;  %v3852_v22 = vld [vmem:[#allocation7 + $0x14] sm:$0xf0] }
  0xcf   : > { %6547 = vst [vmem:[#allocation36_spill] sm:$0xff] %v4930_v56  ;;  %v4934_v48 = vld [vmem:[#allocation2 + $0x120] sm:$0xff]  ;;  %2450 = vmatpush.bf16.msra.mxu0 %v3610_v12  ;;  %3969 = vmatpush.bf16.msra.mxu1 %v3610_v12  ;;  %v6551_v41 = vrot.slane %v4845_v1, 1  ;;  %v3956_v4 = vld [vmem:[%s4375_s15 + $0x38] sm:$0xff]  }
  0xd0   : > { %1870 = vst.msk [vmem:[#allocation3 + $0x170] sm:$0xf] %vm516_vm4, %v1838_v50  ;;  %v4942_v61 = vpack.c.bf16 %v4934_v48, %v4934_v48  ;;  %v3854_v50 = vld [vmem:[#allocation7 + $0x24] sm:$0xf0]  ;;  %2717 = vmatpush.bf16.msrb.mxu3 %v3614_v37  ;;  %v3851_v56 = vld [vmem:[#allocation7 + $0x14] sm:$0xf] }
  0xd1   : > { %1871 = vst.msk [vmem:[#allocation3 + $0x17c] sm:$0xf] %vm516_vm4, %v1839_v19  ;;  %v628_v19 = vrot.slane %v4896_v40, 1  ;;  %v3602_v9 = vor.u32 %v3854_v50, %v3601_v18  ;;  %v656_v37 = vrot.slane %v465_v53, 1  ;;  %v3594_v18 = vor.u32 %v3852_v22, %v3593_v60 }
  0xd2   : > { %6549 = vst [vmem:[#allocation37_spill] sm:$0xff] %v4942_v61  ;;  %v3598_v55 = vor.u32 %v3851_v56, %v3595_v43  ;;  %v658_v56 = vrot.slane %v4934_v48, 1  ;;  %v959_v60 = vrot.slane %v4790_v28, 2  ;;  %v1244_v28 = vpop.permute.xlu2 %1243  ;;  %818 = vrot.lane.b32.xlu1 %v4877_v26, %s4242_s29  ;;  %1102 = vrot.lane.b32.xlu0 %v4883_v46, %s4241_s24  ;;  %v6491_v26 = vrot.slane %v4582_v16, 1 }
  0xd3   : > { %421 = vst.msk [vmem:[#allocation2 + $0x129] sm:$0xff] %vm277_vm0, %v3933_v25  ;;  %v963_v25 = vsel %vm903_vm1, %v6480_v57, %v962_v58  ;;  %v631_v58 = vrot.slane %v450_v20, 1  ;;  %2451 = vmatpush.bf16.msra.mxu0 %v3602_v9  ;;  %v630_v50 = vsel %vm597_vm2, %v628_v19, %v629_v14  ;;  %v657_v57 = vsel %vm597_vm2, %v6551_v41, %v656_v37  ;;  %v3587_v37 = vld [vmem:[#allocation7 + $0x8] sm:$0xf0]  ;;  %v3955_v41 = vld [vmem:[%s4375_s15 + $0x30] sm:$0xff]  }
  0xd4   : > { %541 = vst.msk [vmem:[#allocation3 + $0x120] sm:$0xf] %vm516_vm4, %v4942_v61  ;;  %v4960_v51 = vpack.c.bf16 %v963_v25, %v963_v25  ;;  %2718 = vmatpush.bf16.msrb.mxu3 %v3606_v52  ;;  %v4970_v12 = vpack.c.bf16 %v630_v50, %v630_v50  ;;  %3970 = vmatpush.bf16.msra.mxu1 %v3602_v9  ;;  %v3585_v9 = vld [vmem:[#allocation7] sm:$0xf]  ;;  %v3850_v52 = vld [vmem:[#allocation7 + $0x4] sm:$0xf0]  ;;  %v3912_v44 = vunpack.c.l.bf16 %v3955_v41 }
  0xd5   : > { %1846 = vst.msk [vmem:[#allocation3 + $0x50] sm:$0xf] %vm516_vm4, %v4949_v21  ;;  %v632_v25 = vsel %vm597_vm2, %v629_v14, %v631_v58  ;;  %v4985_v43 = vpack.c.bf16 %v657_v57, %v657_v57  ;;  %v3586_v22 = vor.u32 %v3850_v52, %v3585_v9  ;;  %v3849_v58 = vld [vmem:[#allocation7 + $0x4] sm:$0xf]  ;;  %1100 = vrot.lane.b32.xlu2 %v4949_v21, %s4241_s24 }
  0xd6   : > { %6550 = vst [vmem:[#allocation38_spill] sm:$0xff] %v4960_v51  ;;  %v4975_v31 = vpack.c.bf16 %v632_v25, %v632_v25  ;;  %v3590_v50 = vor.u32 %v3849_v58, %v3587_v37  ;;  %v937_v25 = vrot.slane %v450_v20, 2  ;;  %v6556_v20 = vrot.slane %v4845_v1, 2 }
  0xd7   : > { %1859 = vst.msk [vmem:[#allocation3 + $0xec] sm:$0xf] %vm516_vm4, %v4960_v51  ;;  %v3581_v14 = vld [vmem:[#allocation3 + $0x170] sm:$0xf]  ;;  %2452 = vmatpush.bf16.msra.mxu0 %v3594_v18 }
  0xd8   : > { %1394 = vst.msk [vmem:[#allocation3 + $0x7c] sm:$0xf] %vm516_vm4, %v4970_v12  ;;  %v3848_v19 = vld [vmem:[#allocation3 + $0x178] sm:$0xf0]  ;;  %2719 = vmatpush.bf16.msrb.mxu3 %v3598_v55  ;;  %3971 = vmatpush.bf16.msra.mxu1 %v3594_v18  ;;  %v6554_v18 = vrot.slane %v4898_v49, 2 }
  0xd9   : > { %6552 = vst [vmem:[#allocation39_spill] sm:$0xff] %v4985_v43  ;;  %v4998_v53 = vor.u32 %v3848_v19, %v3581_v14  ;;  %v961_v14 = vsel %vm903_vm1, %v959_v60, %v6556_v20  ;;  %v3913_v19 = vunpack.c.h.bf16 %v3955_v41  ;;  %v1083_v60 = vpop.permute.xlu1 %1082  ;;  %v934_v41 = vrot.slane %v4896_v40, 2 }
  0xda   : > { %1395 = vst.msk [vmem:[#allocation3 + $0x88] sm:$0xf] %vm516_vm4, %v4975_v31  ;;  %v4992_v57 = vld [vmem:[#allocation2 + $0x128] sm:$0xff]  ;;  %v938_v52 = vsel %vm903_vm1, %v6554_v18, %v937_v25  ;;  %v5023_v1 = vpack.c.bf16 %v961_v14, %v961_v14  ;;  %1265 = vrot.lane.b32.xlu1 %v4907_v62, %s4243_s9  ;;  %1263 = vrot.lane.b32.xlu0 %v4902_v23, %s4243_s9 }
  0xdb   : > { %1405 = vst.msk [vmem:[#allocation3 + $0x100] sm:$0xf] %vm516_vm4, %v4985_v43  ;;  %v6483_v55 = vrot.slane %v4992_v57, 1  ;;  %2453 = vmatpush.bf16.msra.mxu0 %v3586_v22  ;;  %v5047_v25 = vpack.c.bf16 %v4992_v57, %v4992_v57  ;;  %v5067_v14 = vpack.c.bf16 %v4580_v15, %v4580_v15 }
  0xdc   : > { %6553 = vst [vmem:[#allocation40_spill] sm:$0xff] %v4998_v53  ;;  %2720 = vmatpush.bf16.msrb.mxu3 %v3590_v50  ;;  %3972 = vmatpush.bf16.msra.mxu1 %v3586_v22  ;;  %v777_v22 = vpop.permute.xlu0 %776 }
  0xdd   : > { %v660_v9 = vsel %vm597_vm2, %v658_v56, %v6483_v55  ;;  %1340 = vst.msk [vmem:[#allocation3] sm:$0xf] %vm1339_vm7, %v1244_v28  ;;  %v5016_v56 = vpack.c.bf16 %v938_v52, %v938_v52  ;;  %3742 = vmatmul.msk.bf16.gmra.mxu3 %vm277_vm0, %v4998_v53  ;;  %820 = vrot.lane.b32.xlu2 %v4985_v43, %s4242_s29  ;;  %v965_v52 = vrot.slane %v4992_v57, 2 }
  0xde   : > { %v5007_v58 = vpack.c.bf16 %v660_v9, %v660_v9  ;;  %410 = vst.msk [vmem:[#allocation2 + $0xa9] sm:$0xff] %vm277_vm0, %v3912_v44  ;;  %v1246_v44 = vpop.permute.xlu2 %1245  ;;  %v468_v9 = vld [vmem:[#allocation2 + $0x130] sm:$0x3] }
  0xdf   : > { %6557 = vst [vmem:[#allocation42_spill] sm:$0xff] %v5023_v1  ;;  %v967_v20 = vrot.slane %v468_v9, 2 }
  0xe0   : > { %6555 = vst [vmem:[#allocation41_spill] sm:$0xff] %v5007_v58 }
  0xe1   : > { %1406 = vst.msk [vmem:[#allocation3 + $0x10c] sm:$0xf] %vm516_vm4, %v5007_v58 }
  0xe2   : > { %1849 = vst.msk [vmem:[#allocation3 + $0x74] sm:$0xf] %vm516_vm4, %v5016_v56  ;;  %1287 = vrot.lane.b32.xlu1 %v4942_v61, %s4243_s9  ;;  %1126 = vrot.lane.b32.xlu0 %v4960_v51, %s4241_s24 }
  0xe3   : > { %1858 = vst.msk [vmem:[#allocation3 + $0xe0] sm:$0xf] %vm516_vm4, %v5023_v1 }
  0xe4   : > { %411 = vst.msk [vmem:[#allocation2 + $0xb1] sm:$0xff] %vm277_vm0, %v3913_v19  ;;  %v968_v19 = vsel %vm903_vm1, %v965_v52, %v967_v20  ;;  %v3393_v55 = vld [vmem:[#allocation3] sm:$0xf] }
  0xe5   : > { %v5032_v37 = vld [vmem:[#allocation2 + $0xa8] sm:$0xff]  ;;  %872 = vst.msk [vmem:[#allocation3 + $0xc] sm:$0xf] %vm870_vm5, %v777_v22  ;;  %v5077_v22 = vpack.c.bf16 %v968_v19, %v968_v19  ;;  %1124 = vrot.lane.b32.xlu2 %v5023_v1, %s4241_s24 }
  0xe6   : > { %1178 = vst.msk [vmem:[#allocation3 + $0xc] sm:$0xf] %vm1176_vm6, %v1083_v60  ;;  %v5042_v50 = vpack.c.bf16 %v5032_v37, %v5032_v37  ;;  %v1085_v40 = vpop.permute.xlu2 %1084 }
  0xe7   : > { %1341 = vst.msk [vmem:[#allocation3 + $0xc] sm:$0xf] %vm1339_vm7, %v1246_v44  ;;  %v6561_v44 = vrot.slane %v4898_v49, 2 }
  0xe8   : > { %6558 = vst [vmem:[#allocation43_spill] sm:$0xff] %v5042_v50 }
  0xe9   : > { %6559 = vst [vmem:[#allocation44_spill] sm:$0xff] %v5047_v25  ;;  %v936_v60 = vsel %vm903_vm1, %v934_v41, %v6561_v44  ;;  %v633_v41 = vrot.slane %v5032_v37, 1 }
  0xea   : > { %531 = vst.msk [vmem:[#allocation3 + $0xa8] sm:$0xf] %vm516_vm4, %v5042_v50  ;;  %v5081_v43 = vpack.c.bf16 %v936_v60, %v936_v60  ;;  %v661_v60 = vrot.slane %v468_v9, 1  ;;  %800 = vrot.lane.b32.xlu1 %v4975_v31, %s4242_s29  ;;  %798 = vrot.lane.b32.xlu0 %v4970_v12, %s4242_s29  ;;  %v6564_v9 = vrot.slane %v4992_v57, 1 }
  0xeb   : > { %v5050_v28 = vld [vmem:[#allocation2 + $0xb0] sm:$0xff]  ;;  %542 = vst.msk [vmem:[#allocation3 + $0x12c] sm:$0xf] %vm516_vm4, %v5047_v25  ;;  %v453_v19 = vld [vmem:[#allocation2 + $0xb8] sm:$0x3]  ;;  %v781_v1 = vpop.permute.xlu1 %780 }
  0xec   : > { %v5058_v18 = vpack.c.bf16 %v5050_v28, %v5050_v28  ;;  %6560 = vst [vmem:[#allocation45_spill] sm:$0xff] %v5067_v14  ;;  %v634_v49 = vrot.slane %v5050_v28, 1  ;;  %v636_v44 = vrot.slane %v453_v19, 1  ;;  %v942_v57 = vrot.slane %v453_v19, 2 }
  0xed   : > { %6562 = vst [vmem:[#allocation46_spill] sm:$0xff] %v5077_v22  ;;  %1289 = vrot.lane.b32.xlu2 %v5047_v25, %s4243_s9 }
  0xee   : > { %532 = vst.msk [vmem:[#allocation3 + $0xb4] sm:$0xf] %vm516_vm4, %v5058_v18  ;;  %v3802_v53 = vld [vmem:[#allocation3 + $0x8] sm:$0xf0]  ;;  %v1250_v61 = vpop.permute.xlu2 %1249 }
  0xef   : > { %543 = vst.msk [vmem:[#allocation3 + $0x138] sm:$0xf] %vm516_vm4, %v5067_v14  ;;  %v3394_v20 = vor.u32 %v3802_v53, %v3393_v55  ;;  %v637_v53 = vsel %vm597_vm2, %v634_v49, %v636_v44  ;;  %v635_v55 = vsel %vm597_vm2, %v633_v41, %v634_v49  ;;  %v662_v44 = vsel %vm597_vm2, %v6564_v9, %v661_v60  ;;  %v779_v49 = vpop.permute.xlu0 %778 }
  0xf0   : > { %1861 = vst.msk [vmem:[#allocation3 + $0x104] sm:$0xf] %vm516_vm4, %v5077_v22  ;;  %v5093_v51 = vpack.c.bf16 %v637_v53, %v637_v53  ;;  %v940_v41 = vrot.slane %v5050_v28, 2  ;;  %v5111_v53 = vpack.c.bf16 %v662_v44, %v662_v44  ;;  %v964_v60 = vrot.slane %v4934_v48, 2 }
  0xf1   : > { %1848 = vst.msk [vmem:[#allocation3 + $0x68] sm:$0xf] %vm516_vm4, %v5081_v43  ;;  %2454 = vmatmul.bf16.vlgmr.msra.gmra.mxu0 %v3394_v20  ;;  %2721 = vmatmul.bf16.vlgmr.msrb.gmra.mxu3 %v3394_v20  ;;  %v5099_v20 = vpack.c.bf16 %v635_v55, %v635_v55  ;;  %v663_v55 = vrot.slane %v4580_v15, 1  ;;  %v3916_v28 = vunpack.c.l.bf16 %v3956_v4  ;;  %v3917_v9 = vunpack.c.h.bf16 %v3956_v4 }
  0xf2   : > { %6563 = vst [vmem:[#allocation47_spill] sm:$0xff] %v5093_v51  ;;  %v943_v19 = vsel %vm903_vm1, %v940_v41, %v942_v57  ;;  %822 = vrot.lane.b32.xlu1 %v5007_v58, %s4242_s29  ;;  %1106 = vrot.lane.b32.xlu0 %v5016_v56, %s4241_s24  ;;  %v966_v48 = vsel %vm903_vm1, %v964_v60, %v965_v52 }
  0xf3   : > { %1397 = vst.msk [vmem:[#allocation3 + $0xa0] sm:$0xf] %vm516_vm4, %v5093_v51  ;;  %v665_v15 = vsel %vm597_vm2, %v663_v55, %v6491_v26  ;;  %v5133_v4 = vpack.c.bf16 %v943_v19, %v943_v19  ;;  %v5143_v55 = vpack.c.bf16 %v966_v48, %v966_v48  ;;  %v939_v48 = vrot.slane %v5032_v37, 2 }
  0xf4   : > { %1396 = vst.msk [vmem:[#allocation3 + $0x94] sm:$0xf] %vm516_vm4, %v5099_v20  ;;  %v5126_v44 = vpack.c.bf16 %v665_v15, %v665_v15  ;;  %v5184_v37 = vpack.c.bf16 %v4679_v10, %v4679_v10 }
  0xf5   : > { %874 = vst.msk [vmem:[#allocation3 + $0x24] sm:$0xf] %vm870_vm5, %v781_v1  ;;  %1104 = vrot.lane.b32.xlu2 %v5081_v43, %s4241_s24 }
  0xf6   : > { %873 = vst.msk [vmem:[#allocation3 + $0x18] sm:$0xf] %vm870_vm5, %v779_v49  ;;  %v1089_v1 = vpop.permute.xlu2 %1088 }
  0xf7   : > { %6565 = vst [vmem:[#allocation48_spill] sm:$0xff] %v5111_v53  ;;  %v1087_v49 = vpop.permute.xlu0 %1086 }
  0xf8   : > { %1179 = vst.msk [vmem:[#allocation3 + $0x18] sm:$0xf] %vm1176_vm6, %v1085_v40  ;;  %v1248_v40 = vpop.permute.xlu1 %1247 }
  0xf9   : > { %1407 = vst.msk [vmem:[#allocation3 + $0x118] sm:$0xf] %vm516_vm4, %v5111_v53 }
  0xfa   : > { %6566 = vst [vmem:[#allocation49_spill] sm:$0xff] %v5126_v44  ;;  %1269 = vrot.lane.b32.xlu1 %v5058_v18, %s4243_s9  ;;  %1267 = vrot.lane.b32.xlu0 %v5042_v50, %s4243_s9  ;;  %v3957_v50 = vld [vmem:[%s4375_s15 + $0x40] sm:$0xff]   ;;  %s3288_s15 = sshll.u32 %s3284_s16, 4  ;;  %s3289_s15 = int_to_ptr.hbm [resolvable:$true] %s3288_s15 }
  0xfb   : > { %412 = vst.msk [vmem:[#allocation2 + $0xc1] sm:$0xff] %vm277_vm0, %v3916_v28 }
  0xfc   : > { %413 = vst.msk [vmem:[#allocation2 + $0xc9] sm:$0xff] %vm277_vm0, %v3917_v9 }
  0xfd   : > { %1408 = vst.msk [vmem:[#allocation3 + $0x124] sm:$0xf] %vm516_vm4, %v5126_v44  ;;  %824 = vrot.lane.b32.xlu2 %v5111_v53, %s4242_s29  ;;  %v4060_v53 = vld [vmem:[#allocation2 + $0x148] sm:$0x3] }
  0xfe   : > { %1851 = vst.msk [vmem:[#allocation3 + $0x8c] sm:$0xf] %vm516_vm4, %v5133_v4  ;;  %v1254_v57 = vpop.permute.xlu2 %1253 }
  0xff   : > { %1342 = vst.msk [vmem:[#allocation3 + $0x18] sm:$0xf] %vm1339_vm7, %v1248_v40  ;;  %v783_v15 = vpop.permute.xlu0 %782 }
 0x100   : > { %1180 = vst.msk [vmem:[#allocation3 + $0x24] sm:$0xf] %vm1176_vm6, %v1087_v49  ;;  %v785_v9 = vpop.permute.xlu1 %784  ;;  %v5175_v49 = vpack.c.bf16 %v4582_v16, %v4582_v16 }
 0x101   : > { %6567 = vst [vmem:[#allocation50_spill] sm:$0xff] %v5143_v55 }
 0x102   : > { %1343 = vst.msk [vmem:[#allocation3 + $0x24] sm:$0xf] %vm1339_vm7, %v1250_v61  ;;  %v5150_v52 = vld [vmem:[#allocation2 + $0xc0] sm:$0xff]  ;;  %1291 = vrot.lane.b32.xlu1 %v5067_v14, %s4243_s9  ;;  %1130 = vrot.lane.b32.xlu0 %v5077_v22, %s4241_s24  ;;  %v666_v22 = vrot.slane %v4060_v53, 1 }
 0x103   : > { %1860 = vst.msk [vmem:[#allocation3 + $0xf8] sm:$0xf] %vm516_vm4, %v5143_v55  ;;  %v5152_v60 = vld [vmem:[#allocation2 + $0xc8] sm:$0xff]  ;;  %v5156_v28 = vpack.c.bf16 %v5150_v52, %v5150_v52 }
 0x104   : > { %v5164_v61 = vpack.c.bf16 %v5152_v60, %v5152_v60  ;;  %876 = vst.msk [vmem:[#allocation3 + $0x3c] sm:$0xf] %vm870_vm5, %v785_v9  ;;  %v941_v9 = vsel %vm903_vm1, %v939_v48, %v940_v41  ;;  %v5201_v41 = vpack.c.bf16 %v4704_v0, %v4704_v0  ;;  %v5206_v48 = vpack.c.bf16 %v4712_v29, %v4712_v29 }
 0x105   : > { %533 = vst.msk [vmem:[#allocation3 + $0xc0] sm:$0xf] %vm516_vm4, %v5156_v28  ;;  %1128 = vrot.lane.b32.xlu2 %v5143_v55, %s4241_s24 }
 0x106   : > { %v3405_v19 = vld [vmem:[#allocation3 + $0x18] sm:$0xf]  ;;  %534 = vst.msk [vmem:[#allocation3 + $0xcc] sm:$0xf] %vm516_vm4, %v5164_v61  ;;  %v1093_v58 = vpop.permute.xlu2 %1092 }
 0x107   : > { %875 = vst.msk [vmem:[#allocation3 + $0x30] sm:$0xf] %vm870_vm5, %v783_v15 }
 0x108   : > { %6568 = vst [vmem:[#allocation51_spill] sm:$0xff] %v5175_v49  ;;  %v1252_v15 = vpop.permute.xlu1 %1251 }
 0x109   : > { %v3805_v40 = vld [vmem:[#allocation3 + $0x20] sm:$0xf0]  ;;  %1181 = vst.msk [vmem:[#allocation3 + $0x30] sm:$0xf] %vm1176_vm6, %v1089_v1  ;;  %v5191_v1 = vpack.c.bf16 %v941_v9, %v941_v9  ;;  %v456_v9 = vld [vmem:[#allocation2 + $0xd0] sm:$0x3] }
 0x10a   : > { %v3406_v26 = vor.u32 %v3805_v40, %v3405_v19  ;;  %544 = vst.msk [vmem:[#allocation3 + $0x144] sm:$0xf] %vm516_vm4, %v5175_v49  ;;  %v1091_v19 = vpop.permute.xlu0 %1090  ;;  %v638_v40 = vrot.slane %v5150_v52, 1  ;;  %v641_v14 = vrot.slane %v456_v9, 1  ;;  %804 = vrot.lane.b32.xlu1 %v5093_v51, %s4242_s29  ;;  %802 = vrot.lane.b32.xlu0 %v5099_v20, %s4242_s29  ;;  %v947_v51 = vrot.slane %v456_v9, 2 }
 0x10b   : > { %6569 = vst [vmem:[#allocation52_spill] sm:$0xff] %v5184_v37 }
 0x10c   : > { %2459 = vmatmul.bf16.gmra.mxu0 %v3406_v26  ;;  %2726 = vmatmul.bf16.gmra.mxu3 %v3406_v26  ;;  %545 = vst.msk [vmem:[#allocation3 + $0x150] sm:$0xf] %vm516_vm4, %v5184_v37  ;;  %v639_v26 = vrot.slane %v5152_v60, 1 }
 0x10d   : > { %1850 = vst.msk [vmem:[#allocation3 + $0x80] sm:$0xf] %vm516_vm4, %v5191_v1  ;;  %1293 = vrot.lane.b32.xlu2 %v5175_v49, %s4243_s9 }
 0x10e   : > { %1344 = vst.msk [vmem:[#allocation3 + $0x30] sm:$0xf] %vm1339_vm7, %v1252_v15  ;;  %v1258_v25 = vpop.permute.xlu2 %1257  ;;  %v642_v0 = vsel %vm597_vm2, %v639_v26, %v641_v14  ;;  %v640_v29 = vsel %vm597_vm2, %v638_v40, %v639_v26  ;;  %v6570_v14 = vrot.slane %v4582_v16, 1  ;;  %v668_v16 = vrot.slane %v4679_v10, 1 }
 0x10f   : > { %1182 = vst.msk [vmem:[#allocation3 + $0x3c] sm:$0xf] %vm1176_vm6, %v1091_v19  ;;  %v5218_v15 = vpack.c.bf16 %v642_v0, %v642_v0  ;;  %v5224_v53 = vpack.c.bf16 %v640_v29, %v640_v29  ;;  %v6501_v0 = vrot.slane %v5152_v60, 2 }
 0x110   : > { %1345 = vst.msk [vmem:[#allocation3 + $0x3c] sm:$0xf] %vm1339_vm7, %v1254_v57  ;;  %v667_v57 = vsel %vm597_vm2, %v6570_v14, %v666_v22  ;;  %v789_v19 = vpop.permute.xlu1 %788  ;;  %v6500_v22 = vrot.slane %v4687_v17, 1 }
 0x111   : > { %537 = vst.msk [vmem:[#allocation3 + $0xf0] sm:$0xf] %vm516_vm4, %v5201_v41  ;;  %v5236_v55 = vpack.c.bf16 %v667_v57, %v667_v57 }
 0x112   : > { %538 = vst.msk [vmem:[#allocation3 + $0xfc] sm:$0xf] %vm516_vm4, %v5206_v48  ;;  %v787_v26 = vpop.permute.xlu0 %786  ;;  %v670_v57 = vsel %vm597_vm2, %v668_v16, %v6500_v22  ;;  %826 = vrot.lane.b32.xlu1 %v5126_v44, %s4242_s29  ;;  %1110 = vrot.lane.b32.xlu0 %v5133_v4, %s4241_s24  ;;  %v3921_v16 = vunpack.c.h.bf16 %v3957_v50 }
 0x113   : > { %1399 = vst.msk [vmem:[#allocation3 + $0xb8] sm:$0xf] %vm516_vm4, %v5218_v15  ;;  %v5249_v10 = vpack.c.bf16 %v670_v57, %v670_v57 }
 0x114   : > { %1398 = vst.msk [vmem:[#allocation3 + $0xac] sm:$0xf] %vm516_vm4, %v5224_v53 }
 0x115   : > { %v3417_v40 = vld [vmem:[#allocation3 + $0x30] sm:$0xf]  ;;  %878 = vst.msk [vmem:[#allocation3 + $0x54] sm:$0xf] %vm870_vm5, %v789_v19  ;;  %1108 = vrot.lane.b32.xlu2 %v5191_v1, %s4241_s24 }
 0x116   : > { %877 = vst.msk [vmem:[#allocation3 + $0x48] sm:$0xf] %vm870_vm5, %v787_v26  ;;  %v1097_v19 = vpop.permute.xlu2 %1096  ;;  %v3920_v26 = vunpack.c.l.bf16 %v3957_v50 }
 0x117   : > { %v3808_v29 = vld [vmem:[#allocation3 + $0x38] sm:$0xf0]  ;;  %6571 = vst [vmem:[#allocation53_spill] sm:$0xff] %v5236_v55 }
 0x118   : > { %1183 = vst.msk [vmem:[#allocation3 + $0x48] sm:$0xf] %vm1176_vm6, %v1093_v58  ;;  %v3418_v14 = vor.u32 %v3808_v29, %v3417_v40  ;;  %v948_v58 = vsel %vm903_vm1, %v6501_v0, %v947_v51  ;;  %v1256_v40 = vpop.permute.xlu1 %1255  ;;  %v3401_v51 = vld [vmem:[#allocation3 + $0x8] sm:$0xf] }
 0x119   : > { %1409 = vst.msk [vmem:[#allocation3 + $0x130] sm:$0xf] %vm516_vm4, %v5236_v55  ;;  %v5258_v9 = vpack.c.bf16 %v948_v58, %v948_v58 }
 0x11a   : > { %6572 = vst [vmem:[#allocation54_spill] sm:$0xff] %v5249_v10  ;;  %v1095_v29 = vpop.permute.xlu0 %1094  ;;  %1273 = vrot.lane.b32.xlu1 %v5164_v61, %s4243_s9  ;;  %1271 = vrot.lane.b32.xlu0 %v5156_v28, %s4243_s9 }
 0x11b   : > { %414 = vst.msk [vmem:[#allocation2 + $0xd9] sm:$0xff] %vm277_vm0, %v3920_v26 }
 0x11c   : > { %2464 = vmatmul.bf16.gmra.mxu0 %v3418_v14  ;;  %2731 = vmatmul.bf16.gmra.mxu3 %v3418_v14  ;;  %1410 = vst.msk [vmem:[#allocation3 + $0x13c] sm:$0xf] %vm516_vm4, %v5249_v10  ;;  %v3803_v14 = vld [vmem:[#allocation3 + $0x10] sm:$0xf0] }
 0x11d   : > { %1853 = vst.msk [vmem:[#allocation3 + $0xa4] sm:$0xf] %vm516_vm4, %v5258_v9  ;;  %v5270_v57 = vor.u32 %v3803_v14, %v3401_v51  ;;  %v4061_v14 = vld [vmem:[#allocation2 + $0x158] sm:$0xff]  ;;  %828 = vrot.lane.b32.xlu2 %v5236_v55, %s4242_s29  ;;  %v4062_v55 = vld [vmem:[#allocation2 + $0x160] sm:$0x3] }
 0x11e   : > { %1346 = vst.msk [vmem:[#allocation3 + $0x48] sm:$0xf] %vm1339_vm7, %v1256_v40  ;;  %v817_v26 = vpop.permute.xlu2 %816 }
 0x11f   : > { %1184 = vst.msk [vmem:[#allocation3 + $0x54] sm:$0xf] %vm1176_vm6, %v1095_v29  ;;  %3727 = vmatmul.msk.bf16.vlgmr.msra.gmra.mxu2 %vm277_vm0, %v5270_v57 }
 0x120   : > { %1347 = vst.msk [vmem:[#allocation3 + $0x54] sm:$0xf] %vm1339_vm7, %v1258_v25  ;;  %v793_v58 = vpop.permute.xlu1 %792 }
 0x121   : > { %6573 = vst [vmem:[#allocation55_spill] sm:$0xff] %v5270_v57 }
 0x122   : > { %415 = vst.msk [vmem:[#allocation2 + $0xe1] sm:$0xff] %vm277_vm0, %v3921_v16  ;;  %v5276_v50 = vld [vmem:[#allocation2 + $0xd8] sm:$0xff]  ;;  %v791_v40 = vpop.permute.xlu0 %790  ;;  %v944_v16 = vrot.slane %v5150_v52, 2  ;;  %1295 = vrot.lane.b32.xlu1 %v5184_v37, %s4243_s9  ;;  %1134 = vrot.lane.b32.xlu0 %v4616_v34, %s4241_s24  ;;  %v671_v34 = vrot.slane %v4062_v55, 1  ;;  %v6577_v55 = vrot.slane %v4687_v17, 1 }
 0x123   : > { %892 = vst.msk [vmem:[#allocation3 + $0xfc] sm:$0xf] %vm870_vm5, %v817_v26  ;;  %v5284_v25 = vpack.c.bf16 %v5276_v50, %v5276_v50  ;;  %v5291_v26 = vpack.c.bf16 %v4061_v14, %v4061_v14  ;;  %v3413_v14 = vld [vmem:[#allocation3 + $0x20] sm:$0xf] }
 0x124   : > { %880 = vst.msk [vmem:[#allocation3 + $0x6c] sm:$0xf] %vm870_vm5, %v793_v58  ;;  %v5306_v58 = vpack.c.bf16 %v4724_v38, %v4724_v38 }
 0x125   : > { %v3429_v29 = vld [vmem:[#allocation3 + $0x48] sm:$0xf]  ;;  %535 = vst.msk [vmem:[#allocation3 + $0xd8] sm:$0xf] %vm516_vm4, %v5284_v25  ;;  %1132 = vrot.lane.b32.xlu2 %v4608_v32, %s4241_s24 }
 0x126   : > { %879 = vst.msk [vmem:[#allocation3 + $0x60] sm:$0xf] %vm870_vm5, %v791_v40  ;;  %v1121_v44 = vpop.permute.xlu2 %1120 }
 0x127   : > { %v3811_v51 = vld [vmem:[#allocation3 + $0x50] sm:$0xf0]  ;;  %6574 = vst [vmem:[#allocation56_spill] sm:$0xff] %v5291_v26 }
 0x128   : > { %1185 = vst.msk [vmem:[#allocation3 + $0x60] sm:$0xf] %vm1176_vm6, %v1097_v19  ;;  %v3430_v22 = vor.u32 %v3811_v51, %v3429_v29  ;;  %v6576_v19 = vrot.slane %v5152_v60, 2  ;;  %v815_v38 = vpop.permute.xlu1 %814 }
 0x129   : > { %v5296_v0 = vld [vmem:[#allocation2 + $0xe0] sm:$0xff]  ;;  %546 = vst.msk [vmem:[#allocation3 + $0x15c] sm:$0xf] %vm516_vm4, %v5291_v26  ;;  %v459_v51 = vld [vmem:[#allocation2 + $0xe8] sm:$0x3] }
 0x12a   : > { %v5300_v52 = vpack.c.bf16 %v5296_v0, %v5296_v0  ;;  %6575 = vst [vmem:[#allocation57_spill] sm:$0xff] %v5306_v58  ;;  %v946_v40 = vsel %vm903_vm1, %v944_v16, %v6576_v19  ;;  %v644_v60 = vrot.slane %v5296_v0, 1  ;;  %v643_v16 = vrot.slane %v5276_v50, 1  ;;  %v3806_v19 = vld [vmem:[#allocation3 + $0x28] sm:$0xf0]  ;;  %808 = vrot.lane.b32.xlu1 %v5218_v15, %s4242_s29  ;;  %806 = vrot.lane.b32.xlu0 %v5224_v53, %s4242_s29 }
 0x12b   : > { %v5317_v29 = vpack.c.bf16 %v946_v40, %v946_v40  ;;  %547 = vst.msk [vmem:[#allocation3 + $0x168] sm:$0xf] %vm516_vm4, %v5306_v58  ;;  %v5330_v40 = vor.u32 %v3806_v19, %v3413_v14  ;;  %v646_v37 = vrot.slane %v459_v51, 1  ;;  %v672_v14 = vsel %vm597_vm2, %v6577_v55, %v671_v34 }
 0x12c   : > { %2469 = vmatmul.bf16.gmra.mxu0 %v3430_v22  ;;  %2736 = vmatmul.bf16.gmra.mxu3 %v3430_v22  ;;  %536 = vst.msk [vmem:[#allocation3 + $0xe4] sm:$0xf] %vm516_vm4, %v5300_v52  ;;  %v1099_v22 = vpop.permute.xlu0 %1098  ;;  %v645_v57 = vsel %vm597_vm2, %v643_v16, %v644_v60  ;;  %v952_v55 = vrot.slane %v459_v51, 2 }
 0x12d   : > { %1852 = vst.msk [vmem:[#allocation3 + $0x98] sm:$0xf] %vm516_vm4, %v5317_v29  ;;  %1297 = vrot.lane.b32.xlu2 %v5291_v26, %s4243_s9 }
 0x12e   : > { %891 = vst.msk [vmem:[#allocation3 + $0xf0] sm:$0xf] %vm870_vm5, %v815_v38  ;;  %v1286_v49 = vpop.permute.xlu2 %1285  ;;  %v647_v38 = vsel %vm597_vm2, %v644_v60, %v646_v37  ;;  %v950_v37 = vrot.slane %v5296_v0, 2  ;;  %v4063_v60 = vld [vmem:[#allocation2 + $0x168] sm:$0xff] }
 0x12f   : > { %1186 = vst.msk [vmem:[#allocation3 + $0x6c] sm:$0xf] %vm1176_vm6, %v1099_v22  ;;  %3728 = vmatmul.msk.bf16.gmra.mxu2 %vm277_vm0, %v5330_v40  ;;  %v5336_v22 = vpack.c.bf16 %v645_v57, %v645_v57  ;;  %v5353_v57 = vpack.c.bf16 %v672_v14, %v672_v14  ;;  %v673_v17 = vrot.slane %v4063_v60, 1 }
 0x130   : > { %1197 = vst.msk [vmem:[#allocation3 + $0xf0] sm:$0xf] %vm1176_vm6, %v1121_v44  ;;  %v5342_v44 = vpack.c.bf16 %v647_v38, %v647_v38  ;;  %v1262_v16 = vpop.permute.xlu1 %1261  ;;  %v5356_v38 = vld [vmem:[#allocation2 + $0x170] sm:$0xff] }
 0x131   : > { %1400 = vst.msk [vmem:[#allocation3 + $0xc4] sm:$0xf] %vm516_vm4, %v5336_v22  ;;  %v6510_v34 = vrot.slane %v5356_v38, 1 }
 0x132   : > { %1401 = vst.msk [vmem:[#allocation3 + $0xd0] sm:$0xf] %vm516_vm4, %v5342_v44  ;;  %830 = vrot.lane.b32.xlu1 %v5249_v10, %s4242_s29  ;;  %1114 = vrot.lane.b32.xlu0 %v5258_v9, %s4241_s24 }
 0x133   : > { %1349 = vst.msk [vmem:[#allocation3 + $0x6c] sm:$0xf] %vm1339_vm7, %v1262_v16  ;;  %v675_v14 = vsel %vm597_vm2, %v673_v17, %v6510_v34  ;;  %v953_v16 = vsel %vm903_vm1, %v950_v37, %v952_v55  ;;  %v3809_v34 = vld [vmem:[#allocation3 + $0x40] sm:$0xf0] }
 0x134   : > { %v1260_v19 = vpop.permute.xlu0 %1259  ;;  %6578 = vst [vmem:[#allocation58_spill] sm:$0xff] %v5353_v57  ;;  %v5373_v51 = vpack.c.bf16 %v953_v16, %v953_v16 }
 0x135   : > { %1348 = vst.msk [vmem:[#allocation3 + $0x60] sm:$0xf] %vm1339_vm7, %v1260_v19  ;;  %v5367_v19 = vpack.c.bf16 %v675_v14, %v675_v14  ;;  %v3425_v14 = vld [vmem:[#allocation3 + $0x38] sm:$0xf]  ;;  %1112 = vrot.lane.b32.xlu2 %v5317_v29, %s4241_s24 }
 0x136   : > { %1411 = vst.msk [vmem:[#allocation3 + $0x148] sm:$0xf] %vm516_vm4, %v5353_v57  ;;  %v1101_v0 = vpop.permute.xlu2 %1100  ;;  %v5384_v16 = vor.u32 %v3809_v34, %v3425_v14 }
 0x137   : > { %6579 = vst [vmem:[#allocation59_spill] sm:$0xff] %v5367_v19 }
 0x138   : > { %1412 = vst.msk [vmem:[#allocation3 + $0x154] sm:$0xf] %vm516_vm4, %v5367_v19  ;;  %v1284_v60 = vpop.permute.xlu1 %1283 }
 0x139   : > { %1855 = vst.msk [vmem:[#allocation3 + $0xbc] sm:$0xf] %vm516_vm4, %v5373_v51 }
 0x13a   : > { %v3814_v32 = vld [vmem:[#allocation3 + $0x68] sm:$0xf0]  ;;  %1360 = vst.msk [vmem:[#allocation3 + $0xf0] sm:$0xf] %vm1339_vm7, %v1284_v60  ;;  %1277 = vrot.lane.b32.xlu1 %v5300_v52, %s4243_s9  ;;  %1275 = vrot.lane.b32.xlu0 %v5284_v25, %s4243_s9 }
 0x13c   : > { %v1123_v26 = vpop.permute.xlu0 %1122  ;;  %v3441_v17 = vld [vmem:[#allocation3 + $0x60] sm:$0xf] }
 0x13d   : > { %1198 = vst.msk [vmem:[#allocation3 + $0xfc] sm:$0xf] %vm1176_vm6, %v1123_v26  ;;  %v3442_v55 = vor.u32 %v3814_v32, %v3441_v17  ;;  %v5395_v32 = vpack.c.bf16 %v5356_v38, %v5356_v38  ;;  %832 = vrot.lane.b32.xlu2 %v5353_v57, %s4242_s29 }
 0x13e   : > { %1361 = vst.msk [vmem:[#allocation3 + $0xfc] sm:$0xf] %vm1339_vm7, %v1286_v49  ;;  %v821_v10 = vpop.permute.xlu2 %820 }
 0x13f   : > { %2474 = vmatmul.bf16.gmra.mxu0 %v3442_v55  ;;  %2741 = vmatmul.bf16.gmra.mxu3 %v3442_v55  ;;  %894 = vst.msk [vmem:[#allocation3 + $0x114] sm:$0xf] %vm870_vm5, %v821_v10  ;;  %v949_v10 = vrot.slane %v5276_v50, 2 }
 0x140   : > { %3729 = vmatmul.msk.bf16.gmra.mxu2 %vm277_vm0, %v5384_v16  ;;  %6580 = vst [vmem:[#allocation60_spill] sm:$0xff] %v5395_v32  ;;  %v797_v49 = vpop.permute.xlu1 %796 }
 0x141   : > { %v3513_v34 = vld [vmem:[#allocation3 + $0xf0] sm:$0xf]  ;;  %548 = vst.msk [vmem:[#allocation3 + $0x174] sm:$0xf] %vm516_vm4, %v5395_v32  ;;  %v951_v14 = vsel %vm903_vm1, %v949_v10, %v950_v37  ;;  %v4065_v10 = vld [vmem:[#allocation2 + $0x178] sm:$0x3] }
 0x142   : > { %882 = vst.msk [vmem:[#allocation3 + $0x84] sm:$0xf] %vm870_vm5, %v797_v49  ;;  %1299 = vrot.lane.b32.xlu1 %v5306_v58, %s4243_s9  ;;  %1138 = vrot.lane.b32.xlu0 %v4719_v36, %s4241_s24  ;;  %v5413_v50 = vpack.c.bf16 %v951_v14, %v951_v14  ;;  %v6581_v58 = vrot.slane %v5356_v38, 1 }
 0x144   : > { %v795_v26 = vpop.permute.xlu0 %794  ;;  %1854 = vst.msk [vmem:[#allocation3 + $0xb0] sm:$0xf] %vm516_vm4, %v5413_v50 }
 0x145   : > { %881 = vst.msk [vmem:[#allocation3 + $0x78] sm:$0xf] %vm870_vm5, %v795_v26  ;;  %v3832_v60 = vld [vmem:[#allocation3 + $0xf8] sm:$0xf0]  ;;  %v3437_v26 = vld [vmem:[#allocation3 + $0x50] sm:$0xf]  ;;  %1136 = vrot.lane.b32.xlu2 %v4717_v35, %s4241_s24 }
 0x146   : > { %1187 = vst.msk [vmem:[#allocation3 + $0x78] sm:$0xf] %vm1176_vm6, %v1101_v0  ;;  %v5403_v17 = vor.u32 %v3832_v60, %v3513_v34  ;;  %v1125_v55 = vpop.permute.xlu2 %1124  ;;  %v3812_v34 = vld [vmem:[#allocation3 + $0x58] sm:$0xf0]  ;;  %v676_v60 = vrot.slane %v4065_v10, 1 }
 0x147   : > { %v5422_v37 = vor.u32 %v3812_v34, %v3437_v26 }
 0x148   : > { %2504 = vmatmul.bf16.vlgmr.msra.gmra.mxu1 %v5403_v17  ;;  %v819_v49 = vpop.permute.xlu1 %818 }
 0x149   : > { %893 = vst.msk [vmem:[#allocation3 + $0x108] sm:$0xf] %vm870_vm5, %v819_v49  ;;  %v677_v49 = vsel %vm597_vm2, %v6581_v58, %v676_v60 }
 0x14a   : > { %1199 = vst.msk [vmem:[#allocation3 + $0x108] sm:$0xf] %vm1176_vm6, %v1125_v55  ;;  %812 = vrot.lane.b32.xlu1 %v5342_v44, %s4242_s29  ;;  %810 = vrot.lane.b32.xlu0 %v5336_v22, %s4242_s29  ;;  %v5433_v55 = vpack.c.bf16 %v677_v49, %v677_v49 }
 0x14c   : > { %v1103_v0 = vpop.permute.xlu0 %1102  ;;  %6582 = vst [vmem:[#allocation61_spill] sm:$0xff] %v5433_v55 }
 0x14d   : > { %1188 = vst.msk [vmem:[#allocation3 + $0x84] sm:$0xf] %vm1176_vm6, %v1103_v0  ;;  %1301 = vrot.lane.b32.xlu2 %v5395_v32, %s4243_s9 }
 0x14e   : > { %v1290_v14 = vpop.permute.xlu2 %1289  ;;  %1413 = vst.msk [vmem:[#allocation3 + $0x160] sm:$0xf] %vm516_vm4, %v5433_v55 }
 0x150   : > { %3730 = vmatmul.msk.bf16.gmra.mxu2 %vm277_vm0, %v5422_v37  ;;  %v1266_v0 = vpop.permute.xlu1 %1265 }
 0x151   : > { %1351 = vst.msk [vmem:[#allocation3 + $0x84] sm:$0xf] %vm1339_vm7, %v1266_v0  ;;  %v3449_v0 = vld [vmem:[#allocation3 + $0x68] sm:$0xf] }
 0x152   : > { %834 = vrot.lane.b32.xlu1 %v5367_v19, %s4242_s29  ;;  %1118 = vrot.lane.b32.xlu0 %v5373_v51, %s4241_s24 }
 0x154   : > { %v1264_v26 = vpop.permute.xlu0 %1263 }
 0x155   : > { %1350 = vst.msk [vmem:[#allocation3 + $0x78] sm:$0xf] %vm1339_vm7, %v1264_v26  ;;  %v3815_v26 = vld [vmem:[#allocation3 + $0x70] sm:$0xf0]  ;;  %1116 = vrot.lane.b32.xlu2 %v5413_v50, %s4241_s24 }
 0x156   : > { %v1105_v58 = vpop.permute.xlu2 %1104  ;;  %v5450_v19 = vor.u32 %v3815_v26, %v3449_v0 }
 0x158   : > { %v1288_v38 = vpop.permute.xlu1 %1287  ;;  %v3817_v10 = vld [vmem:[#allocation3 + $0x80] sm:$0xf0] }
 0x159   : > { %1362 = vst.msk [vmem:[#allocation3 + $0x108] sm:$0xf] %vm1339_vm7, %v1288_v38 }
 0x15a   : > { %1281 = vrot.lane.b32.xlu1 %v5206_v48, %s4243_s9  ;;  %1279 = vrot.lane.b32.xlu0 %v5201_v41, %s4243_s9 }
 0x15c   : > { %v1127_v34 = vpop.permute.xlu0 %1126  ;;  %v3453_v60 = vld [vmem:[#allocation3 + $0x78] sm:$0xf] }
 0x15d   : > { %1200 = vst.msk [vmem:[#allocation3 + $0x114] sm:$0xf] %vm1176_vm6, %v1127_v34  ;;  %v3454_v49 = vor.u32 %v3817_v10, %v3453_v60  ;;  %v5461_v60 = vld [vmem:[#allocation2 + $0x180] sm:$0xff]  ;;  %836 = vrot.lane.b32.xlu2 %v5433_v55, %s4242_s29  ;;  %v3707_v55 = vld [vmem:[#allocation7 + $0xf8] sm:$0xf0] }
 0x15e   : > { %1363 = vst.msk [vmem:[#allocation3 + $0x114] sm:$0xf] %vm1339_vm7, %v1290_v14  ;;  %v825_v32 = vpop.permute.xlu2 %824 }
 0x15f   : > { %2479 = vmatmul.bf16.gmra.mxu0 %v3454_v49  ;;  %2746 = vmatmul.bf16.gmra.mxu3 %v3454_v49  ;;  %896 = vst.msk [vmem:[#allocation3 + $0x12c] sm:$0xf] %vm870_vm5, %v825_v32  ;;  %v5465_v49 = vpack.c.bf16 %v5461_v60, %v5461_v60 }
 0x160   : > { %3731 = vmatmul.msk.bf16.gmra.mxu2 %vm277_vm0, %v5450_v19  ;;  %v801_v14 = vpop.permute.xlu1 %800  ;;  %v3525_v34 = vld [vmem:[#allocation3 + $0x108] sm:$0xf] }
 0x161   : > { %884 = vst.msk [vmem:[#allocation3 + $0x9c] sm:$0xf] %vm870_vm5, %v801_v14 }
 0x162   : > { %1142 = vrot.lane.b32.xlu0 %v4774_v8, %s4241_s24  ;;  %1303 = vrot.lane.b32.xlu1 %v5465_v49, %s4243_s9 }
 0x164   : > { %v799_v38 = vpop.permute.xlu0 %798 }
 0x165   : > { %883 = vst.msk [vmem:[#allocation3 + $0x90] sm:$0xf] %vm870_vm5, %v799_v38  ;;  %v3835_v10 = vld [vmem:[#allocation3 + $0x110] sm:$0xf0]  ;;  %v3818_v38 = vld [vmem:[#allocation3 + $0x88] sm:$0xf0]  ;;  %1140 = vrot.lane.b32.xlu2 %v4772_v5, %s4241_s24 }
 0x166   : > { %1189 = vst.msk [vmem:[#allocation3 + $0x90] sm:$0xf] %vm1176_vm6, %v1105_v58  ;;  %v5468_v0 = vor.u32 %v3835_v10, %v3525_v34  ;;  %v1129_v32 = vpop.permute.xlu2 %1128  ;;  %v3461_v58 = vld [vmem:[#allocation3 + $0x80] sm:$0xf]  ;;  %v3879_v10 = vld [vmem:[#allocation7 + $0xf4] sm:$0xf] }
 0x167   : > { %v5482_v34 = vor.u32 %v3818_v38, %v3461_v58  ;;  %v3710_v8 = vor.u32 %v3879_v10, %v3707_v55 }
 0x168   : > { %2509 = vmatmul.bf16.gmra.mxu1 %v5468_v0  ;;  %v823_v26 = vpop.permute.xlu1 %822 }
 0x169   : > { %895 = vst.msk [vmem:[#allocation3 + $0x120] sm:$0xf] %vm870_vm5, %v823_v26  ;;  %v5490_v26 = vld [vmem:[#allocation2 + $0x188] sm:$0xff]  ;;  %2802 = vmatpush.bf16.msrb.mxu2 %v3710_v8 }
 0x16a   : > { %1201 = vst.msk [vmem:[#allocation3 + $0x120] sm:$0xf] %vm1176_vm6, %v1129_v32  ;;  %1427 = vrot.lane.b32.xlu0 %v4603_v30, %s4242_s29  ;;  %1429 = vrot.lane.b32.xlu1 %v4562_v6, %s4242_s29  ;;  %v5494_v32 = vpack.c.bf16 %v5490_v26, %v5490_v26 }
 0x16c   : > { %v1107_v14 = vpop.permute.xlu0 %1106 }
 0x16d   : > { %1190 = vst.msk [vmem:[#allocation3 + $0x9c] sm:$0xf] %vm1176_vm6, %v1107_v14  ;;  %1305 = vrot.lane.b32.xlu2 %v5494_v32, %s4243_s9 }
 0x16e   : > { %v1294_v57 = vpop.permute.xlu2 %1293 }
 0x170   : > { %3732 = vmatmul.msk.bf16.gmra.mxu2 %vm277_vm0, %v5482_v34  ;;  %v1270_v14 = vpop.permute.xlu1 %1269 }
 0x171   : > { %1353 = vst.msk [vmem:[#allocation3 + $0x9c] sm:$0xf] %vm1339_vm7, %v1270_v14  ;;  %v3473_v14 = vld [vmem:[#allocation3 + $0x98] sm:$0xf] }
 0x172   : > { %1561 = vrot.lane.b32.xlu0 %v4578_v13, %s4241_s24  ;;  %1703 = vrot.lane.b32.xlu1 %v4553_v63, %s4243_s9 }
 0x174   : > { %v1268_v58 = vpop.permute.xlu0 %1267 }
 0x175   : > { %1352 = vst.msk [vmem:[#allocation3 + $0x90] sm:$0xf] %vm1339_vm7, %v1268_v58  ;;  %v3821_v58 = vld [vmem:[#allocation3 + $0xa0] sm:$0xf0]  ;;  %1559 = vrot.lane.b32.xlu2 %v4531_v45, %s4241_s24 }
 0x176   : > { %v1109_v30 = vpop.permute.xlu2 %1108  ;;  %v5509_v13 = vor.u32 %v3821_v58, %v3473_v14  ;;  %v3883_v14 = vld [vmem:[#allocation7 + $0x114] sm:$0xf]  ;;  %v3723_v58 = vld [vmem:[#allocation7 + $0x118] sm:$0xf0] }
 0x178   : > { %v1292_v6 = vpop.permute.xlu1 %1291  ;;  %v3820_v38 = vld [vmem:[#allocation3 + $0x98] sm:$0xf0] }
 0x179   : > { %1364 = vst.msk [vmem:[#allocation3 + $0x120] sm:$0xf] %vm1339_vm7, %v1292_v6 }
 0x17a   : > { %1431 = vrot.lane.b32.xlu0 %v4634_v42, %s4242_s29  ;;  %1433 = vrot.lane.b32.xlu1 %v4573_v11, %s4242_s29  ;;  %v3877_v42 = vld [vmem:[#allocation7 + $0xe4] sm:$0xf] }
 0x17c   : > { %v1131_v55 = vpop.permute.xlu0 %1130  ;;  %v3465_v8 = vld [vmem:[#allocation3 + $0x90] sm:$0xf] }
 0x17d   : > { %1202 = vst.msk [vmem:[#allocation3 + $0x12c] sm:$0xf] %vm1176_vm6, %v1131_v55  ;;  %v3466_v10 = vor.u32 %v3820_v38, %v3465_v8  ;;  %1705 = vrot.lane.b32.xlu2 %v4558_v2, %s4243_s9  ;;  %v3699_v8 = vld [vmem:[#allocation7 + $0xe8] sm:$0xf0]  ;;  %v3485_v2 = vld [vmem:[#allocation3 + $0xb0] sm:$0xf] }
 0x17e   : > { %1365 = vst.msk [vmem:[#allocation3 + $0x12c] sm:$0xf] %vm1339_vm7, %v1294_v57  ;;  %v829_v63 = vpop.permute.xlu2 %828  ;;  %v3702_v11 = vor.u32 %v3877_v42, %v3699_v8 }
 0x17f   : > { %2484 = vmatmul.bf16.gmra.mxu0 %v3466_v10  ;;  %2751 = vmatmul.bf16.gmra.mxu3 %v3466_v10  ;;  %898 = vst.msk [vmem:[#allocation3 + $0x144] sm:$0xf] %vm870_vm5, %v829_v63 }
 0x180   : > { %3733 = vmatmul.msk.bf16.gmra.mxu2 %vm277_vm0, %v5509_v13  ;;  %v805_v57 = vpop.permute.xlu1 %804  ;;  %v3537_v55 = vld [vmem:[#allocation3 + $0x120] sm:$0xf] }
 0x181   : > { %886 = vst.msk [vmem:[#allocation3 + $0xb4] sm:$0xf] %vm870_vm5, %v805_v57  ;;  %2803 = vmatpush.bf16.msrb.mxu2 %v3702_v11 }
 0x182   : > { %1565 = vrot.lane.b32.xlu0 %v4643_v47, %s4241_s24  ;;  %1707 = vrot.lane.b32.xlu1 %v4598_v27, %s4243_s9  ;;  %v5543_v27 = vpop.f32.mrf.mxu3 }
 0x183   : > { %6583 = vst [vmem:[#allocation62_spill] sm:$0xff] %v5543_v27 }
 0x184   : > { %v803_v6 = vpop.permute.xlu0 %802 }
 0x185   : > { %885 = vst.msk [vmem:[#allocation3 + $0xa8] sm:$0xf] %vm870_vm5, %v803_v6  ;;  %v3838_v45 = vld [vmem:[#allocation3 + $0x128] sm:$0xf0]  ;;  %v3824_v6 = vld [vmem:[#allocation3 + $0xb8] sm:$0xf0]  ;;  %1563 = vrot.lane.b32.xlu2 %v4568_v7, %s4241_s24 }
 0x186   : > { %1191 = vst.msk [vmem:[#allocation3 + $0xa8] sm:$0xf] %vm1176_vm6, %v1109_v30  ;;  %v5521_v38 = vor.u32 %v3838_v45, %v3537_v55  ;;  %v1133_v10 = vpop.permute.xlu2 %1132  ;;  %v3726_v30 = vor.u32 %v3883_v14, %v3723_v58  ;;  %v5535_v47 = vor.u32 %v3824_v6, %v3485_v2  ;;  %v3827_v2 = vld [vmem:[#allocation3 + $0xd0] sm:$0xf0] }
 0x188   : > { %2514 = vmatmul.bf16.gmra.mxu1 %v5521_v38  ;;  %v827_v63 = vpop.permute.xlu1 %826  ;;  %2897 = vmatpush.bf16.msrb.mxu0 %v3726_v30  ;;  %v3875_v30 = vld [vmem:[#allocation7 + $0xd4] sm:$0xf] }
 0x189   : > { %897 = vst.msk [vmem:[#allocation3 + $0x138] sm:$0xf] %vm870_vm5, %v827_v63 }
 0x18a   : > { %1203 = vst.msk [vmem:[#allocation3 + $0x138] sm:$0xf] %vm1176_vm6, %v1133_v10  ;;  %1435 = vrot.lane.b32.xlu0 %v4715_v33, %s4242_s29  ;;  %1437 = vrot.lane.b32.xlu1 %v4628_v39, %s4242_s29  ;;  %v6584_v33 = vld [vmem:[#allocation19_spill] sm:$0xff]  ;;  %v5553_v10 = vpop.f32.mrf.mxu3 }
 0x18b   : > { %6585 = vst [vmem:[#allocation19_spill] sm:$0xff] %v5553_v10 }
 0x18c   : > { %v1111_v57 = vpop.permute.xlu0 %1110 }
 0x18d   : > { %1192 = vst.msk [vmem:[#allocation3 + $0xb4] sm:$0xf] %vm1176_vm6, %v1111_v57  ;;  %1709 = vrot.lane.b32.xlu2 %v4595_v24, %s4243_s9  ;;  %v3691_v24 = vld [vmem:[#allocation7 + $0xd8] sm:$0xf0]  ;;  %v3497_v57 = vld [vmem:[#allocation3 + $0xc8] sm:$0xf] }
 0x18e   : > { %v1298_v55 = vpop.permute.xlu2 %1297  ;;  %v3694_v63 = vor.u32 %v3875_v30, %v3691_v24  ;;  %v5560_v6 = vor.u32 %v3827_v2, %v3497_v57  ;;  %v6591_v24 = vld [vmem:[#allocation18_spill] sm:$0xff] }
 0x190   : > { %3734 = vmatmul.msk.bf16.gmra.mxu2 %vm277_vm0, %v5535_v47  ;;  %v1274_v45 = vpop.permute.xlu1 %1273 }
 0x191   : > { %1355 = vst.msk [vmem:[#allocation3 + $0xb4] sm:$0xf] %vm1339_vm7, %v1274_v45  ;;  %2804 = vmatpush.bf16.msrb.mxu2 %v3694_v63  ;;  %v6592_v63 = vld [vmem:[#allocation23_spill] sm:$0xff] }
 0x192   : > { %1569 = vrot.lane.b32.xlu0 %v4765_v59, %s4241_s24  ;;  %1711 = vrot.lane.b32.xlu1 %v6584_v33, %s4243_s9  ;;  %v6586_v59 = vld [vmem:[#allocation17_spill] sm:$0xff]  ;;  %v6588_v33 = vld [vmem:[#allocation20_spill] sm:$0xff] }
 0x194   : > { %v1272_v42 = vpop.permute.xlu0 %1271 }
 0x195   : > { %1354 = vst.msk [vmem:[#allocation3 + $0xa8] sm:$0xf] %vm1339_vm7, %v1272_v42  ;;  %1567 = vrot.lane.b32.xlu2 %v6586_v59, %s4241_s24  ;;  %v6587_v42 = vld [vmem:[#allocation28_spill] sm:$0xff] }
 0x196   : > { %v1113_v7 = vpop.permute.xlu2 %1112 }
 0x198   : > { %v1296_v8 = vpop.permute.xlu1 %1295  ;;  %v3823_v11 = vld [vmem:[#allocation3 + $0xb0] sm:$0xf0] }
 0x199   : > { %1366 = vst.msk [vmem:[#allocation3 + $0x138] sm:$0xf] %vm1339_vm7, %v1296_v8 }
 0x19a   : > { %1439 = vrot.lane.b32.xlu0 %v6587_v42, %s4242_s29  ;;  %1441 = vrot.lane.b32.xlu1 %v6588_v33, %s4242_s29  ;;  %v3830_v42 = vld [vmem:[#allocation3 + $0xe8] sm:$0xf0]  ;;  %v6594_v33 = vld [vmem:[#allocation22_spill] sm:$0xff] }
 0x19c   : > { %v1135_v39 = vpop.permute.xlu0 %1134  ;;  %v3477_v14 = vld [vmem:[#allocation3 + $0xa8] sm:$0xf] }
 0x19d   : > { %1204 = vst.msk [vmem:[#allocation3 + $0x144] sm:$0xf] %vm1176_vm6, %v1135_v39  ;;  %v3478_v58 = vor.u32 %v3823_v11, %v3477_v14  ;;  %1713 = vrot.lane.b32.xlu2 %v6591_v24, %s4243_s9  ;;  %v5600_v24 = vpop.f32.mrf.mxu0 }
 0x19e   : > { %1367 = vst.msk [vmem:[#allocation3 + $0x144] sm:$0xf] %vm1339_vm7, %v1298_v55  ;;  %v833_v45 = vpop.permute.xlu2 %832 }
 0x19f   : > { %2489 = vmatmul.bf16.gmra.mxu0 %v3478_v58  ;;  %2756 = vmatmul.bf16.gmra.mxu3 %v3478_v58  ;;  %900 = vst.msk [vmem:[#allocation3 + $0x15c] sm:$0xf] %vm870_vm5, %v833_v45  ;;  %v5573_v58 = vpop.f32.mrf.mxu3 }
 0x1a0   : > { %3735 = vmatmul.msk.bf16.gmra.mxu2 %vm277_vm0, %v5560_v6  ;;  %v809_v55 = vpop.permute.xlu1 %808  ;;  %v3549_v39 = vld [vmem:[#allocation3 + $0x138] sm:$0xf]  ;;  %6590 = vst [vmem:[#allocation28_spill] sm:$0xff] %v5573_v58 }
 0x1a1   : > { %888 = vst.msk [vmem:[#allocation3 + $0xcc] sm:$0xf] %vm870_vm5, %v809_v55 }
 0x1a2   : > { %v5570_v11 = vpop.f32.mrf.mxu2  ;;  %1573 = vrot.lane.b32.xlu0 %v6592_v63, %s4241_s24  ;;  %1715 = vrot.lane.b32.xlu1 %v4828_v3, %s4243_s9 }
 0x1a3   : > { %6589 = vst [vmem:[#allocation17_spill] sm:$0xff] %v5570_v11 }
 0x1a4   : > { %v807_v8 = vpop.permute.xlu0 %806 }
 0x1a5   : > { %887 = vst.msk [vmem:[#allocation3 + $0xc0] sm:$0xf] %vm870_vm5, %v807_v8  ;;  %v3841_v14 = vld [vmem:[#allocation3 + $0x140] sm:$0xf0]  ;;  %1571 = vrot.lane.b32.xlu2 %v6594_v33, %s4241_s24  ;;  %v5616_v10 = vpop.f32.mrf.mxu0 }
 0x1a6   : > { %1193 = vst.msk [vmem:[#allocation3 + $0xc0] sm:$0xf] %vm1176_vm6, %v1113_v7  ;;  %v5576_v30 = vor.u32 %v3841_v14, %v3549_v39  ;;  %v1137_v59 = vpop.permute.xlu2 %1136  ;;  %v3509_v7 = vld [vmem:[#allocation3 + $0xe0] sm:$0xf]  ;;  %v3873_v39 = vld [vmem:[#allocation7 + $0xc4] sm:$0xf] }
 0x1a7   : > { %v5592_v55 = vor.u32 %v3830_v42, %v3509_v7  ;;  %v5594_v8 = vpop.f32.mrf.mxu3  ;;  %v3683_v14 = vld [vmem:[#allocation7 + $0xc8] sm:$0xf0]  ;;  %v3880_v7 = vld [vmem:[#allocation7 + $0xf4] sm:$0xf0]  ;;  %6598 = vst [vmem:[#allocation63_spill] sm:$0xff] %v5616_v10 }
 0x1a8   : > { %2519 = vmatmul.bf16.gmra.mxu1 %v5576_v30  ;;  %v831_v57 = vpop.permute.xlu1 %830  ;;  %6595 = vst [vmem:[#allocation18_spill] sm:$0xff] %v5594_v8  ;;  %v3881_v8 = vld [vmem:[#allocation7 + $0x104] sm:$0xf] }
 0x1a9   : > { %899 = vst.msk [vmem:[#allocation3 + $0x150] sm:$0xf] %vm870_vm5, %v831_v57 }
 0x1aa   : > { %v5586_v45 = vpop.f32.mrf.mxu2  ;;  %1205 = vst.msk [vmem:[#allocation3 + $0x150] sm:$0xf] %vm1176_vm6, %v1137_v59  ;;  %1443 = vrot.lane.b32.xlu0 %v4949_v21, %s4242_s29  ;;  %1445 = vrot.lane.b32.xlu1 %v4883_v46, %s4242_s29  ;;  %v3686_v59 = vor.u32 %v3873_v39, %v3683_v14  ;;  %v3705_v21 = vld [vmem:[#allocation7 + $0xf0] sm:$0xf]  ;;  %v3697_v39 = vld [vmem:[#allocation7 + $0xe0] sm:$0xf] }
 0x1ab   : > { %6593 = vst [vmem:[#allocation20_spill] sm:$0xff] %v5586_v45  ;;  %v3706_v46 = vor.u32 %v3880_v7, %v3705_v21  ;;  %v3878_v14 = vld [vmem:[#allocation7 + $0xe4] sm:$0xf0]  ;;  %v3833_v7 = vld [vmem:[#allocation3 + $0x100] sm:$0xf0] }
 0x1ac   : > { %v1115_v2 = vpop.permute.xlu0 %1114  ;;  %2805 = vmatpush.bf16.msrb.mxu2 %v3686_v59  ;;  %v3698_v27 = vor.u32 %v3878_v14, %v3697_v39  ;;  %v3689_v39 = vld [vmem:[#allocation7 + $0xd0] sm:$0xf]  ;;  %v3876_v14 = vld [vmem:[#allocation7 + $0xd4] sm:$0xf0] }
 0x1ad   : > { %1194 = vst.msk [vmem:[#allocation3 + $0xcc] sm:$0xf] %vm1176_vm6, %v1115_v2  ;;  %1717 = vrot.lane.b32.xlu2 %v4823_v54, %s4243_s9  ;;  %2535 = vmatpush.bf16.msrb.mxu1 %v3706_v46  ;;  %v4071_v45 = vld [vmem:[#allocation2 + $0x1a8] sm:$0x3] }
 0x1ae   : > { %v1302_v3 = vpop.permute.xlu2 %1301 }
 0x1af   : > { %v5614_v33 = vpop.f32.mrf.mxu3 }
 0x1b0   : > { %3736 = vmatmul.msk.bf16.gmra.mxu2 %vm277_vm0, %v5592_v55  ;;  %v1278_v63 = vpop.permute.xlu1 %1277  ;;  %6597 = vst [vmem:[#allocation22_spill] sm:$0xff] %v5614_v33  ;;  %v3715_v33 = vld [vmem:[#allocation7 + $0x108] sm:$0xf0] }
 0x1b1   : > { %1357 = vst.msk [vmem:[#allocation3 + $0xcc] sm:$0xf] %vm1339_vm7, %v1278_v63  ;;  %2536 = vmatpush.bf16.msrb.mxu1 %v3698_v27  ;;  %v3874_v27 = vld [vmem:[#allocation7 + $0xc4] sm:$0xf0] }
 0x1b2   : > { %v5605_v2 = vpop.f32.mrf.mxu2  ;;  %1577 = vrot.lane.b32.xlu0 %v4907_v62, %s4241_s24  ;;  %1719 = vrot.lane.b32.xlu1 %v4970_v12, %s4243_s9  ;;  %v3521_v62 = vld [vmem:[#allocation3 + $0xf8] sm:$0xf] }
 0x1b3   : > { %6596 = vst [vmem:[#allocation23_spill] sm:$0xff] %v5605_v2  ;;  %v5625_v46 = vor.u32 %v3833_v7, %v3521_v62  ;;  %v3673_v62 = vld [vmem:[#allocation7 + $0xb0] sm:$0xf]  ;;  %v3872_v7 = vld [vmem:[#allocation7 + $0xb4] sm:$0xf0] }
 0x1b4   : > { %v1276_v57 = vpop.permute.xlu0 %1275 }
 0x1b5   : > { %1356 = vst.msk [vmem:[#allocation3 + $0xc0] sm:$0xf] %vm1339_vm7, %v1276_v57  ;;  %1575 = vrot.lane.b32.xlu2 %v4902_v23, %s4241_s24  ;;  %v3681_v23 = vld [vmem:[#allocation7 + $0xc0] sm:$0xf] }
 0x1b6   : > { %v1117_v42 = vpop.permute.xlu2 %1116 }
 0x1b8   : > { %v1300_v59 = vpop.permute.xlu1 %1299  ;;  %v3826_v57 = vld [vmem:[#allocation3 + $0xc8] sm:$0xf0] }
 0x1b9   : > { %1368 = vst.msk [vmem:[#allocation3 + $0x150] sm:$0xf] %vm1339_vm7, %v1300_v59  ;;  %v3690_v59 = vor.u32 %v3876_v14, %v3689_v39  ;;  %v3674_v39 = vor.u32 %v3872_v7, %v3673_v62  ;;  %v3871_v14 = vld [vmem:[#allocation7 + $0xb4] sm:$0xf]  ;;  %v3667_v62 = vld [vmem:[#allocation7 + $0xa8] sm:$0xf0] }
 0x1ba   : > { %v5623_v12 = vpop.f32.mrf.mxu2  ;;  %1447 = vrot.lane.b32.xlu0 %v5081_v43, %s4242_s29  ;;  %1449 = vrot.lane.b32.xlu1 %v5016_v56, %s4242_s29  ;;  %v5638_v56 = vpop.f32.mrf.mxu0 }
 0x1bb   : > { %6599 = vst [vmem:[#allocation64_spill] sm:$0xff] %v5623_v12  ;;  %2537 = vmatpush.bf16.msrb.mxu1 %v3690_v59  ;;  %v3675_v59 = vld [vmem:[#allocation7 + $0xb8] sm:$0xf0] }
 0x1bc   : > { %v1139_v63 = vpop.permute.xlu0 %1138  ;;  %v3489_v54 = vld [vmem:[#allocation3 + $0xc0] sm:$0xf] }
 0x1bd   : > { %1206 = vst.msk [vmem:[#allocation3 + $0x15c] sm:$0xf] %vm1176_vm6, %v1139_v63  ;;  %v3490_v21 = vor.u32 %v3826_v57, %v3489_v54  ;;  %v3682_v54 = vor.u32 %v3874_v27, %v3681_v23  ;;  %1721 = vrot.lane.b32.xlu2 %v4975_v31, %s4243_s9  ;;  %v3665_v31 = vld [vmem:[#allocation7 + $0xa0] sm:$0xf] }
 0x1be   : > { %1369 = vst.msk [vmem:[#allocation3 + $0x15c] sm:$0xf] %vm1339_vm7, %v1302_v3  ;;  %v837_v58 = vpop.permute.xlu2 %836 }
 0x1bf   : > { %2494 = vmatmul.bf16.gmra.mxu0 %v3490_v21  ;;  %2761 = vmatmul.bf16.gmra.mxu3 %v3490_v21  ;;  %902 = vst.msk [vmem:[#allocation3 + $0x174] sm:$0xf] %vm870_vm5, %v837_v58  ;;  %v5635_v21 = vpop.f32.mrf.mxu3 }
 0x1c0   : > { %3737 = vmatmul.msk.bf16.gmra.mxu2 %vm277_vm0, %v5625_v46  ;;  %v813_v3 = vpop.permute.xlu1 %812  ;;  %v3561_v57 = vld [vmem:[#allocation3 + $0x150] sm:$0xf]  ;;  %6600 = vst [vmem:[#allocation65_spill] sm:$0xff] %v5635_v21  ;;  %2538 = vmatpush.bf16.msrb.mxu1 %v3682_v54  ;;  %v6632_v21 = vld [vmem:[#allocation48_spill] sm:$0xff] }
 0x1c1   : > { %890 = vst.msk [vmem:[#allocation3 + $0xe4] sm:$0xf] %vm870_vm5, %v813_v3  ;;  %v3678_v3 = vor.u32 %v3871_v14, %v3675_v59 }
 0x1c2   : > { %1581 = vrot.lane.b32.xlu0 %v5058_v18, %s4241_s24  ;;  %1723 = vrot.lane.b32.xlu1 %v5099_v20, %s4243_s9  ;;  %v6602_v18 = vld [vmem:[#allocation43_spill] sm:$0xff]  ;;  %v3657_v20 = vld [vmem:[#allocation7 + $0x90] sm:$0xf] }
 0x1c3   : > { %v5646_v27 = vpop.f32.mrf.mxu2  ;;  %2806 = vmatpush.bf16.msrb.mxu2 %v3678_v3  ;;  %v3867_v3 = vld [vmem:[#allocation7 + $0x94] sm:$0xf] }
 0x1c4   : > { %v811_v63 = vpop.permute.xlu0 %810  ;;  %6601 = vst [vmem:[#allocation66_spill] sm:$0xff] %v5646_v27  ;;  %2539 = vmatpush.bf16.msrb.mxu1 %v3674_v39  ;;  %v3868_v39 = vld [vmem:[#allocation7 + $0x94] sm:$0xf0] }
 0x1c5   : > { %889 = vst.msk [vmem:[#allocation3 + $0xd8] sm:$0xf] %vm870_vm5, %v811_v63  ;;  %v3844_v43 = vld [vmem:[#allocation3 + $0x158] sm:$0xf0]  ;;  %v3869_v63 = vld [vmem:[#allocation7 + $0xa4] sm:$0xf]  ;;  %1579 = vrot.lane.b32.xlu2 %v6602_v18, %s4241_s24  ;;  %v3658_v59 = vor.u32 %v3868_v39, %v3657_v20 }
 0x1c6   : > { %1195 = vst.msk [vmem:[#allocation3 + $0xd8] sm:$0xf] %vm1176_vm6, %v1117_v42  ;;  %v5641_v58 = vor.u32 %v3844_v43, %v3561_v57  ;;  %v1141_v23 = vpop.permute.xlu2 %1140  ;;  %v3870_v42 = vld [vmem:[#allocation7 + $0xa4] sm:$0xf0]  ;;  %v3670_v7 = vor.u32 %v3869_v63, %v3667_v62  ;;  %v3865_v62 = vld [vmem:[#allocation7 + $0x84] sm:$0xf] }
 0x1c7   : > { %v3666_v43 = vor.u32 %v3870_v42, %v3665_v31  ;;  %v5657_v14 = vpop.f32.mrf.mxu3  ;;  %v3659_v31 = vld [vmem:[#allocation7 + $0x98] sm:$0xf0]  ;;  %v5659_v42 = vpop.f32.mrf.mxu0  ;;  %v3651_v39 = vld [vmem:[#allocation7 + $0x88] sm:$0xf0] }
 0x1c8   : > { %2524 = vmatmul.bf16.gmra.mxu1 %v5641_v58  ;;  %v835_v57 = vpop.permute.xlu1 %834  ;;  %6603 = vst [vmem:[#allocation43_spill] sm:$0xff] %v5657_v14  ;;  %2807 = vmatpush.bf16.msrb.mxu2 %v3670_v7  ;;  %v3662_v63 = vor.u32 %v3867_v3, %v3659_v31  ;;  %v3654_v3 = vor.u32 %v3865_v62, %v3651_v39  ;;  %v6633_v14 = vld [vmem:[#allocation51_spill] sm:$0xff] }
 0x1c9   : > { %901 = vst.msk [vmem:[#allocation3 + $0x168] sm:$0xf] %vm870_vm5, %v835_v57  ;;  %2540 = vmatpush.bf16.msrb.mxu1 %v3666_v43  ;;  %v3866_v43 = vld [vmem:[#allocation7 + $0x84] sm:$0xf0] }
 0x1ca   : > { %1207 = vst.msk [vmem:[#allocation3 + $0x168] sm:$0xf] %vm1176_vm6, %v1141_v23  ;;  %1451 = vrot.lane.b32.xlu0 %v5191_v1, %s4242_s29  ;;  %1453 = vrot.lane.b32.xlu1 %v5133_v4, %s4242_s29  ;;  %v3718_v1 = vor.u32 %v3881_v8, %v3715_v33  ;;  %v6606_v4 = vld [vmem:[#allocation47_spill] sm:$0xff] }
 0x1cb   : > { %6604 = vst [vmem:[#allocation67_spill] sm:$0xff] %v5659_v42  ;;  %v5665_v23 = vpop.f32.mrf.mxu2 }
 0x1cc   : > { %v1119_v54 = vpop.permute.xlu0 %1118  ;;  %6605 = vst [vmem:[#allocation68_spill] sm:$0xff] %v5665_v23  ;;  %2808 = vmatpush.bf16.msrb.mxu2 %v3662_v63  ;;  %2898 = vmatpush.bf16.msrb.mxu0 %v3718_v1 }
 0x1cd   : > { %1196 = vst.msk [vmem:[#allocation3 + $0xe4] sm:$0xf] %vm1176_vm6, %v1119_v54  ;;  %2541 = vmatpush.bf16.msrb.mxu1 %v3658_v59  ;;  %v3649_v54 = vld [vmem:[#allocation7 + $0x80] sm:$0xf]  ;;  %1725 = vrot.lane.b32.xlu2 %v6606_v4, %s4243_s9 }
 0x1ce   : > { %v1306_v57 = vpop.permute.xlu2 %1305  ;;  %v3650_v20 = vor.u32 %v3866_v43, %v3649_v54 }
 0x1cf   : > { %v5675_v31 = vpop.f32.mrf.mxu3  ;;  %v5677_v63 = vpop.f32.mrf.mxu0 }
 0x1d0   : > { %v1282_v7 = vpop.permute.xlu1 %1281  ;;  %2809 = vmatpush.bf16.msrb.mxu2 %v3654_v3  ;;  %6607 = vst [vmem:[#allocation47_spill] sm:$0xff] %v5675_v31 }
 0x1d1   : > { %1359 = vst.msk [vmem:[#allocation3 + $0xe4] sm:$0xf] %vm1339_vm7, %v1282_v7  ;;  %2542 = vmatpush.bf16.msrb.mxu1 %v3650_v20 }
 0x1d2   : > { %1585 = vrot.lane.b32.xlu0 %v5164_v61, %s4241_s24  ;;  %1727 = vrot.lane.b32.xlu1 %v5224_v53, %s4243_s9 }
 0x1d3   : > { %v5680_v62 = vpop.f32.mrf.mxu2 }
 0x1d4   : > { %v1280_v18 = vpop.permute.xlu0 %1279  ;;  %6608 = vst [vmem:[#allocation69_spill] sm:$0xff] %v5680_v62 }
 0x1d5   : > { %1358 = vst.msk [vmem:[#allocation3 + $0xd8] sm:$0xf] %vm1339_vm7, %v1280_v18  ;;  %1583 = vrot.lane.b32.xlu2 %v5156_v28, %s4241_s24 }
 0x1d6   : > { %v1560_v59 = vpop.permute.xlu2 %1559 }
 0x1d7   : > { %v5690_v20 = vpop.f32.mrf.mxu3  ;;  %v5693_v39 = vpop.f32.mrf.mxu0 }
 0x1d8   : > { %v1304_v33 = vpop.permute.xlu1 %1303  ;;  %v3829_v54 = vld [vmem:[#allocation3 + $0xe0] sm:$0xf0]  ;;  %6609 = vst [vmem:[#allocation70_spill] sm:$0xff] %v5690_v20 }
 0x1d9   : > { %1370 = vst.msk [vmem:[#allocation3 + $0x168] sm:$0xf] %vm1339_vm7, %v1304_v33 }
 0x1da   : > { %1455 = vrot.lane.b32.xlu0 %v5317_v29, %s4242_s29  ;;  %1457 = vrot.lane.b32.xlu1 %v5258_v9, %s4242_s29  ;;  %6610 = vst [vmem:[#allocation71_spill] sm:$0xff] %v5693_v39 }
 0x1db   : > { %v5701_v9 = vpop.f32.mrf.mxu2 }
 0x1dc   : > { %v1143_v8 = vpop.permute.xlu0 %1142  ;;  %v3501_v43 = vld [vmem:[#allocation3 + $0xd8] sm:$0xf] }
 0x1dd   : > { %1208 = vst.msk [vmem:[#allocation3 + $0x174] sm:$0xf] %vm1176_vm6, %v1143_v8  ;;  %v3502_v7 = vor.u32 %v3829_v54, %v3501_v43  ;;  %1729 = vrot.lane.b32.xlu2 %v5218_v15, %s4243_s9 }
 0x1de   : > { %1371 = vst.msk [vmem:[#allocation3 + $0x174] sm:$0xf] %vm1339_vm7, %v1306_v57  ;;  %v1706_v61 = vpop.permute.xlu2 %1705 }
 0x1df   : > { %2499 = vmatmul.bf16.gmra.mxu0 %v3502_v7  ;;  %2766 = vmatmul.bf16.gmra.mxu3 %v3502_v7  ;;  %v5715_v15 = vpop.f32.mrf.mxu0 }
 0x1e0   : > { %v1430_v18 = vpop.permute.xlu1 %1429  ;;  %v3573_v28 = vld [vmem:[#allocation3 + $0x168] sm:$0xf] }
 0x1e1   : > { %1524 = vst.msk [vmem:[#allocation3 + $0x10] sm:$0xf] %vm870_vm5, %v1430_v18 }
 0x1e2   : > { %1589 = vrot.lane.b32.xlu0 %v5300_v52, %s4241_s24  ;;  %1731 = vrot.lane.b32.xlu1 %v5336_v22, %s4243_s9  ;;  %v6612_v52 = vld [vmem:[#allocation55_spill] sm:$0xff] }
 0x1e3   : > { %v5720_v8 = vpop.f32.mrf.mxu2 }
 0x1e4   : > { %v1428_v53 = vpop.permute.xlu0 %1427 }
 0x1e5   : > { %1523 = vst.msk [vmem:[#allocation3 + $0x4] sm:$0xf] %vm870_vm5, %v1428_v53  ;;  %v3847_v57 = vld [vmem:[#allocation3 + $0x170] sm:$0xf0]  ;;  %1587 = vrot.lane.b32.xlu2 %v5284_v25, %s4241_s24 }
 0x1e6   : > { %1655 = vst.msk [vmem:[#allocation3 + $0x4] sm:$0xf] %vm1176_vm6, %v1560_v59  ;;  %v5697_v3 = vor.u32 %v3847_v57, %v3573_v28  ;;  %v1564_v29 = vpop.permute.xlu2 %1563  ;;  %v5710_v59 = vpop.f32.mrf.mxu3  ;;  %v6615_v28 = vld [vmem:[#allocation26_spill] sm:$0xff] }
 0x1e7   : > { %6611 = vst [vmem:[#allocation72_spill] sm:$0xff] %v5710_v59  ;;  %v1376_v59 = vrot.slane %v5490_v26, 1  ;;  %v6643_v26 = vld [vmem:[#allocation52_spill] sm:$0xff] }
 0x1e8   : > { %2529 = vmatmul.bf16.gmra.mxu1 %v5697_v3  ;;  %v1704_v4 = vpop.permute.xlu1 %1703 }
 0x1e9   : > { %1799 = vst.msk [vmem:[#allocation3 + $0x4] sm:$0xf] %vm1339_vm7, %v1704_v4 }
 0x1ea   : > { %1459 = vrot.lane.b32.xlu0 %v5413_v50, %s4242_s29  ;;  %1461 = vrot.lane.b32.xlu1 %v5373_v51, %s4242_s29  ;;  %v6613_v51 = vld [vmem:[#allocation21_spill] sm:$0xff] }
 0x1eb   : > { %v5739_v53 = vpop.f32.mrf.mxu2 }
 0x1ec   : > { %v1562_v1 = vpop.permute.xlu0 %1561 }
 0x1ed   : > { %1656 = vst.msk [vmem:[#allocation3 + $0x10] sm:$0xf] %vm1176_vm6, %v1562_v1  ;;  %1733 = vrot.lane.b32.xlu2 %v5342_v44, %s4243_s9  ;;  %v6614_v44 = vld [vmem:[#allocation34_spill] sm:$0xff] }
 0x1ee   : > { %1800 = vst.msk [vmem:[#allocation3 + $0x10] sm:$0xf] %vm1339_vm7, %v1706_v61  ;;  %v1710_v22 = vpop.permute.xlu2 %1709  ;;  %v5731_v7 = vpop.f32.mrf.mxu3 }
 0x1ef   : > { %2771 = vmatmul.bf16.gmra.mxu3 %v5403_v17  ;;  %3743 = vmatmul.msk.bf16.vlgmr.msrb.gmra.mxu0 %vm277_vm0, %v6612_v52  ;;  %v5737_v61 = vpop.f32.mrf.mxu0 }
 0x1f0   : > { %v1434_v54 = vpop.permute.xlu1 %1433  ;;  %v3801_v17 = vld [vmem:[#allocation3 + $0x4] sm:$0xf] }
 0x1f1   : > { %1526 = vst.msk [vmem:[#allocation3 + $0x28] sm:$0xf] %vm870_vm5, %v1434_v54  ;;  %v5764_v54 = vpop.f32.mrf.mxu1 }
 0x1f2   : > { %1593 = vrot.lane.b32.xlu0 %v5206_v48, %s4241_s24  ;;  %1735 = vrot.lane.b32.xlu1 %v6613_v51, %s4243_s9  ;;  %6617 = vst [vmem:[#allocation55_spill] sm:$0xff] %v5764_v54 }
 0x1f4   : > { %v1432_v33 = vpop.permute.xlu0 %1431 }
 0x1f5   : > { %1525 = vst.msk [vmem:[#allocation3 + $0x1c] sm:$0xf] %vm870_vm5, %v1432_v33  ;;  %v3395_v25 = vld [vmem:[#allocation3 + $0xc] sm:$0xf0]  ;;  %1591 = vrot.lane.b32.xlu2 %v5201_v41, %s4241_s24  ;;  %v6616_v33 = vld [vmem:[#allocation29_spill] sm:$0xff] }
 0x1f6   : > { %1657 = vst.msk [vmem:[#allocation3 + $0x1c] sm:$0xf] %vm1176_vm6, %v1564_v29  ;;  %v3398_v43 = vor.u32 %v3801_v17, %v3395_v25  ;;  %v1568_v50 = vpop.permute.xlu2 %1567  ;;  %v5753_v29 = vpop.f32.mrf.mxu3  ;;  %v6618_v17 = vld [vmem:[#allocation35_spill] sm:$0xff] }
 0x1f7   : > { %v5755_v1 = vpop.f32.mrf.mxu0 }
 0x1f8   : > { %2543 = vmatmul.bf16.vlgmr.msrb.gmra.mxu1 %v3398_v43  ;;  %2810 = vmatmul.bf16.vlgmr.msrb.gmra.mxu2 %v3398_v43  ;;  %v1708_v57 = vpop.permute.xlu1 %1707  ;;  %v6619_v43 = vld [vmem:[#allocation33_spill] sm:$0xff] }
 0x1f9   : > { %1801 = vst.msk [vmem:[#allocation3 + $0x1c] sm:$0xf] %vm1339_vm7, %v1708_v57 }
 0x1fa   : > { %1463 = vrot.lane.b32.xlu0 %v6614_v44, %s4242_s29  ;;  %1465 = vrot.lane.b32.xlu1 %v6615_v28, %s4242_s29  ;;  %v6620_v28 = vld [vmem:[#allocation27_spill] sm:$0xff] }
 0x1fc   : > { %v1566_v18 = vpop.permute.xlu0 %1565 }
 0x1fd   : > { %1658 = vst.msk [vmem:[#allocation3 + $0x28] sm:$0xf] %vm1176_vm6, %v1566_v18  ;;  %1737 = vrot.lane.b32.xlu2 %v6616_v33, %s4243_s9 }
 0x1fe   : > { %1802 = vst.msk [vmem:[#allocation3 + $0x28] sm:$0xf] %vm1339_vm7, %v1710_v22  ;;  %v1714_v48 = vpop.permute.xlu2 %1713  ;;  %v5770_v18 = vpop.f32.mrf.mxu3 }
 0x1ff   : > { %2776 = vmatmul.bf16.gmra.mxu3 %v5468_v0  ;;  %3744 = vmatmul.msk.bf16.gmra.mxu0 %vm277_vm0, %v5330_v40  ;;  %v5758_v0 = vpop.f32.mrf.mxu2  ;;  %v5772_v57 = vpop.f32.mrf.mxu0 }
 0x200   : > { %v1438_v52 = vpop.permute.xlu1 %1437  ;;  %v3804_v40 = vld [vmem:[#allocation3 + $0x1c] sm:$0xf] }
 0x201   : > { %1528 = vst.msk [vmem:[#allocation3 + $0x40] sm:$0xf] %vm870_vm5, %v1438_v52  ;;  %v6621_v52 = vld [vmem:[#allocation42_spill] sm:$0xff] }
 0x202   : > { %1597 = vrot.lane.b32.xlu0 %v6618_v17, %s4241_s24  ;;  %1739 = vrot.lane.b32.xlu1 %v6619_v43, %s4243_s9 }
 0x204   : > { %v1436_v4 = vpop.permute.xlu0 %1435 }
 0x205   : > { %1527 = vst.msk [vmem:[#allocation3 + $0x34] sm:$0xf] %vm870_vm5, %v1436_v4  ;;  %v3407_v41 = vld [vmem:[#allocation3 + $0x24] sm:$0xf0]  ;;  %1595 = vrot.lane.b32.xlu2 %v6620_v28, %s4241_s24 }
 0x206   : > { %1659 = vst.msk [vmem:[#allocation3 + $0x34] sm:$0xf] %vm1176_vm6, %v1568_v50  ;;  %v3410_v22 = vor.u32 %v3804_v40, %v3407_v41  ;;  %v1572_v25 = vpop.permute.xlu2 %1571  ;;  %v6622_v41 = vld [vmem:[#allocation38_spill] sm:$0xff] }
 0x207   : > { %v5777_v44 = vpop.f32.mrf.mxu2  ;;  %v5790_v33 = vpop.f32.mrf.mxu0 }
 0x208   : > { %2548 = vmatmul.bf16.gmra.mxu1 %v3410_v22  ;;  %2815 = vmatmul.bf16.gmra.mxu2 %v3410_v22  ;;  %v1712_v50 = vpop.permute.xlu1 %1711 }
 0x209   : > { %1803 = vst.msk [vmem:[#allocation3 + $0x34] sm:$0xf] %vm1339_vm7, %v1712_v50 }
 0x20a   : > { %1467 = vrot.lane.b32.xlu0 %v6621_v52, %s4242_s29  ;;  %1469 = vrot.lane.b32.xlu1 %v6622_v41, %s4242_s29  ;;  %v6625_v52 = vld [vmem:[#allocation44_spill] sm:$0xff]  ;;  %v6626_v41 = vld [vmem:[#allocation41_spill] sm:$0xff] }
 0x20c   : > { %v1570_v51 = vpop.permute.xlu0 %1569 }
 0x20d   : > { %1660 = vst.msk [vmem:[#allocation3 + $0x40] sm:$0xf] %vm1176_vm6, %v1570_v51  ;;  %v6624_v51 = vld [vmem:[#allocation39_spill] sm:$0xff] }
 0x20e   : > { %1804 = vst.msk [vmem:[#allocation3 + $0x40] sm:$0xf] %vm1339_vm7, %v1714_v48  ;;  %v1718_v4 = vpop.permute.xlu2 %1717  ;;  %v5788_v48 = vpop.f32.mrf.mxu1  ;;  %1741 = vrot.lane.b32.xlu2 %v6624_v51, %s4243_s9  ;;  %v6629_v51 = vld [vmem:[#allocation50_spill] sm:$0xff] }
 0x20f   : > { %2781 = vmatmul.bf16.gmra.mxu3 %v5521_v38  ;;  %3745 = vmatmul.msk.bf16.gmra.mxu0 %vm277_vm0, %v5384_v16  ;;  %6623 = vst [vmem:[#allocation21_spill] sm:$0xff] %v5788_v48  ;;  %v5794_v16 = vpop.f32.mrf.mxu3  ;;  %v5799_v50 = vpop.f32.mrf.mxu2 }
 0x210   : > { %v1442_v22 = vpop.permute.xlu1 %1441  ;;  %v3807_v38 = vld [vmem:[#allocation3 + $0x34] sm:$0xf] }
 0x211   : > { %1530 = vst.msk [vmem:[#allocation3 + $0x58] sm:$0xf] %vm870_vm5, %v1442_v22  ;;  %v5809_v22 = vpop.f32.mrf.mxu0 }
 0x212   : > { %1601 = vrot.lane.b32.xlu0 %v6625_v52, %s4241_s24  ;;  %1743 = vrot.lane.b32.xlu1 %v6626_v41, %s4243_s9 }
 0x214   : > { %v1440_v40 = vpop.permute.xlu0 %1439 }
 0x215   : > { %1529 = vst.msk [vmem:[#allocation3 + $0x4c] sm:$0xf] %vm870_vm5, %v1440_v40  ;;  %v3419_v17 = vld [vmem:[#allocation3 + $0x3c] sm:$0xf0] }
 0x216   : > { %1661 = vst.msk [vmem:[#allocation3 + $0x4c] sm:$0xf] %vm1176_vm6, %v1572_v25  ;;  %v3422_v43 = vor.u32 %v3807_v38, %v3419_v17  ;;  %v1576_v28 = vpop.permute.xlu2 %1575  ;;  %v5805_v25 = vpop.f32.mrf.mxu1  ;;  %v6628_v17 = vld [vmem:[#allocation37_spill] sm:$0xff] }
 0x217   : > { %6627 = vst [vmem:[#allocation34_spill] sm:$0xff] %v5805_v25  ;;  %1599 = vrot.lane.b32.xlu2 %v6628_v17, %s4241_s24  ;;  %v5817_v38 = vpop.f32.mrf.mxu3  ;;  %v5823_v52 = vpop.f32.mrf.mxu2 }
 0x218   : > { %2553 = vmatmul.bf16.gmra.mxu1 %v3422_v43  ;;  %2820 = vmatmul.bf16.gmra.mxu2 %v3422_v43  ;;  %v1716_v48 = vpop.permute.xlu1 %1715 }
 0x219   : > { %1805 = vst.msk [vmem:[#allocation3 + $0x4c] sm:$0xf] %vm1339_vm7, %v1716_v48  ;;  %v5829_v17 = vpop.f32.mrf.mxu0 }
 0x21a   : > { %1471 = vrot.lane.b32.xlu0 %v6629_v51, %s4242_s29 }
 0x21c   : > { %v1574_v40 = vpop.permute.xlu0 %1573 }
 0x21d   : > { %1662 = vst.msk [vmem:[#allocation3 + $0x58] sm:$0xf] %vm1176_vm6, %v1574_v40 }
 0x21e   : > { %1806 = vst.msk [vmem:[#allocation3 + $0x58] sm:$0xf] %vm1339_vm7, %v1718_v4  ;;  %v1722_v43 = vpop.permute.xlu2 %1721  ;;  %v6630_v4 = vld [vmem:[#allocation46_spill] sm:$0xff] }
 0x21f   : > { %2786 = vmatmul.bf16.gmra.mxu3 %v5576_v30  ;;  %3746 = vmatmul.msk.bf16.gmra.mxu0 %vm277_vm0, %v5422_v37  ;;  %v5826_v30 = vpop.f32.mrf.mxu1 }
 0x220   : > { %1473 = vrot.lane.b32.xlu1 %v6630_v4, %s4242_s29  ;;  %v1446_v41 = vpop.permute.xlu1 %1445  ;;  %6631 = vst [vmem:[#allocation26_spill] sm:$0xff] %v5826_v30  ;;  %v3810_v37 = vld [vmem:[#allocation3 + $0x4c] sm:$0xf]  ;;  %1745 = vrot.lane.b32.xlu2 %v6632_v21, %s4243_s9  ;;  %v5838_v30 = vpop.f32.mrf.mxu3 }
 0x221   : > { %1532 = vst.msk [vmem:[#allocation3 + $0x70] sm:$0xf] %vm870_vm5, %v1446_v41  ;;  %v5841_v41 = vpop.f32.mrf.mxu2  ;;  %v6636_v21 = vld [vmem:[#allocation45_spill] sm:$0xff] }
 0x222   : > { %1605 = vrot.lane.b32.xlu0 %v6633_v14, %s4241_s24  ;;  %v5852_v14 = vpop.f32.mrf.mxu0 }
 0x224   : > { %v1444_v48 = vpop.permute.xlu0 %1443 }
 0x225   : > { %1531 = vst.msk [vmem:[#allocation3 + $0x64] sm:$0xf] %vm870_vm5, %v1444_v48  ;;  %v3431_v40 = vld [vmem:[#allocation3 + $0x54] sm:$0xf0]  ;;  %v6634_v48 = vld [vmem:[#allocation49_spill] sm:$0xff] }
 0x226   : > { %1663 = vst.msk [vmem:[#allocation3 + $0x64] sm:$0xf] %vm1176_vm6, %v1576_v28  ;;  %v3434_v51 = vor.u32 %v3810_v37, %v3431_v40  ;;  %v1580_v4 = vpop.permute.xlu2 %1579 }
 0x227   : > { %v5843_v40 = vpop.f32.mrf.mxu1 }
 0x228   : > { %2558 = vmatmul.bf16.gmra.mxu1 %v3434_v51  ;;  %2825 = vmatmul.bf16.gmra.mxu2 %v3434_v51  ;;  %v1720_v31 = vpop.permute.xlu1 %1719  ;;  %6635 = vst [vmem:[#allocation29_spill] sm:$0xff] %v5843_v40  ;;  %v6637_v51 = vld [vmem:[#allocation14_spill] sm:$0xff] }
 0x229   : > { %1747 = vrot.lane.b32.xlu1 %v6634_v48, %s4243_s9  ;;  %1807 = vst.msk [vmem:[#allocation3 + $0x64] sm:$0xf] %vm1339_vm7, %v1720_v31  ;;  %1603 = vrot.lane.b32.xlu2 %v6636_v21, %s4241_s24  ;;  %v6638_v48 = vld [vmem:[#allocation15_spill] sm:$0xff]  ;;  %v5859_v21 = vpop.f32.mrf.mxu3  ;;  %v5863_v20 = vpop.f32.mrf.mxu2 }
 0x22a   : > { %1475 = vrot.lane.b32.xlu0 %v6637_v51, %s4242_s29  ;;  %v6639_v51 = vld [vmem:[#allocation53_spill] sm:$0xff] }
 0x22c   : > { %v1578_v28 = vpop.permute.xlu0 %1577 }
 0x22d   : > { %1664 = vst.msk [vmem:[#allocation3 + $0x70] sm:$0xf] %vm1176_vm6, %v1578_v28 }
 0x22e   : > { %1808 = vst.msk [vmem:[#allocation3 + $0x70] sm:$0xf] %vm1339_vm7, %v1722_v43  ;;  %v1726_v37 = vpop.permute.xlu2 %1725 }
 0x22f   : > { %2791 = vmatmul.bf16.gmra.mxu3 %v5641_v58  ;;  %3747 = vmatmul.msk.bf16.gmra.mxu0 %vm277_vm0, %v5450_v19  ;;  %v5869_v40 = vpop.f32.mrf.mxu1 }
 0x230   : > { %v1450_v28 = vpop.permute.xlu1 %1449  ;;  %v3813_v58 = vld [vmem:[#allocation3 + $0x64] sm:$0xf]  ;;  %6640 = vst [vmem:[#allocation35_spill] sm:$0xff] %v5869_v40 }
 0x231   : > { %1477 = vrot.lane.b32.xlu1 %v6638_v48, %s4242_s29  ;;  %1534 = vst.msk [vmem:[#allocation3 + $0x88] sm:$0xf] %vm870_vm5, %v1450_v28  ;;  %1749 = vrot.lane.b32.xlu2 %v6639_v51, %s4243_s9  ;;  %v1375_v48 = vrot.slane %v5461_v60, 1  ;;  %v6641_v28 = vld [vmem:[#allocation56_spill] sm:$0xff] }
 0x232   : > { %1609 = vrot.lane.b32.xlu0 %v6641_v28, %s4241_s24 }
 0x233   : > { %v1377_v11 = vsel %vm597_vm2, %v1375_v48, %v1376_v59 }
 0x234   : > { %v1448_v43 = vpop.permute.xlu0 %1447 }
 0x235   : > { %1533 = vst.msk [vmem:[#allocation3 + $0x7c] sm:$0xf] %vm870_vm5, %v1448_v43  ;;  %v3443_v31 = vld [vmem:[#allocation3 + $0x6c] sm:$0xf0]  ;;  %v5871_v43 = vpop.f32.mrf.mxu0 }
 0x236   : > { %1665 = vst.msk [vmem:[#allocation3 + $0x7c] sm:$0xf] %vm1176_vm6, %v1580_v4  ;;  %v3446_v19 = vor.u32 %v3813_v58, %v3443_v31  ;;  %v1584_v4 = vpop.permute.xlu2 %1583  ;;  %v6642_v31 = vld [vmem:[#allocation54_spill] sm:$0xff]  ;;  %v5878_v58 = vpack.c.bf16 %v1377_v11, %v1377_v11  ;;  %v5894_v11 = vpop.f32.mrf.mxu2 }
 0x237   : > { %v5889_v48 = vpop.f32.mrf.mxu1  ;;  %6645 = vst [vmem:[#allocation27_spill] sm:$0xff] %v5894_v11  ;;  %v6648_v11 = vld [vmem:[#allocation60_spill] sm:$0xff] }
 0x238   : > { %2563 = vmatmul.bf16.gmra.mxu1 %v3446_v19  ;;  %2830 = vmatmul.bf16.gmra.mxu2 %v3446_v19  ;;  %v1724_v51 = vpop.permute.xlu1 %1723  ;;  %1414 = vst.msk [vmem:[#allocation3 + $0x16c] sm:$0xf] %vm516_vm4, %v5878_v58  ;;  %v5887_v19 = vpop.f32.mrf.mxu3 }
 0x239   : > { %1751 = vrot.lane.b32.xlu1 %v6642_v31, %s4243_s9  ;;  %1809 = vst.msk [vmem:[#allocation3 + $0x7c] sm:$0xf] %vm1339_vm7, %v1724_v51  ;;  %1607 = vrot.lane.b32.xlu2 %v6643_v26, %s4241_s24  ;;  %v6646_v26 = vld [vmem:[#allocation58_spill] sm:$0xff] }
 0x23a   : > { %6644 = vst [vmem:[#allocation33_spill] sm:$0xff] %v5889_v48  ;;  %1479 = vrot.lane.b32.xlu0 %v4717_v35, %s4242_s29 }
 0x23c   : > { %v1582_v60 = vpop.permute.xlu0 %1581 }
 0x23d   : > { %1666 = vst.msk [vmem:[#allocation3 + $0x88] sm:$0xf] %vm1176_vm6, %v1582_v60 }
 0x23e   : > { %1810 = vst.msk [vmem:[#allocation3 + $0x88] sm:$0xf] %vm1339_vm7, %v1726_v37  ;;  %v1730_v28 = vpop.permute.xlu2 %1729  ;;  %v5900_v37 = vpop.f32.mrf.mxu0 }
 0x23f   : > { %2796 = vmatmul.bf16.gmra.mxu3 %v5697_v3  ;;  %3748 = vmatmul.msk.bf16.gmra.mxu0 %vm277_vm0, %v5482_v34 }
 0x240   : > { %v1454_v60 = vpop.permute.xlu1 %1453  ;;  %v3816_v3 = vld [vmem:[#allocation3 + $0x7c] sm:$0xf] }
 0x241   : > { %1481 = vrot.lane.b32.xlu1 %v4719_v36, %s4242_s29  ;;  %1536 = vst.msk [vmem:[#allocation3 + $0xa0] sm:$0xf] %vm870_vm5, %v1454_v60  ;;  %1753 = vrot.lane.b32.xlu2 %v6646_v26, %s4243_s9  ;;  %v5907_v36 = vpop.f32.mrf.mxu1 }
 0x242   : > { %6647 = vst [vmem:[#allocation42_spill] sm:$0xff] %v5907_v36  ;;  %1613 = vrot.lane.b32.xlu0 %v6648_v11, %s4241_s24 }
 0x244   : > { %v1452_v31 = vpop.permute.xlu0 %1451 }
 0x245   : > { %1535 = vst.msk [vmem:[#allocation3 + $0x94] sm:$0xf] %vm870_vm5, %v1452_v31  ;;  %v3455_v51 = vld [vmem:[#allocation3 + $0x84] sm:$0xf0]  ;;  %v6649_v31 = vld [vmem:[#allocation59_spill] sm:$0xff] }
 0x246   : > { %1667 = vst.msk [vmem:[#allocation3 + $0x94] sm:$0xf] %vm1176_vm6, %v1584_v4  ;;  %v3458_v34 = vor.u32 %v3816_v3, %v3455_v51  ;;  %v1588_v35 = vpop.permute.xlu2 %1587  ;;  %v5913_v40 = vpop.f32.mrf.mxu0  ;;  %v6651_v3 = vld [vmem:[#allocation57_spill] sm:$0xff] }
 0x247   : > { %v5915_v4 = vpop.f32.mrf.mxu2 }
 0x248   : > { %2568 = vmatmul.bf16.gmra.mxu1 %v3458_v34  ;;  %2835 = vmatmul.bf16.gmra.mxu2 %v3458_v34  ;;  %6650 = vst [vmem:[#allocation38_spill] sm:$0xff] %v5915_v4  ;;  %v1728_v51 = vpop.permute.xlu1 %1727  ;;  %v4068_v34 = vld [vmem:[#allocation2 + $0x190] sm:$0x3] }
 0x249   : > { %1755 = vrot.lane.b32.xlu1 %v6649_v31, %s4243_s9  ;;  %1811 = vst.msk [vmem:[#allocation3 + $0x94] sm:$0xf] %vm1339_vm7, %v1728_v51  ;;  %1611 = vrot.lane.b32.xlu2 %v6651_v3, %s4241_s24  ;;  %v1378_v11 = vrot.slane %v4068_v34, 1  ;;  %v5929_v4 = vpop.f32.mrf.mxu1 }
 0x24a   : > { %1483 = vrot.lane.b32.xlu0 %v4772_v5, %s4242_s29  ;;  %6653 = vst [vmem:[#allocation39_spill] sm:$0xff] %v5929_v4 }
 0x24b   : > { %v1379_v31 = vsel %vm597_vm2, %v1376_v59, %v1378_v11  ;;  %v6656_v11 = vld [vmem:[#allocation61_spill] sm:$0xff] }
 0x24c   : > { %v1586_v60 = vpop.permute.xlu0 %1585 }
 0x24d   : > { %1668 = vst.msk [vmem:[#allocation3 + $0xa0] sm:$0xf] %vm1176_vm6, %v1586_v60  ;;  %v6652_v60 = vld [vmem:[#allocation24_spill] sm:$0xff] }
 0x24e   : > { %1812 = vst.msk [vmem:[#allocation3 + $0xa0] sm:$0xf] %vm1339_vm7, %v1730_v28  ;;  %v1734_v26 = vpop.permute.xlu2 %1733  ;;  %v1383_v28 = vpack.c.bf16 %v1379_v31, %v1379_v31  ;;  %v5932_v3 = vpop.f32.mrf.mxu0 }
 0x24f   : > { %3749 = vmatmul.msk.bf16.gmra.mxu0 %vm277_vm0, %v5509_v13  ;;  %6654 = vst [vmem:[#allocation44_spill] sm:$0xff] %v5932_v3  ;;  %v5934_v34 = vpop.f32.mrf.mxu2 }
 0x250   : > { %v1458_v48 = vpop.permute.xlu1 %1457  ;;  %1415 = vst.msk [vmem:[#allocation3 + $0x178] sm:$0xf] %vm516_vm4, %v1383_v28  ;;  %v3819_v5 = vld [vmem:[#allocation3 + $0x94] sm:$0xf] }
 0x251   : > { %1485 = vrot.lane.b32.xlu1 %v6652_v60, %s4242_s29  ;;  %6655 = vst [vmem:[#allocation41_spill] sm:$0xff] %v5934_v34  ;;  %1757 = vrot.lane.b32.xlu2 %v6656_v11, %s4243_s9 }
 0x252   : > { %1538 = vst.msk [vmem:[#allocation3 + $0xb8] sm:$0xf] %vm870_vm5, %v1458_v48  ;;  %1617 = vrot.lane.b32.xlu0 %v5494_v32, %s4241_s24  ;;  %v5948_v48 = vpop.f32.mrf.mxu1  ;;  %v4069_v32 = vld [vmem:[#allocation2 + $0x198] sm:$0xff] }
 0x253   : > { %6657 = vst [vmem:[#allocation37_spill] sm:$0xff] %v5948_v48 }
 0x254   : > { %v1456_v51 = vpop.permute.xlu0 %1455 }
 0x255   : > { %1537 = vst.msk [vmem:[#allocation3 + $0xac] sm:$0xf] %vm870_vm5, %v1456_v51  ;;  %v3467_v13 = vld [vmem:[#allocation3 + $0x9c] sm:$0xf0] }
 0x256   : > { %1669 = vst.msk [vmem:[#allocation3 + $0xac] sm:$0xf] %vm1176_vm6, %v1588_v35  ;;  %v3470_v59 = vor.u32 %v3819_v5, %v3467_v13  ;;  %v1592_v31 = vpop.permute.xlu2 %1591  ;;  %v1690_v5 = vrot.slane %v4069_v32, 1 }
 0x257   : > { %v5951_v13 = vpop.f32.mrf.mxu2 }
 0x258   : > { %2573 = vmatmul.bf16.gmra.mxu1 %v3470_v59  ;;  %2840 = vmatmul.bf16.gmra.mxu2 %v3470_v59  ;;  %v1732_v51 = vpop.permute.xlu1 %1731  ;;  %6658 = vst [vmem:[#allocation50_spill] sm:$0xff] %v5951_v13 }
 0x259   : > { %1759 = vrot.lane.b32.xlu1 %v5878_v58, %s4243_s9  ;;  %1813 = vst.msk [vmem:[#allocation3 + $0xac] sm:$0xf] %vm1339_vm7, %v1732_v51  ;;  %1615 = vrot.lane.b32.xlu2 %v5465_v49, %s4241_s24  ;;  %v4070_v58 = vld [vmem:[#allocation2 + $0x1a0] sm:$0xff] }
 0x25a   : > { %v1691_v59 = vrot.slane %v4070_v58, 1  ;;  %v1556_v4 = vpack.c.bf16 %v4070_v58, %v4070_v58  ;;  %v1693_v58 = vrot.slane %v4071_v45, 1 }
 0x25c   : > { %v1590_v60 = vpop.permute.xlu0 %1589  ;;  %v5946_v35 = vpop.f32.mrf.mxu0  ;;  %v1692_v34 = vsel %vm597_vm2, %v1690_v5, %v1691_v59  ;;  %v1694_v45 = vsel %vm597_vm2, %v1691_v59, %v1693_v58 }
 0x25d   : > { %1670 = vst.msk [vmem:[#allocation3 + $0xb8] sm:$0xf] %vm1176_vm6, %v1590_v60  ;;  %v6659_v60 = vld [vmem:[#allocation31_spill] sm:$0xff]  ;;  %v1697_v48 = vpack.c.bf16 %v1692_v34, %v1692_v34 }
 0x25e   : > { %1814 = vst.msk [vmem:[#allocation3 + $0xb8] sm:$0xf] %vm1339_vm7, %v1734_v26  ;;  %v1738_v11 = vpop.permute.xlu2 %1737  ;;  %1487 = vrot.lane.b32.xlu0 %v6659_v60, %s4242_s29  ;;  %v6660_v26 = vld [vmem:[#allocation32_spill] sm:$0xff] }
 0x25f   : > { %3750 = vmatmul.msk.bf16.gmra.mxu0 %vm277_vm0, %v5535_v47  ;;  %v5971_v5 = vpop.f32.mrf.mxu2 }
 0x260   : > { %v1462_v3 = vpop.permute.xlu1 %1461  ;;  %v3822_v47 = vld [vmem:[#allocation3 + $0xac] sm:$0xf]  ;;  %6662 = vst [vmem:[#allocation48_spill] sm:$0xff] %v5971_v5 }
 0x261   : > { %1489 = vrot.lane.b32.xlu1 %v6660_v26, %s4242_s29  ;;  %1540 = vst.msk [vmem:[#allocation3 + $0xd0] sm:$0xf] %vm870_vm5, %v1462_v3  ;;  %1761 = vrot.lane.b32.xlu2 %v1383_v28, %s4243_s9  ;;  %v1972_v28 = vld [vmem:[%s6458_s2] sm:$0x3] }
 0x262   : > { %v5995_v59 = vperm.slane %v1972_v28, 1 }
 0x264   : > { %v1460_v51 = vpop.permute.xlu0 %1459  ;;  %v5964_v49 = vpop.f32.mrf.mxu0 }
 0x265   : > { %1539 = vst.msk [vmem:[#allocation3 + $0xc4] sm:$0xf] %vm870_vm5, %v1460_v51  ;;  %v3479_v13 = vld [vmem:[#allocation3 + $0xb4] sm:$0xf0]  ;;  %v5967_v36 = vpop.f32.mrf.mxu1 }
 0x266   : > { %1671 = vst.msk [vmem:[#allocation3 + $0xc4] sm:$0xf] %vm1176_vm6, %v1592_v31  ;;  %v3482_v60 = vor.u32 %v3822_v47, %v3479_v13  ;;  %v1596_v26 = vpop.permute.xlu2 %1595  ;;  %1621 = vrot.lane.b32.xlu0 %v1556_v4, %s4241_s24  ;;  %v1555_v31 = vpack.c.bf16 %v4069_v32, %v4069_v32  ;;  %v5987_v4 = vperm.slane %v1972_v28, 0  ;;  %v1698_v32 = vpack.c.bf16 %v1694_v45, %v1694_v45 }
 0x267   : > { %6661 = vst [vmem:[#allocation46_spill] sm:$0xff] %v5967_v36  ;;  %v5989_v13 = vpop.f32.mrf.mxu2 }
 0x268   : > { %2578 = vmatmul.bf16.gmra.mxu1 %v3482_v60  ;;  %2845 = vmatmul.bf16.gmra.mxu2 %v3482_v60  ;;  %v1736_v36 = vpop.permute.xlu1 %1735  ;;  %6664 = vst [vmem:[#allocation49_spill] sm:$0xff] %v5989_v13 }
 0x269   : > { %1763 = vrot.lane.b32.xlu1 %v1697_v48, %s4243_s9  ;;  %1815 = vst.msk [vmem:[#allocation3 + $0xc4] sm:$0xf] %vm1339_vm7, %v1736_v36  ;;  %1619 = vrot.lane.b32.xlu2 %v1555_v31, %s4241_s24  ;;  %s4176_s24 = sshra.s32 %s3289_s15, 4  ;;  %s4177_s24 = int_to_ptr.hbm [resolvable:$true] %s4176_s24 }
 0x26a   : > { %s4178_s29 = scalar_lea.hbm %s4177_s24, 16  ;;  %p4183_p11 = scmp.lt.s32.totalorder %s4177_s24, %s6461_s5 }
 0x26b   : > { %p4179_p1 = scmp.ne.s32.totalorder %s4177_s24, %s4178_s29  ;;  %p4184_p2 = scmp.lt.s32.totalorder %s4182_s11, %s4178_s29 }
 0x26c   : > { %v1594_v51 = vpop.permute.xlu0 %1593  ;;  %v2900_v3 = vpop.f32.mrf.mxu0 }
 0x26d   : > { %1672 = vst.msk [vmem:[#allocation3 + $0xd0] sm:$0xf] %vm1176_vm6, %v1594_v51  ;;  %v5980_v34 = vpop.f32.mrf.mxu1  ;;  %p4180_p4 = pnand %p4179_p1, %p4341_p3  ;;  %p4185_p9 = por %p4184_p2, %p4183_p11 }
 0x26e   : > { %1816 = vst.msk [vmem:[#allocation3 + $0xd0] sm:$0xf] %vm1339_vm7, %v1738_v11  ;;  %v1742_v48 = vpop.permute.xlu2 %1741  ;;  %v2456_v11 = vadd.f32 %v5600_v24, %v5987_v4 }
 0x26f   : > { %6663 = vst [vmem:[#allocation51_spill] sm:$0xff] %v5980_v34  ;;  %3751 = vmatmul.msk.bf16.gmra.mxu0 %vm277_vm0, %v5560_v6  ;;  %p4181_p8 = pneg %p4180_p4 }
 0x270   : > { %v1466_v60 = vpop.permute.xlu1 %1465  ;;  %v3825_v51 = vld [vmem:[#allocation3 + $0xc4] sm:$0xf] }
 0x271   : > { %1542 = vst.msk [vmem:[#allocation3 + $0xe8] sm:$0xf] %vm870_vm5, %v1466_v60  ;;  %1765 = vrot.lane.b32.xlu2 %v1698_v32, %s4243_s9  ;;  %p4186_p10 = pnand %p4185_p9, %p4181_p8 }
 0x274   : > { %v1464_v47 = vpop.permute.xlu0 %1463  ;;  %v2902_v31 = vpop.f32.mrf.mxu0 }
 0x275   : > { %1541 = vst.msk [vmem:[#allocation3 + $0xdc] sm:$0xf] %vm870_vm5, %v1464_v47  ;;  %v3491_v36 = vld [vmem:[#allocation3 + $0xcc] sm:$0xf0]  ;;  %v2544_v6 = vpop.f32.mrf.mxu1  ;;  %v2723_v47 = vadd.f32 %v5731_v7, %v5995_v59  ;;  %v2725_v7 = vadd.f32 %v5753_v29, %v5995_v59 }
 0x276   : > { %1673 = vst.msk [vmem:[#allocation3 + $0xdc] sm:$0xf] %vm1176_vm6, %v1596_v26  ;;  %v5998_v58 = vadd.f32 %v2544_v6, %v2456_v11  ;;  %v3494_v45 = vor.u32 %v3825_v51, %v3491_v36  ;;  %v1600_v24 = vpop.permute.xlu2 %1599 }
 0x278   : > { %6665 = vst [vmem:[#allocation45_spill] sm:$0xff] %v5998_v58  ;;  %2583 = vmatmul.bf16.gmra.mxu1 %v3494_v45  ;;  %2850 = vmatmul.bf16.gmra.mxu2 %v3494_v45  ;;  %v1740_v28 = vpop.permute.xlu1 %1739 }
 0x279   : > { %1817 = vst.msk [vmem:[#allocation3 + $0xdc] sm:$0xf] %vm1339_vm7, %v1740_v28  ;;  %v2728_v28 = vadd.f32 %v5770_v18, %v5995_v59 }
 0x27b   : > { %v2811_v5 = vpop.f32.mrf.mxu2 }
 0x27c   : > { %v1598_v13 = vpop.permute.xlu0 %1597  ;;  %v2812_v26 = vadd.f32 %v2811_v5, %v2723_v47  ;;  %v2905_v34 = vpop.f32.mrf.mxu0 }
 0x27d   : > { %1674 = vst.msk [vmem:[#allocation3 + $0xe8] sm:$0xf] %vm1176_vm6, %v1598_v13  ;;  %v6005_v60 = vpop.f32.mrf.mxu1  ;;  %v2461_v13 = vadd.f32 %v5638_v56, %v5987_v4 }
 0x27e   : > { %1818 = vst.msk [vmem:[#allocation3 + $0xe8] sm:$0xf] %vm1339_vm7, %v1742_v48  ;;  %v6007_v11 = vadd.f32 %v2900_v3, %v2812_v26  ;;  %v1746_v32 = vpop.permute.xlu2 %1745 }
 0x27f   : > { %6666 = vst [vmem:[#allocation14_spill] sm:$0xff] %v6005_v60  ;;  %3752 = vmatmul.msk.bf16.gmra.mxu0 %vm277_vm0, %v5592_v55 }
 0x280   : > { %6667 = vst [vmem:[#allocation15_spill] sm:$0xff] %v6007_v11  ;;  %v1470_v48 = vpop.permute.xlu1 %1469  ;;  %v3828_v47 = vld [vmem:[#allocation3 + $0xdc] sm:$0xf] }
 0x281   : > { %1544 = vst.msk [vmem:[#allocation3 + $0x100] sm:$0xf] %vm870_vm5, %v1470_v48  ;;  %v2730_v48 = vadd.f32 %v5794_v16, %v5995_v59 }
 0x283   : > { %v2813_v5 = vpop.f32.mrf.mxu2 }
 0x284   : > { %v1468_v36 = vpop.permute.xlu0 %1467  ;;  %v2814_v6 = vadd.f32 %v2813_v5, %v2725_v7  ;;  %v2907_v51 = vpop.f32.mrf.mxu0 }
 0x285   : > { %1543 = vst.msk [vmem:[#allocation3 + $0xf4] sm:$0xf] %vm870_vm5, %v1468_v36  ;;  %v3503_v3 = vld [vmem:[#allocation3 + $0xe4] sm:$0xf0]  ;;  %v2549_v45 = vpop.f32.mrf.mxu1 }
 0x286   : > { %1675 = vst.msk [vmem:[#allocation3 + $0xf4] sm:$0xf] %vm1176_vm6, %v1600_v24  ;;  %v6018_v55 = vadd.f32 %v2902_v31, %v2814_v6  ;;  %v6021_v29 = vadd.f32 %v2549_v45, %v2461_v13  ;;  %v3506_v26 = vor.u32 %v3828_v47, %v3503_v3  ;;  %v1604_v56 = vpop.permute.xlu2 %1603  ;;  %v6034_v6 = vpop.f32.mrf.mxu3 }
 0x288   : > { %6668 = vst [vmem:[#allocation53_spill] sm:$0xff] %v6018_v55  ;;  %2588 = vmatmul.bf16.gmra.mxu1 %v3506_v26  ;;  %2855 = vmatmul.bf16.gmra.mxu2 %v3506_v26  ;;  %v1744_v24 = vpop.permute.xlu1 %1743 }
 0x289   : > { %6669 = vst [vmem:[#allocation56_spill] sm:$0xff] %v6021_v29 }
 0x28a   : > { %1819 = vst.msk [vmem:[#allocation3 + $0xf4] sm:$0xf] %vm1339_vm7, %v1744_v24  ;;  %v2733_v24 = vadd.f32 %v5817_v38, %v5995_v59 }
 0x28b   : > { %v2816_v7 = vpop.f32.mrf.mxu2 }
 0x28c   : > { %v1602_v5 = vpop.permute.xlu0 %1601  ;;  %v2817_v36 = vadd.f32 %v2816_v7, %v2728_v28  ;;  %v2910_v11 = vpop.f32.mrf.mxu0 }
 0x28d   : > { %1676 = vst.msk [vmem:[#allocation3 + $0x100] sm:$0xf] %vm1176_vm6, %v1602_v5  ;;  %v6027_v31 = vpop.f32.mrf.mxu1 }
 0x28e   : > { %1820 = vst.msk [vmem:[#allocation3 + $0x100] sm:$0xf] %vm1339_vm7, %v1746_v32  ;;  %v6029_v13 = vadd.f32 %v2905_v34, %v2817_v36  ;;  %v1750_v18 = vpop.permute.xlu2 %1749  ;;  %v2466_v32 = vadd.f32 %v5677_v63, %v5987_v4 }
 0x28f   : > { %6670 = vst [vmem:[#allocation54_spill] sm:$0xff] %v6027_v31  ;;  %3753 = vmatmul.msk.bf16.gmra.mxu0 %vm277_vm0, %v5625_v46 }
 0x290   : > { %6671 = vst [vmem:[#allocation52_spill] sm:$0xff] %v6029_v13 }
 0x291   : > { %v3831_v7 = vld [vmem:[#allocation3 + $0xf4] sm:$0xf] }
 0x292   : > { %v1474_v34 = vpop.permute.xlu1 %1473 }
 0x293   : > { %v2818_v3 = vpop.f32.mrf.mxu2  ;;  %1546 = vst.msk [vmem:[#allocation3 + $0x118] sm:$0xf] %vm870_vm5, %v1474_v34 }
 0x294   : > { %v1472_v45 = vpop.permute.xlu0 %1471  ;;  %v2819_v47 = vadd.f32 %v2818_v3, %v2730_v48  ;;  %v2912_v28 = vpop.f32.mrf.mxu0 }
 0x295   : > { %1545 = vst.msk [vmem:[#allocation3 + $0x10c] sm:$0xf] %vm870_vm5, %v1472_v45  ;;  %v3515_v26 = vld [vmem:[#allocation3 + $0xfc] sm:$0xf0]  ;;  %v2554_v46 = vpop.f32.mrf.mxu1  ;;  %v6049_v48 = vpop.f32.mrf.mxu3 }
 0x296   : > { %1677 = vst.msk [vmem:[#allocation3 + $0x10c] sm:$0xf] %vm1176_vm6, %v1604_v56  ;;  %v6042_v5 = vadd.f32 %v2907_v51, %v2819_v47  ;;  %v6045_v16 = vadd.f32 %v2554_v46, %v2466_v32  ;;  %v3518_v36 = vor.u32 %v3831_v7, %v3515_v26  ;;  %v1608_v63 = vpop.permute.xlu2 %1607  ;;  %v6676_v26 = vld [vmem:[#allocation16_spill] sm:$0xff]  ;;  %v2735_v46 = vadd.f32 %v5838_v30, %v5995_v59 }
 0x298   : > { %6672 = vst [vmem:[#allocation58_spill] sm:$0xff] %v6042_v5  ;;  %2593 = vmatmul.bf16.gmra.mxu1 %v3518_v36  ;;  %2860 = vmatmul.bf16.gmra.mxu2 %v3518_v36 }
 0x299   : > { %6673 = vst [vmem:[#allocation60_spill] sm:$0xff] %v6045_v16 }
 0x29b   : > { %v2821_v3 = vpop.f32.mrf.mxu2  ;;  %v1748_v51 = vpop.permute.xlu1 %1747 }
 0x29c   : > { %v1606_v45 = vpop.permute.xlu0 %1605  ;;  %v2822_v56 = vadd.f32 %v2821_v3, %v2733_v24  ;;  %v2915_v47 = vpop.f32.mrf.mxu0  ;;  %1821 = vst.msk [vmem:[#allocation3 + $0x10c] sm:$0xf] %vm1339_vm7, %v1748_v51 }
 0x29d   : > { %1678 = vst.msk [vmem:[#allocation3 + $0x118] sm:$0xf] %vm1176_vm6, %v1606_v45  ;;  %v6053_v32 = vpop.f32.mrf.mxu1  ;;  %v6062_v7 = vpop.f32.mrf.mxu3 }
 0x29e   : > { %1822 = vst.msk [vmem:[#allocation3 + $0x118] sm:$0xf] %vm1339_vm7, %v1750_v18  ;;  %v6055_v34 = vadd.f32 %v2910_v11, %v2822_v56  ;;  %v1754_v38 = vpop.permute.xlu2 %1753  ;;  %v2471_v18 = vadd.f32 %v5715_v15, %v5987_v4 }
 0x29f   : > { %6674 = vst [vmem:[#allocation59_spill] sm:$0xff] %v6053_v32  ;;  %3754 = vmatmul.msk.bf16.gmra.mxu0 %vm277_vm0, %v6676_v26 }
 0x2a0   : > { %6675 = vst [vmem:[#allocation57_spill] sm:$0xff] %v6055_v34 }
 0x2a3   : > { %v2823_v36 = vpop.f32.mrf.mxu2  ;;  %v1478_v11 = vpop.permute.xlu1 %1477  ;;  %v3834_v26 = vld [vmem:[#allocation3 + $0x10c] sm:$0xf] }
 0x2a4   : > { %v1476_v24 = vpop.permute.xlu0 %1475  ;;  %v2824_v3 = vadd.f32 %v2823_v36, %v2735_v46  ;;  %v2917_v56 = vpop.f32.mrf.mxu0  ;;  %1548 = vst.msk [vmem:[#allocation3 + $0x130] sm:$0xf] %vm870_vm5, %v1478_v11  ;;  %v2738_v46 = vadd.f32 %v5859_v21, %v5995_v59  ;;  %v2740_v11 = vadd.f32 %v5887_v19, %v5995_v59 }
 0x2a5   : > { %1547 = vst.msk [vmem:[#allocation3 + $0x124] sm:$0xf] %vm870_vm5, %v1476_v24  ;;  %v3527_v45 = vld [vmem:[#allocation3 + $0x114] sm:$0xf0]  ;;  %v2559_v51 = vpop.f32.mrf.mxu1 }
 0x2a6   : > { %1679 = vst.msk [vmem:[#allocation3 + $0x124] sm:$0xf] %vm1176_vm6, %v1608_v63  ;;  %v6068_v55 = vadd.f32 %v2912_v28, %v2824_v3  ;;  %v6071_v30 = vadd.f32 %v2559_v51, %v2471_v18  ;;  %v3530_v13 = vor.u32 %v3834_v26, %v3527_v45  ;;  %v1612_v15 = vpop.permute.xlu2 %1611  ;;  %v6079_v18 = vpop.f32.mrf.mxu3 }
 0x2a8   : > { %6677 = vst [vmem:[#allocation24_spill] sm:$0xff] %v6068_v55  ;;  %2598 = vmatmul.bf16.gmra.mxu1 %v3530_v13  ;;  %2865 = vmatmul.bf16.gmra.mxu2 %v3530_v13  ;;  %v6680_v13 = vld [vmem:[#allocation25_spill] sm:$0xff] }
 0x2a9   : > { %6678 = vst [vmem:[#allocation61_spill] sm:$0xff] %v6071_v30  ;;  %v2488_v30 = vadd.f32 %v5852_v14, %v5987_v4 }
 0x2ab   : > { %v2826_v36 = vpop.f32.mrf.mxu2  ;;  %v1752_v63 = vpop.permute.xlu1 %1751 }
 0x2ac   : > { %v1610_v24 = vpop.permute.xlu0 %1609  ;;  %v2827_v58 = vadd.f32 %v2826_v36, %v2738_v46  ;;  %v2920_v5 = vpop.f32.mrf.mxu0  ;;  %1823 = vst.msk [vmem:[#allocation3 + $0x124] sm:$0xf] %vm1339_vm7, %v1752_v63 }
 0x2ad   : > { %1680 = vst.msk [vmem:[#allocation3 + $0x130] sm:$0xf] %vm1176_vm6, %v1610_v24  ;;  %v6077_v28 = vpop.f32.mrf.mxu1 }
 0x2ae   : > { %1824 = vst.msk [vmem:[#allocation3 + $0x130] sm:$0xf] %vm1339_vm7, %v1754_v38  ;;  %v6081_v3 = vadd.f32 %v2915_v47, %v2827_v58  ;;  %v1758_v21 = vpop.permute.xlu2 %1757  ;;  %v6092_v24 = vpop.f32.mrf.mxu3 }
 0x2af   : > { %3755 = vmatmul.msk.bf16.gmra.mxu0 %vm277_vm0, %v6680_v13  ;;  %v2743_v13 = vadd.f32 %v6034_v6, %v5995_v59 }
 0x2b0   : > { %6679 = vst [vmem:[#allocation31_spill] sm:$0xff] %v6081_v3 }
 0x2b3   : > { %v2828_v45 = vpop.f32.mrf.mxu2  ;;  %v1482_v38 = vpop.permute.xlu1 %1481  ;;  %v3837_v47 = vld [vmem:[#allocation3 + $0x124] sm:$0xf] }
 0x2b4   : > { %v1480_v51 = vpop.permute.xlu0 %1479  ;;  %v2829_v26 = vadd.f32 %v2828_v45, %v2740_v11  ;;  %v2922_v36 = vpop.f32.mrf.mxu0  ;;  %1550 = vst.msk [vmem:[#allocation3 + $0x148] sm:$0xf] %vm870_vm5, %v1482_v38  ;;  %v6683_v38 = vld [vmem:[#allocation30_spill] sm:$0xff] }
 0x2b5   : > { %1549 = vst.msk [vmem:[#allocation3 + $0x13c] sm:$0xf] %vm870_vm5, %v1480_v51  ;;  %v3539_v46 = vld [vmem:[#allocation3 + $0x12c] sm:$0xf0]  ;;  %v6090_v58 = vpop.f32.mrf.mxu1 }
 0x2b6   : > { %1681 = vst.msk [vmem:[#allocation3 + $0x13c] sm:$0xf] %vm1176_vm6, %v1612_v15  ;;  %v6094_v63 = vadd.f32 %v2917_v56, %v2829_v26  ;;  %v3542_v19 = vor.u32 %v3837_v47, %v3539_v46  ;;  %v1616_v11 = vpop.permute.xlu2 %1615  ;;  %v6110_v6 = vpop.f32.mrf.mxu3  ;;  %v2745_v46 = vadd.f32 %v6049_v48, %v5995_v59 }
 0x2b8   : > { %6681 = vst [vmem:[#allocation32_spill] sm:$0xff] %v6094_v63  ;;  %2603 = vmatmul.bf16.gmra.mxu1 %v3542_v19  ;;  %2870 = vmatmul.bf16.gmra.mxu2 %v3542_v19 }
 0x2bb   : > { %v2831_v45 = vpop.f32.mrf.mxu2  ;;  %v1756_v15 = vpop.permute.xlu1 %1755 }
 0x2bc   : > { %v1614_v51 = vpop.permute.xlu0 %1613  ;;  %v2832_v34 = vadd.f32 %v2831_v45, %v2743_v13  ;;  %v6100_v25 = vpop.f32.mrf.mxu0  ;;  %1825 = vst.msk [vmem:[#allocation3 + $0x13c] sm:$0xf] %vm1339_vm7, %v1756_v15 }
 0x2bd   : > { %1682 = vst.msk [vmem:[#allocation3 + $0x148] sm:$0xf] %vm1176_vm6, %v1614_v51  ;;  %v6103_v56 = vpop.f32.mrf.mxu1 }
 0x2be   : > { %1826 = vst.msk [vmem:[#allocation3 + $0x148] sm:$0xf] %vm1339_vm7, %v1758_v21  ;;  %v6105_v26 = vadd.f32 %v2920_v5, %v2832_v34  ;;  %v1762_v48 = vpop.permute.xlu2 %1761  ;;  %v2757_v2 = vpop.f32.mrf.mxu3 }
 0x2bf   : > { %3756 = vmatmul.msk.bf16.gmra.mxu0 %vm277_vm0, %v6683_v38 }
 0x2c0   : > { %6682 = vst [vmem:[#allocation16_spill] sm:$0xff] %v6105_v26 }
 0x2c3   : > { %v2833_v47 = vpop.f32.mrf.mxu2  ;;  %v1486_v21 = vpop.permute.xlu1 %1485  ;;  %v3840_v34 = vld [vmem:[#allocation3 + $0x13c] sm:$0xf] }
 0x2c4   : > { %v1484_v19 = vpop.permute.xlu0 %1483  ;;  %v2834_v13 = vadd.f32 %v2833_v47, %v2745_v46  ;;  %v6115_v51 = vpop.f32.mrf.mxu0  ;;  %1552 = vst.msk [vmem:[#allocation3 + $0x160] sm:$0xf] %vm870_vm5, %v1486_v21 }
 0x2c5   : > { %1551 = vst.msk [vmem:[#allocation3 + $0x154] sm:$0xf] %vm870_vm5, %v1484_v19  ;;  %v3551_v45 = vld [vmem:[#allocation3 + $0x144] sm:$0xf0]  ;;  %v6118_v5 = vpop.f32.mrf.mxu1 }
 0x2c6   : > { %1683 = vst.msk [vmem:[#allocation3 + $0x154] sm:$0xf] %vm1176_vm6, %v1616_v11  ;;  %v6120_v15 = vadd.f32 %v2922_v36, %v2834_v13  ;;  %v3554_v38 = vor.u32 %v3840_v34, %v3551_v45  ;;  %v6685_v36 = vld [vmem:[#allocation36_spill] sm:$0xff]  ;;  %v1620_v13 = vpop.permute.xlu2 %1619  ;;  %v2759_v21 = vpop.f32.mrf.mxu3 }
 0x2c8   : > { %6684 = vst [vmem:[#allocation25_spill] sm:$0xff] %v6120_v15  ;;  %2608 = vmatmul.bf16.gmra.mxu1 %v3554_v38  ;;  %2875 = vmatmul.bf16.gmra.mxu2 %v3554_v38 }
 0x2cb   : > { %v6123_v46 = vpop.f32.mrf.mxu2  ;;  %v1760_v19 = vpop.permute.xlu1 %1759 }
 0x2cc   : > { %v1618_v47 = vpop.permute.xlu0 %1617  ;;  %v6126_v29 = vpop.f32.mrf.mxu0  ;;  %1827 = vst.msk [vmem:[#allocation3 + $0x154] sm:$0xf] %vm1339_vm7, %v1760_v19 }
 0x2cd   : > { %1684 = vst.msk [vmem:[#allocation3 + $0x160] sm:$0xf] %vm1176_vm6, %v1618_v47  ;;  %v6129_v11 = vpop.f32.mrf.mxu1 }
 0x2ce   : > { %1828 = vst.msk [vmem:[#allocation3 + $0x160] sm:$0xf] %vm1339_vm7, %v1762_v48  ;;  %v1766_v10 = vpop.permute.xlu2 %1765 }
 0x2cf   : > { %3757 = vmatmul.msk.bf16.gmra.mxu0 %vm277_vm0, %v6685_v36  ;;  %v2762_v36 = vpop.f32.mrf.mxu3 }
 0x2d3   : > { %v6134_v45 = vpop.f32.mrf.mxu2  ;;  %v1490_v38 = vpop.permute.xlu1 %1489  ;;  %v3843_v55 = vld [vmem:[#allocation3 + $0x154] sm:$0xf] }
 0x2d4   : > { %v1488_v34 = vpop.permute.xlu0 %1487  ;;  %v6137_v60 = vpop.f32.mrf.mxu0  ;;  %1554 = vst.msk [vmem:[#allocation3 + $0x178] sm:$0xf] %vm870_vm5, %v1490_v38 }
 0x2d5   : > { %1553 = vst.msk [vmem:[#allocation3 + $0x16c] sm:$0xf] %vm870_vm5, %v1488_v34  ;;  %v3563_v47 = vld [vmem:[#allocation3 + $0x15c] sm:$0xf0]  ;;  %v2574_v48 = vpop.f32.mrf.mxu1 }
 0x2d6   : > { %1685 = vst.msk [vmem:[#allocation3 + $0x16c] sm:$0xf] %vm1176_vm6, %v1620_v13  ;;  %v3566_v19 = vor.u32 %v3843_v55, %v3563_v47  ;;  %v6686_v13 = vld [vmem:[#allocation40_spill] sm:$0xff] }
 0x2d8   : > { %2613 = vmatmul.bf16.gmra.mxu1 %v3566_v19  ;;  %2880 = vmatmul.bf16.gmra.mxu2 %v3566_v19  ;;  %v6146_v19 = vpop.f32.mrf.mxu3 }
 0x2db   : > { %v2841_v12 = vpop.f32.mrf.mxu2  ;;  %v1764_v34 = vpop.permute.xlu1 %1763 }
 0x2dc   : > { %v1622_v3 = vpop.permute.xlu0 %1621  ;;  %v2935_v27 = vpop.f32.mrf.mxu0  ;;  %1829 = vst.msk [vmem:[#allocation3 + $0x16c] sm:$0xf] %vm1339_vm7, %v1764_v34  ;;  %v2493_v34 = vadd.f32 %v5900_v37, %v5987_v4  ;;  %v2486_v37 = vadd.f32 %v5829_v17, %v5987_v4 }
 0x2dd   : > { %1686 = vst.msk [vmem:[#allocation3 + $0x178] sm:$0xf] %vm1176_vm6, %v1622_v3  ;;  %v2576_v16 = vpop.f32.mrf.mxu1 }
 0x2de   : > { %1830 = vst.msk [vmem:[#allocation3 + $0x178] sm:$0xf] %vm1339_vm7, %v1766_v10  ;;  %v2491_v10 = vadd.f32 %v5871_v43, %v5987_v4  ;;  %v2577_v32 = vadd.f32 %v2576_v16, %v2488_v30 }
 0x2df   : > { %3758 = vmatmul.msk.bf16.gmra.mxu0 %vm277_vm0, %v6686_v13 }
 0x2e0   : > { %v6152_v26 = vpop.f32.mrf.mxu3  ;;  %v2666_v16 = vadd.f32 %v5823_v52, %v2577_v32 }
 0x2e3   : > { %v2843_v38 = vpop.f32.mrf.mxu2  ;;  %v3846_v63 = vld [vmem:[#allocation3 + $0x16c] sm:$0xf] }
 0x2e4   : > { %v2937_v47 = vpop.f32.mrf.mxu0 }
 0x2e5   : > { %v3575_v55 = vld [vmem:[#allocation3 + $0x174] sm:$0xf0]  ;;  %v2579_v31 = vpop.f32.mrf.mxu1 }
 0x2e6   : > { %v3578_v42 = vor.u32 %v3846_v63, %v3575_v55  ;;  %v2580_v54 = vadd.f32 %v2579_v31, %v2491_v10  ;;  %v2760_v55 = vadd.f32 %v2759_v21, %v5995_v59  ;;  %v2496_v31 = vadd.f32 %v5913_v40, %v5987_v4 }
 0x2e7   : > { %v2483_v40 = vadd.f32 %v5809_v22, %v5987_v4 }
 0x2e8   : > { %2618 = vmatmul.bf16.gmra.mxu1 %v3578_v42  ;;  %2885 = vmatmul.bf16.gmra.mxu2 %v3578_v42  ;;  %v2758_v42 = vadd.f32 %v2757_v2, %v5995_v59  ;;  %v2669_v43 = vadd.f32 %v5841_v41, %v2580_v54  ;;  %v2755_v2 = vadd.f32 %v6110_v6, %v5995_v59  ;;  %v6169_v17 = vpop.f32.mrf.mxu3 }
 0x2e9   : > { %v2753_v6 = vadd.f32 %v6092_v24, %v5995_v59  ;;  %v2572_v52 = vadd.f32 %v6129_v11, %v2483_v40 }
 0x2ea   : > { %v3008_v54 = vmax.f32 %v2669_v43, 0.0 }
 0x2eb   : > { %v2846_v3 = vpop.f32.mrf.mxu2 }
 0x2ec   : > { %v2940_v23 = vpop.f32.mrf.mxu0  ;;  %v2847_v10 = vadd.f32 %v2846_v3, %v2758_v42  ;;  %v2481_v3 = vadd.f32 %v5790_v33, %v5987_v4  ;;  %v2661_v42 = vadd.f32 %v5777_v44, %v2572_v52  ;;  %v6687_v52 = vld [vmem:[#allocation71_spill] sm:$0xff] }
 0x2ed   : > { %v2581_v13 = vpop.f32.mrf.mxu1 }
 0x2ee   : > { %v2582_v62 = vadd.f32 %v2581_v13, %v2493_v34 }
 0x2f0   : > { %v2671_v63 = vadd.f32 %v5863_v20, %v2582_v62  ;;  %v2575_v62 = vadd.f32 %v2574_v48, %v2486_v37  ;;  %v2763_v48 = vadd.f32 %v2762_v36, %v5995_v59  ;;  %v2750_v36 = vadd.f32 %v6079_v18, %v5995_v59 }
 0x2f1   : > { %v2748_v18 = vadd.f32 %v6062_v7, %v5995_v59 }
 0x2f2   : > { %v3010_v15 = vmax.f32 %v2671_v63, 0.0  ;;  %v2664_v32 = vadd.f32 %v5799_v50, %v2575_v62  ;;  %v2570_v50 = vadd.f32 %v6118_v5, %v2481_v3  ;;  %v2839_v33 = vadd.f32 %v6134_v45, %v2750_v36  ;;  %v6197_v5 = vpop.f32.mrf.mxu3  ;;  %v6692_v36 = vld [vmem:[#allocation55_spill] sm:$0xff] }
 0x2f3   : > { %v2848_v39 = vpop.f32.mrf.mxu2  ;;  %v2837_v7 = vadd.f32 %v6123_v46, %v2748_v18 }
 0x2f4   : > { %v2849_v34 = vadd.f32 %v2848_v39, %v2760_v55  ;;  %3152 = vmatpush.xpose.msra.mxu1 %v3010_v15  ;;  %v2942_v14 = vpop.f32.mrf.mxu0  ;;  %v2844_v39 = vadd.f32 %v2843_v38, %v2755_v2  ;;  %v2936_v15 = vadd.f32 %v2935_v27, %v2847_v10  ;;  %v2842_v38 = vadd.f32 %v2841_v12, %v2753_v6 }
 0x2f5   : > { %v2584_v20 = vpop.f32.mrf.mxu1  ;;  %v3004_v55 = vmax.f32 %v2664_v32, 0.0  ;;  %v2478_v12 = vadd.f32 %v5772_v57, %v5987_v4  ;;  %v3002_v10 = vmax.f32 %v2661_v42, 0.0  ;;  %v2476_v57 = vadd.f32 %v5755_v1, %v5987_v4  ;;  %v6693_v42 = vld [vmem:[#allocation16_spill] sm:$0xff] }
 0x2f6   : > { %v2938_v41 = vadd.f32 %v2937_v47, %v2849_v34  ;;  %v6167_v30 = vadd.f32 %v2584_v20, %v2496_v31  ;;  %v3006_v47 = vmax.f32 %v2666_v16, 0.0  ;;  %v2933_v27 = vadd.f32 %v6137_v60, %v2844_v39 }
 0x2f7   : > { %v3009_v13 = vmax.f32 %v2936_v15, 0.0  ;;  %v2931_v60 = vadd.f32 %v6126_v29, %v2842_v38  ;;  %v2567_v44 = vadd.f32 %v6103_v56, %v2478_v12  ;;  %v2659_v31 = vadd.f32 %v5758_v0, %v2570_v50 }
 0x2f8   : > { %v3011_v21 = vmax.f32 %v2938_v41, 0.0  ;;  %3153 = vmatpush.xpose.msra.mxu1 %v3008_v54  ;;  %v3007_v37 = vmax.f32 %v2933_v27, 0.0  ;;  %v2501_v29 = vadd.f32 %v5946_v35, %v5987_v4  ;;  %v2928_v34 = vadd.f32 %v6115_v51, %v2839_v33  ;;  %v6690_v27 = vld [vmem:[#allocation61_spill] sm:$0xff] }
 0x2f9   : > { %v3005_v2 = vmax.f32 %v2931_v60, 0.0  ;;  %v2565_v0 = vadd.f32 %v6090_v58, %v2476_v57  ;;  %v2656_v20 = vadd.f32 %v5739_v53, %v2567_v44  ;;  %v3000_v16 = vmax.f32 %v2659_v31, 0.0 }
 0x2fa   : > { %3759 = vmatpush.xpose.msk.msra.mxu3 %vm3052_vm8, %v3011_v21  ;;  %v2473_v35 = vadd.f32 %v5737_v61, %v5987_v4  ;;  %v2926_v51 = vadd.f32 %v6100_v25, %v2837_v7  ;;  %v3003_v46 = vmax.f32 %v2928_v34, 0.0  ;;  %v2768_v58 = vadd.f32 %v6152_v26, %v5995_v59  ;;  %v2774_v40 = vpop.f32.mrf.mxu3  ;;  %v6697_v34 = vld [vmem:[#allocation54_spill] sm:$0xff] }
 0x2fb   : > { %v2851_v22 = vpop.f32.mrf.mxu2  ;;  %v2654_v53 = vadd.f32 %v5720_v8, %v2565_v0  ;;  %v2503_v15 = vadd.f32 %v5964_v49, %v5987_v4  ;;  %v2468_v32 = vadd.f32 %v6687_v52, %v5987_v4  ;;  %v2770_v49 = vadd.f32 %v6169_v17, %v5995_v59  ;;  %v6694_v17 = vld [vmem:[#allocation68_spill] sm:$0xff]  ;;  %v6699_v0 = vld [vmem:[#allocation66_spill] sm:$0xff] }
 0x2fc   : > { %v2852_v63 = vadd.f32 %v2851_v22, %v2763_v48  ;;  %3154 = vmatpush.xpose.msra.mxu1 %v3006_v47  ;;  %v2945_v24 = vpop.f32.mrf.mxu0  ;;  %v2562_v41 = vadd.f32 %v6077_v28, %v2473_v35  ;;  %v3001_v61 = vmax.f32 %v2926_v51, 0.0  ;;  %v6688_v47 = vld [vmem:[#allocation25_spill] sm:$0xff]  ;;  %v6689_v22 = vld [vmem:[#allocation59_spill] sm:$0xff]  ;;  %v2506_v50 = vadd.f32 %v6692_v36, %v5987_v4  ;;  %v6709_v36 = vld [vmem:[#allocation20_spill] sm:$0xff] }
 0x2fd   : > { %v6184_v11 = vpop.f32.mrf.mxu1  ;;  %v2996_v8 = vmax.f32 %v2654_v53, 0.0  ;;  %v2999_v3 = vmax.f32 %v6688_v47, 0.0  ;;  %v2557_v38 = vadd.f32 %v6689_v22, %v2468_v32  ;;  %v2773_v7 = vadd.f32 %v6197_v5, %v5995_v59  ;;  %v6705_v32 = vld [vmem:[#allocation56_spill] sm:$0xff]  ;;  %v6706_v47 = vld [vmem:[#allocation23_spill] sm:$0xff]  ;;  %v6707_v22 = vld [vmem:[#allocation34_spill] sm:$0xff] }
 0x2fe   : > { %v6188_v43 = vadd.f32 %v2940_v23, %v2852_v63  ;;  %3760 = vmatpush.xpose.msk.msra.mxu3 %vm3052_vm8, %v3009_v13  ;;  %v2765_v23 = vadd.f32 %v6146_v19, %v5995_v59  ;;  %v2651_v48 = vadd.f32 %v5701_v9, %v2562_v41  ;;  %v6691_v9 = vld [vmem:[#allocation69_spill] sm:$0xff]  ;;  %v6701_v41 = vld [vmem:[#allocation64_spill] sm:$0xff] }
 0x2ff   : > { %v2649_v13 = vadd.f32 %v6691_v9, %v6690_v27  ;;  %v2646_v18 = vadd.f32 %v6694_v17, %v2557_v38  ;;  %v2511_v38 = vadd.f32 %v6707_v22, %v5987_v4  ;;  %v6708_v27 = vld [vmem:[#allocation57_spill] sm:$0xff] }
 0x300   : > { %3155 = vmatpush.xpose.msra.mxu1 %v3004_v55  ;;  %v2994_v63 = vmax.f32 %v2651_v48, 0.0  ;;  %v2997_v55 = vmax.f32 %v6693_v42, 0.0  ;;  %v2775_v48 = vadd.f32 %v2774_v40, %v5995_v59  ;;  %v2989_v9 = vmax.f32 %v6708_v27, 0.0 }
 0x302   : > { %3761 = vmatpush.xpose.msk.msra.mxu3 %vm3052_vm8, %v3007_v37  ;;  %v2777_v60 = vpop.f32.mrf.mxu3 }
 0x303   : > { %v2853_v45 = vpop.f32.mrf.mxu2 }
 0x304   : > { %v2854_v19 = vadd.f32 %v2853_v45, %v2765_v23  ;;  %3156 = vmatpush.xpose.msra.mxu1 %v3002_v10  ;;  %v2947_v56 = vpop.f32.mrf.mxu0  ;;  %v2992_v23 = vmax.f32 %v2649_v13, 0.0  ;;  %v6695_v10 = vld [vmem:[#allocation67_spill] sm:$0xff] }
 0x305   : > { %v2589_v62 = vpop.f32.mrf.mxu1  ;;  %v2463_v57 = vadd.f32 %v6695_v10, %v5987_v4 }
 0x306   : > { %v6212_v54 = vadd.f32 %v2589_v62, %v2501_v29  ;;  %v6214_v1 = vadd.f32 %v2942_v14, %v2854_v19  ;;  %3762 = vmatpush.xpose.msk.msra.mxu3 %vm3052_vm8, %v3005_v2  ;;  %v2998_v14 = vmax.f32 %v2656_v20, 0.0  ;;  %v6696_v29 = vld [vmem:[#allocation32_spill] sm:$0xff] }
 0x307   : > { %v2995_v45 = vmax.f32 %v6696_v29, 0.0  ;;  %v2552_v2 = vadd.f32 %v6697_v34, %v2463_v57  ;;  %v6698_v19 = vld [vmem:[#allocation60_spill] sm:$0xff]  ;;  %v2778_v57 = vadd.f32 %v2777_v60, %v5995_v59 }
 0x308   : > { %3157 = vmatpush.xpose.msra.mxu1 %v3000_v16  ;;  %v2644_v62 = vadd.f32 %v6699_v0, %v6698_v19  ;;  %v6700_v16 = vld [vmem:[#allocation31_spill] sm:$0xff] }
 0x309   : > { %v2993_v35 = vmax.f32 %v6700_v16, 0.0  ;;  %v2641_v53 = vadd.f32 %v6701_v41, %v2552_v2 }
 0x30a   : > { %3763 = vmatpush.xpose.msk.msra.mxu3 %vm3052_vm8, %v3003_v46 }
 0x30b   : > { %v2856_v39 = vpop.f32.mrf.mxu2 }
 0x30c   : > { %v2857_v21 = vadd.f32 %v2856_v39, %v2768_v58  ;;  %3158 = vmatpush.xpose.msra.mxu1 %v2998_v14  ;;  %v2950_v25 = vpop.f32.mrf.mxu0  ;;  %v2988_v14 = vmax.f32 %v2644_v62, 0.0  ;;  %v2779_v39 = vpop.f32.mrf.mxu3 }
 0x30d   : > { %v2591_v6 = vpop.f32.mrf.mxu1  ;;  %v2780_v60 = vadd.f32 %v2779_v39, %v5995_v59 }
 0x30e   : > { %v6228_v26 = vadd.f32 %v2591_v6, %v2503_v15  ;;  %v6230_v28 = vadd.f32 %v2945_v24, %v2857_v21  ;;  %3764 = vmatpush.xpose.msk.msra.mxu3 %vm3052_vm8, %v3001_v61  ;;  %v6702_v15 = vld [vmem:[#allocation63_spill] sm:$0xff]  ;;  %v6703_v21 = vld [vmem:[#allocation24_spill] sm:$0xff] }
 0x30f   : > { %v2458_v61 = vadd.f32 %v6702_v15, %v5987_v4  ;;  %v2991_v6 = vmax.f32 %v6703_v21, 0.0 }
 0x310   : > { %3159 = vmatpush.xpose.msra.mxu1 %v2996_v8  ;;  %v6704_v8 = vld [vmem:[#allocation14_spill] sm:$0xff] }
 0x311   : > { %v2547_v52 = vadd.f32 %v6704_v8, %v2458_v61 }
 0x312   : > { %3765 = vmatpush.xpose.msk.msra.mxu3 %vm3052_vm8, %v2999_v3  ;;  %v2639_v3 = vadd.f32 %v6706_v47, %v6705_v32 }
 0x313   : > { %v2858_v24 = vpop.f32.mrf.mxu2  ;;  %v2636_v40 = vadd.f32 %v6709_v36, %v2547_v52 }
 0x314   : > { %v2859_v12 = vadd.f32 %v2858_v24, %v2770_v49  ;;  %3160 = vmatpush.xpose.msra.mxu1 %v2994_v63  ;;  %v2952_v33 = vpop.f32.mrf.mxu0  ;;  %v2782_v17 = vpop.f32.mrf.mxu3 }
 0x315   : > { %v2594_v37 = vpop.f32.mrf.mxu1  ;;  %v2982_v29 = vmax.f32 %v2636_v40, 0.0  ;;  %v2783_v39 = vadd.f32 %v2782_v17, %v5995_v59 }
 0x316   : > { %v6246_v44 = vadd.f32 %v2594_v37, %v2506_v50  ;;  %v6248_v31 = vadd.f32 %v2947_v56, %v2859_v12  ;;  %3766 = vmatpush.xpose.msk.msra.mxu3 %vm3052_vm8, %v2997_v55  ;;  %v2990_v56 = vmax.f32 %v2646_v18, 0.0  ;;  %v2984_v50 = vmax.f32 %v2639_v3, 0.0  ;;  %v6710_v12 = vld [vmem:[#allocation58_spill] sm:$0xff]  ;;  %v6711_v18 = vld [vmem:[#allocation45_spill] sm:$0xff] }
 0x317   : > { %v2987_v37 = vmax.f32 %v6710_v12, 0.0 }
 0x318   : > { %3161 = vmatpush.xpose.msra.mxu1 %v2992_v23  ;;  %v6712_v23 = vld [vmem:[#allocation17_spill] sm:$0xff] }
 0x319   : > { %v2634_v10 = vadd.f32 %v6712_v23, %v6711_v18 }
 0x31a   : > { %3767 = vmatpush.xpose.msk.msra.mxu3 %vm3052_vm8, %v2995_v45 }
 0x31b   : > { %v2861_v20 = vpop.f32.mrf.mxu2  ;;  %v2980_v19 = vmax.f32 %v2634_v10, 0.0 }
 0x31c   : > { %v2862_v51 = vadd.f32 %v2861_v20, %v2773_v7  ;;  %3162 = vmatpush.xpose.msra.mxu1 %v2990_v56  ;;  %v2955_v46 = vpop.f32.mrf.mxu0  ;;  %v6713_v7 = vld [vmem:[#allocation52_spill] sm:$0xff]  ;;  %v6714_v56 = vld [vmem:[#allocation53_spill] sm:$0xff]  ;;  %v2784_v16 = vpop.f32.mrf.mxu3 }
 0x31d   : > { %v6261_v58 = vpop.f32.mrf.mxu1  ;;  %v2985_v34 = vmax.f32 %v6713_v7, 0.0  ;;  %v2983_v20 = vmax.f32 %v6714_v56, 0.0  ;;  %v2785_v3 = vadd.f32 %v2784_v16, %v5995_v59 }
 0x31e   : > { %v6264_v5 = vadd.f32 %v2950_v25, %v2862_v51  ;;  %3768 = vmatpush.xpose.msk.msra.mxu3 %vm3052_vm8, %v2993_v35  ;;  %v2986_v25 = vmax.f32 %v2641_v53, 0.0  ;;  %v6715_v51 = vld [vmem:[#allocation29_spill] sm:$0xff]  ;;  %v6716_v53 = vld [vmem:[#allocation15_spill] sm:$0xff] }
 0x31f   : > { %v2516_v41 = vadd.f32 %v6715_v51, %v5987_v4 }
 0x320   : > { %3163 = vmatpush.xpose.msra.mxu1 %v2988_v14  ;;  %v2981_v14 = vmax.f32 %v6716_v53, 0.0 }
 0x322   : > { %3769 = vmatpush.xpose.msk.msra.mxu3 %vm3052_vm8, %v2991_v6 }
 0x323   : > { %v2863_v49 = vpop.f32.mrf.mxu2 }
 0x324   : > { %v2864_v13 = vadd.f32 %v2863_v49, %v2775_v48  ;;  %3164 = vmatpush.xpose.msra.mxu1 %v2986_v25  ;;  %v2957_v24 = vpop.f32.mrf.mxu0  ;;  %v6307_v52 = vpop.f32.mrf.mxu3 }
 0x325   : > { %v2599_v63 = vpop.f32.mrf.mxu1 }
 0x326   : > { %v6279_v42 = vadd.f32 %v2599_v63, %v2511_v38  ;;  %v6281_v55 = vadd.f32 %v2952_v33, %v2864_v13  ;;  %3770 = vmatpush.xpose.msk.msra.mxu3 %vm3052_vm8, %v2989_v9 }
 0x328   : > { %3165 = vmatpush.xpose.msra.mxu1 %v2984_v50 }
 0x32a   : > { %3771 = vmatpush.xpose.msk.msra.mxu3 %vm3052_vm8, %v2987_v37 }
 0x32b   : > { %v2866_v45 = vpop.f32.mrf.mxu2 }
 0x32c   : > { %v2867_v2 = vadd.f32 %v2866_v45, %v2778_v57  ;;  %3166 = vmatpush.xpose.msra.mxu1 %v2982_v29  ;;  %v2960_v62 = vpop.f32.mrf.mxu0  ;;  %v2789_v9 = vpop.f32.mrf.mxu3 }
 0x32d   : > { %v6290_v33 = vpop.f32.mrf.mxu1 }
 0x32e   : > { %v6292_v0 = vadd.f32 %v2955_v46, %v2867_v2  ;;  %3772 = vmatpush.xpose.msk.msra.mxu3 %vm3052_vm8, %v2985_v34  ;;  %v6717_v34 = vld [vmem:[#allocation46_spill] sm:$0xff] }
 0x32f   : > { %v2531_v2 = vadd.f32 %v6717_v34, %v5987_v4 }
 0x330   : > { %3167 = vmatpush.xpose.msra.mxu1 %v2980_v19  ;;  %v6718_v19 = vld [vmem:[#allocation51_spill] sm:$0xff] }
 0x332   : > { %3773 = vmatpush.xpose.msk.msra.mxu3 %vm3052_vm8, %v2983_v20 }
 0x333   : > { %v2868_v35 = vpop.f32.mrf.mxu2 }
 0x334   : > { %v2869_v15 = vadd.f32 %v2868_v35, %v2780_v60  ;;  %v2962_v6 = vpop.f32.mrf.mxu0  ;;  %v2792_v36 = vpop.f32.mrf.mxu3  ;;  %v6719_v35 = vld [vmem:[#allocation37_spill] sm:$0xff] }
 0x335   : > { %v2604_v46 = vpop.f32.mrf.mxu1  ;;  %v2528_v51 = vadd.f32 %v6719_v35, %v5987_v4 }
 0x336   : > { %v6301_v61 = vadd.f32 %v2604_v46, %v2516_v41  ;;  %v6303_v21 = vadd.f32 %v2957_v24, %v2869_v15  ;;  %3774 = vmatpush.xpose.msk.msra.mxu3 %vm3052_vm8, %v2981_v14  ;;  %v6720_v41 = vld [vmem:[#allocation72_spill] sm:$0xff] }
 0x33b   : > { %v2871_v48 = vpop.f32.mrf.mxu2 }
 0x33c   : > { %v2872_v8 = vadd.f32 %v2871_v48, %v2783_v39  ;;  %v6314_v49 = vpop.f32.mrf.mxu0  ;;  %v2794_v37 = vpop.f32.mrf.mxu3 }
 0x33d   : > { %v6309_v32 = vpop.f32.mrf.mxu1  ;;  %v2795_v34 = vadd.f32 %v2794_v37, %v5995_v59 }
 0x33e   : > { %v6311_v47 = vadd.f32 %v2960_v62, %v2872_v8  ;;  %v2533_v62 = vadd.f32 %v6718_v19, %v5987_v4 }
 0x343   : > { %v2873_v25 = vpop.f32.mrf.mxu2 }
 0x344   : > { %v2874_v22 = vadd.f32 %v2873_v25, %v2785_v3  ;;  %v6320_v24 = vpop.f32.mrf.mxu0  ;;  %v2797_v57 = vpop.f32.mrf.mxu3  ;;  %v6722_v3 = vld [vmem:[#allocation39_spill] sm:$0xff] }
 0x345   : > { %v2609_v38 = vpop.f32.mrf.mxu1  ;;  %v2798_v14 = vadd.f32 %v2797_v57, %v5995_v59  ;;  %v2526_v25 = vadd.f32 %v6722_v3, %v5987_v4 }
 0x346   : > { %v6316_v27 = vadd.f32 %v2962_v6, %v2874_v22  ;;  %v6721_v6 = vld [vmem:[#allocation70_spill] sm:$0xff] }
 0x34b   : > { %v6318_v13 = vpop.f32.mrf.mxu2 }
 0x34c   : > { %v2970_v12 = vpop.f32.mrf.mxu0  ;;  %v2799_v16 = vpop.f32.mrf.mxu3 }
 0x34d   : > { %v2611_v63 = vpop.f32.mrf.mxu1  ;;  %v2800_v15 = vadd.f32 %v2799_v16, %v5995_v59 }
 0x353   : > { %v2878_v40 = vpop.f32.mrf.mxu2 }
 0x354   : > { %v2972_v23 = vpop.f32.mrf.mxu0 }
 0x355   : > { %v2614_v50 = vpop.f32.mrf.mxu1 }
 0x356   : > { %v2615_v19 = vadd.f32 %v2614_v50, %v2526_v25  ;;  %v6726_v50 = vld [vmem:[#allocation33_spill] sm:$0xff] }
 0x357   : > { %v2521_v37 = vadd.f32 %v6726_v50, %v5987_v4 }
 0x35b   : > { %v2881_v17 = vpop.f32.mrf.mxu2 }
 0x35c   : > { %v2975_v7 = vpop.f32.mrf.mxu0 }
 0x35d   : > { %v2616_v18 = vpop.f32.mrf.mxu1 }
 0x35e   : > { %v2617_v46 = vadd.f32 %v2616_v18, %v2528_v51  ;;  %v6724_v18 = vld [vmem:[#allocation42_spill] sm:$0xff] }
 0x35f   : > { %v2523_v16 = vadd.f32 %v6724_v18, %v5987_v4  ;;  %v6732_v18 = vld [vmem:[#allocation28_spill] sm:$0xff] }
 0x363   : > { %v2883_v10 = vpop.f32.mrf.mxu2 }
 0x365   : > { %v2619_v29 = vpop.f32.mrf.mxu1 }
 0x366   : > { %v2620_v20 = vadd.f32 %v2619_v29, %v2531_v2  ;;  %v2977_v2 = vpop.f32.mrf.mxu0 }
 0x368   : > { %v2709_v39 = vadd.f32 %v6721_v6, %v2620_v20  ;;  %v2884_v20 = vadd.f32 %v2883_v10, %v2795_v34  ;;  %v2790_v10 = vadd.f32 %v2789_v9, %v5995_v59  ;;  %v6729_v34 = vld [vmem:[#allocation22_spill] sm:$0xff] }
 0x36a   : > { %v3040_v57 = vmax.f32 %v2709_v39, 0.0  ;;  %v2973_v6 = vadd.f32 %v2972_v23, %v2884_v20  ;;  %v2879_v25 = vadd.f32 %v2878_v40, %v2790_v10 }
 0x36b   : > { %v2886_v45 = vpop.f32.mrf.mxu2 }
 0x36c   : > { %v2887_v22 = vadd.f32 %v2886_v45, %v2798_v14  ;;  %v2612_v45 = vadd.f32 %v2611_v63, %v2523_v16  ;;  %v6728_v63 = vld [vmem:[#allocation35_spill] sm:$0xff]  ;;  %v2694_v16 = vadd.f32 %v6732_v18, %v6301_v61  ;;  %v6735_v61 = vld [vmem:[#allocation62_spill] sm:$0xff] }
 0x36d   : > { %v2621_v56 = vpop.f32.mrf.mxu1 }
 0x36e   : > { %v2622_v60 = vadd.f32 %v2621_v56, %v2533_v62  ;;  %v6723_v62 = vld [vmem:[#allocation47_spill] sm:$0xff]  ;;  %v2976_v35 = vadd.f32 %v2975_v7, %v2887_v22  ;;  %v2610_v7 = vadd.f32 %v2609_v38, %v2521_v37  ;;  %v4244_v37 = vmov 0  }
 0x36f   : > { %v2706_v56 = vadd.f32 %v6723_v62, %v2617_v46  ;;  %v2968_v62 = vadd.f32 %v6320_v24, %v2879_v25  ;;  %4051 = vset.pattern.permute.xlu0 %v4244_v37 }
 0x370   : > { %v2711_v53 = vadd.f32 %v6720_v41, %v2622_v60  ;;  %v2793_v41 = vadd.f32 %v2792_v36, %v5995_v59  ;;  %v3041_v39 = vmax.f32 %v2976_v35, 0.0  ;;  %v2518_v36 = vadd.f32 %v6728_v63, %v5987_v4 }
 0x371   : > { %v2699_v9 = vadd.f32 %v6729_v34, %v2610_v7 }
 0x372   : > { %v3042_v48 = vmax.f32 %v2711_v53, 0.0  ;;  %v6725_v53 = vld [vmem:[#allocation43_spill] sm:$0xff]  ;;  %v2882_v46 = vadd.f32 %v2881_v17, %v2793_v41  ;;  %v2788_v17 = vadd.f32 %v6307_v52, %v5995_v59  ;;  %v2607_v23 = vadd.f32 %v6309_v32, %v2518_v36  ;;  %v6361_v32 = vld [vmem:[#allocation9] sm:$0xff] }
 0x373   : > { %v2888_v8 = vpop.f32.mrf.mxu2  ;;  %v2704_v14 = vadd.f32 %v6725_v53, %v2615_v19  ;;  %v3032_v52 = vmax.f32 %v2699_v9, 0.0  ;;  %3168 = vmatmul.f32.vlgmr.msra.gmra.mxu1 %v6361_v32  ;;  %v6739_v36 = vld [vmem:[#allocation44_spill] sm:$0xff] }
 0x374   : > { %v2889_v29 = vadd.f32 %v2888_v8, %v2800_v15  ;;  %3192 = vmatpush.xpose.msrb.mxu1 %v3042_v48  ;;  %v3038_v15 = vmax.f32 %v2706_v56, 0.0  ;;  %v6727_v48 = vld [vmem:[#allocation65_spill] sm:$0xff]  ;;  %v2971_v22 = vadd.f32 %v2970_v12, %v2882_v46  ;;  %v2877_v19 = vadd.f32 %v6318_v13, %v2788_v17  ;;  %v6730_v12 = vld [vmem:[#allocation18_spill] sm:$0xff] }
 0x375   : > { %v2701_v8 = vadd.f32 %v6727_v48, %v2612_v45  ;;  %v3036_v3 = vmax.f32 %v2704_v14, 0.0  ;;  %v2696_v59 = vadd.f32 %v6730_v12, %v2607_v23  ;;  %v6731_v56 = vld [vmem:[#allocation26_spill] sm:$0xff]  ;;  %v3035_v13 = vmax.f32 %v2968_v62, 0.0 }
 0x376   : > { %v2978_v60 = vadd.f32 %v2977_v2, %v2889_v29  ;;  %v3039_v29 = vmax.f32 %v2973_v6, 0.0  ;;  %v6353_v2 = vld [vmem:[#allocation9 + $0x8] sm:$0xff]  ;;  %v3037_v40 = vmax.f32 %v2971_v22, 0.0  ;;  %v3028_v45 = vmax.f32 %v2694_v16, 0.0  ;;  %v3046_v46 = vld [vmem:[%s6460_s4] sm:$0xff] }
 0x377   : > { %v3034_v38 = vmax.f32 %v2701_v8, 0.0  ;;  %3775 = vmatmul.msk.f32.vlgmr.msra.gmra.mxu3 %vm3052_vm8, %v6353_v2  ;;  %v3030_v20 = vmax.f32 %v2696_v59, 0.0  ;;  %v3031_v14 = vmax.f32 %v6316_v27, 0.0  ;;  %3049 = vperm.xlu0 %4051, %v3046_v46   ;;  %v3029_v6 = vmax.f32 %v6311_v47, 0.0  ;;  %v6736_v27 = vld [vmem:[#allocation49_spill] sm:$0xff]  ;;  %v6738_v47 = vld [vmem:[#allocation50_spill] sm:$0xff] }
 0x378   : > { %v3043_v51 = vmax.f32 %v2978_v60, 0.0  ;;  %3193 = vmatpush.xpose.msrb.mxu1 %v3040_v57  ;;  %v2513_v57 = vadd.f32 %v6731_v56, %v5987_v4  ;;  %v2966_v60 = vadd.f32 %v6314_v49, %v2877_v19  ;;  %v6734_v49 = vld [vmem:[#allocation21_spill] sm:$0xff]  ;;  %v3025_v8 = vmax.f32 %v6292_v0, 0.0 }
 0x379   : > { %v2508_v53 = vadd.f32 %v6734_v49, %v5987_v4  ;;  %v2498_v25 = vadd.f32 %v6739_v36, %v5987_v4  ;;  %v6740_v22 = vld [vmem:[#allocation41_spill] sm:$0xff]  ;;  %v3021_v0 = vmax.f32 %v6264_v5, 0.0  ;;  %v3019_v4 = vmax.f32 %v6248_v31, 0.0 }
 0x37a   : > { %3776 = vmatpush.xpose.msk.msrb.mxu3 %vm3052_vm8, %v3043_v51  ;;  %v2602_v24 = vadd.f32 %v6290_v33, %v2513_v57  ;;  %v3033_v35 = vmax.f32 %v2966_v60, 0.0  ;;  %v6733_v51 = vld [vmem:[#allocation19_spill] sm:$0xff]  ;;  %v3015_v5 = vmax.f32 %v6214_v1, 0.0  ;;  %v3013_v31 = vmax.f32 %v6188_v43, 0.0 }
 0x37b   : > { %v2597_v33 = vadd.f32 %v6261_v58, %v2508_v53  ;;  %v3027_v58 = vmax.f32 %v6303_v21, 0.0  ;;  %v3023_v21 = vmax.f32 %v6281_v55, 0.0  ;;  %v6742_v55 = vld [vmem:[#allocation27_spill] sm:$0xff] }
 0x37c   : > { %3194 = vmatpush.xpose.msrb.mxu1 %v3038_v15  ;;  %v2691_v41 = vadd.f32 %v6733_v51, %v2602_v24  ;;  %v2689_v15 = vadd.f32 %v6735_v61, %v6279_v42  ;;  %v6737_v42 = vld [vmem:[#allocation48_spill] sm:$0xff] }
 0x37d   : > { %v2684_v7 = vadd.f32 %v6737_v42, %v6246_v44  ;;  %v2587_v44 = vadd.f32 %v6184_v11, %v2498_v25  ;;  %v2674_v11 = vadd.f32 %v6742_v55, %v6167_v30 }
 0x37e   : > { %3777 = vmatpush.xpose.msk.msrb.mxu3 %vm3052_vm8, %v3041_v39  ;;  %v3026_v50 = vmax.f32 %v2691_v41, 0.0  ;;  %v2686_v39 = vadd.f32 %v6736_v27, %v2597_v33  ;;  %v3024_v10 = vmax.f32 %v2689_v15, 0.0 }
 0x37f   : > { %v3020_v63 = vmax.f32 %v2684_v7, 0.0 }
 0x380   : > { %3195 = vmatpush.xpose.msrb.mxu1 %v3036_v3  ;;  %v3022_v48 = vmax.f32 %v2686_v39, 0.0  ;;  %v2681_v3 = vadd.f32 %v6738_v47, %v6228_v26  ;;  %v6741_v26 = vld [vmem:[#allocation38_spill] sm:$0xff] }
 0x381   : > { %v2676_v23 = vadd.f32 %v6741_v26, %v2587_v44 }
 0x382   : > { %3778 = vmatpush.xpose.msk.msrb.mxu3 %vm3052_vm8, %v3039_v29  ;;  %v2679_v29 = vadd.f32 %v6740_v22, %v6212_v54  ;;  %v3018_v17 = vmax.f32 %v2681_v3, 0.0  ;;  %v3017_v54 = vmax.f32 %v6230_v28, 0.0 }
 0x383   : > { %v3014_v9 = vmax.f32 %v2676_v23, 0.0 }
 0x384   : > { %3196 = vmatpush.xpose.msrb.mxu1 %v3034_v38  ;;  %v3016_v34 = vmax.f32 %v2679_v29, 0.0  ;;  %v3012_v38 = vmax.f32 %v2674_v11, 0.0 }
 0x386   : > { %3779 = vmatpush.xpose.msk.msrb.mxu3 %vm3052_vm8, %v3037_v40 }
 0x388   : > { %3197 = vmatpush.xpose.msrb.mxu1 %v3032_v52 }
 0x38a   : > { %3780 = vmatpush.xpose.msk.msrb.mxu3 %vm3052_vm8, %v3035_v13 }
 0x38c   : > { %3198 = vmatpush.xpose.msrb.mxu1 %v3030_v20 }
 0x38e   : > { %3781 = vmatpush.xpose.msk.msrb.mxu3 %vm3052_vm8, %v3033_v35 }
 0x390   : > { %3199 = vmatpush.xpose.msrb.mxu1 %v3028_v45 }
 0x392   : > { %3782 = vmatpush.xpose.msk.msrb.mxu3 %vm3052_vm8, %v3031_v14 }
 0x394   : > { %3200 = vmatpush.xpose.msrb.mxu1 %v3026_v50 }
 0x396   : > { %3783 = vmatpush.xpose.msk.msrb.mxu3 %vm3052_vm8, %v3029_v6 }
 0x398   : > { %3201 = vmatpush.xpose.msrb.mxu1 %v3024_v10 }
 0x39a   : > { %3784 = vmatpush.xpose.msk.msrb.mxu3 %vm3052_vm8, %v3027_v58 }
 0x39c   : > { %3202 = vmatpush.xpose.msrb.mxu1 %v3022_v48 }
 0x39e   : > { %3785 = vmatpush.xpose.msk.msrb.mxu3 %vm3052_vm8, %v3025_v8 }
 0x3a0   : > { %3203 = vmatpush.xpose.msrb.mxu1 %v3020_v63 }
 0x3a2   : > { %3786 = vmatpush.xpose.msk.msrb.mxu3 %vm3052_vm8, %v3023_v21 }
 0x3a4   : > { %3204 = vmatpush.xpose.msrb.mxu1 %v3018_v17 }
 0x3a6   : > { %3787 = vmatpush.xpose.msk.msrb.mxu3 %vm3052_vm8, %v3021_v0 }
 0x3a8   : > { %3205 = vmatpush.xpose.msrb.mxu1 %v3016_v34 }
 0x3aa   : > { %3788 = vmatpush.xpose.msk.msrb.mxu3 %vm3052_vm8, %v3019_v4 }
 0x3ac   : > { %3206 = vmatpush.xpose.msrb.mxu1 %v3014_v9 }
 0x3ae   : > { %3789 = vmatpush.xpose.msk.msrb.mxu3 %vm3052_vm8, %v3017_v54 }
 0x3b0   : > { %3207 = vmatpush.xpose.msrb.mxu1 %v3012_v38 }
 0x3b2   : > { %3790 = vmatpush.xpose.msk.msrb.mxu3 %vm3052_vm8, %v3015_v5 }
 0x3b3   : > { %3208 = vmatmul.f32.vlgmr.msrb.gmra.mxu1 %v6361_v32 }
 0x3b6   : > { %3791 = vmatpush.xpose.msk.msrb.mxu3 %vm3052_vm8, %v3013_v31 }
 0x3b9   : > { %3792 = vmatmul.msk.f32.vlgmr.msrb.gmra.mxu3 %vm3052_vm8, %v6353_v2 }
 0x3e9   : > { %v3050_v30 = vpop.permute.xlu0 %3049 }
 0x3f0   : > { %v3169_v28 = vpop.f32.mrf.mxu1 }
 0x3f1   : > { %v3170_v19 = vadd.f32 %v3169_v28, %v3050_v30 }
 0x3fa   : > { %v3189_v62 = vpop.f32.mrf.mxu3 }
 0x3fb   : > { %v3190_v40 = vadd.f32 %v3189_v62, %v3170_v19 }
 0x3fd   : > { %v3793_v12 = vmul.f32 -1.442695, %v3190_v40 }
 0x3ff   : > { %4052 = vpow2.f32 %v3793_v12 }
 0x405   : > { %v4053_v1 = vpop.eup %4052 }
 0x406   : > { %v3238_v59 = vadd.f32 1.0, %v4053_v1 }
 0x408   : > { %4054 = vrcp.f32 %v3238_v59  ;;  %vm3245_vm9 = vweird.f32 %v3238_v59  ;;  %v3251_v57 = vand.u32 2147483648, %v3238_v59  ;;  %v3249_v2 = vand.u32 2147483647, %v3238_v59 }
 0x40a   : > { %v3252_v13 = vor.u32 1.1754944e-38, %v3251_v57  ;;  %vm3250_vm12 = vcmp.eq.f32.partialorder %v3249_v2, 8.507059e+37 }
 0x40e   : > { %v4055_v52 = vpop.eup %4054 }
 0x40f   : > { %v3241_v32 = vmul.f32 %v4055_v52, %v3238_v59  ;;  %vm3246_vm10 = vweird.f32 %v4055_v52 }
 0x410   : > { %vm3247_vm11 = vmor %vm3245_vm9, %vm3246_vm10 }
 0x411   : > { %v3242_v56 = vsub.f32 1.0, %v3241_v32 }
 0x413   : > { %v3243_v43 = vmul.f32 %v4055_v52, %v3242_v56 }
 0x415   : > { %v3244_v60 = vadd.f32 %v4055_v52, %v3243_v43 }
 0x417   : > { %v3248_v24 = vsel %vm3247_vm11, %v4055_v52, %v3244_v60 }
 0x418   : > { %v3253_v18 = vsel %vm3250_vm12, %v3252_v13, %v3248_v24 }
 0x419   : > { %3270 = vst [vmem:[%s6418_s30] sm:$0xff] %v3253_v18 }
 0x430   : > { %v3209_v16 = vpop.f32.mrf.mxu1 }
 0x431   : > { %v3210_v20 = vadd.f32 %v3209_v16, %v3050_v30 }
 0x43c   : > { %v3229_v35 = vpop.f32.mrf.mxu3 }
 0x43d   : > { %v3230_v51 = vadd.f32 %v3229_v35, %v3210_v20 }
 0x43f   : > { %v3794_v41 = vmul.f32 -1.442695, %v3230_v51 }
 0x441   : > { %4056 = vpow2.f32 %v3794_v41 }
 0x447   : > { %v4057_v45 = vpop.eup %4056 }
 0x448   : > { %v3239_v49 = vadd.f32 1.0, %v4057_v45 }
 0x44a   : > { %4058 = vrcp.f32 %v3239_v49  ;;  %v3266_v61 = vand.u32 2147483648, %v3239_v49  ;;  %v3264_v50 = vand.u32 2147483647, %v3239_v49  ;;  %vm3260_vm14 = vweird.f32 %v3239_v49 }
 0x44c   : > { %v3267_v46 = vor.u32 1.1754944e-38, %v3266_v61  ;;  %vm3265_vm0 = vcmp.eq.f32.partialorder %v3264_v50, 8.507059e+37 }
 0x450   : > { %v4059_v53 = vpop.eup %4058 }
 0x451   : > { %v3256_v14 = vmul.f32 %v4059_v53, %v3239_v49  ;;  %vm3261_vm13 = vweird.f32 %v4059_v53 }
 0x452   : > { %vm3262_vm15 = vmor %vm3260_vm14, %vm3261_vm13 }
 0x453   : > { %v3257_v33 = vsub.f32 1.0, %v3256_v14 }
 0x455   : > { %v3258_v15 = vmul.f32 %v4059_v53, %v3257_v33 }
 0x457   : > { %v3259_v37 = vadd.f32 %v4059_v53, %v3258_v15 }
 0x459   : > { %v3263_v6 = vsel %vm3262_vm15, %v4059_v53, %v3259_v37 }
 0x45a   : > { %v3268_v27 = vsel %vm3265_vm0, %v3267_v46, %v3263_v6 }
 0x45b   : > { %3271 = vst [vmem:[%s6418_s30 + $0x8] sm:$0xff] %v3268_v27 }
 0x45c   : > { %4189 = shalt.err (!%p4186_p10)
}
 0x45d   : > { %3985 = dma.vmem_to_hbm [thread:$0]  (%p4341_p3), %s3287_s13, 256, %s3289_s15, %s3273_s22  }
 0x45e PF: > { %s3300_s8 = sand.u32 1, %s4220_s18   ;;  %p6743_p12 = scmp.ge.s32.totalorder %s4232_s21, 2 }
 0x45f   : > { %s3301_s28 = scalar_lea.sflag [#allocation6], %s3300_s8 }
 0x460   : > { %p3999_p13 = pnand %p6743_p12, %p4310_p6 }
 0x462   : > { %p4000_p0 = pneg %p3999_p13 }
 0x464   : > { %4215 = dma.done.wait (%p4000_p0), %s3301_s28, 256  }
 0x465   : > { %4217 = vsyncadd (%p4000_p0), %s3301_s28, 4294967040  ;;  %p19_p5 = scmp.ge.s32.totalorder %s4331_s14, 4   ;;  %s6744_s18 = smov %s4224_s19 }
 0x466   : > { %s6745_s19 = smov %s4228_s20  ;;  %s6746_s20 = smov %s4347_s23 }
 0x467   : > { %s6747_s21 = smov %s4331_s14  ;;  %21 = sbr.rel (!%p19_p5) target bundleno = 6 (0x6), region = 94 }
 0x46c   :  { %3307 = vsyncpa [#allocation5], 1 }
 0x46d   :  { %3309 = vsyncpa [#allocation5 + $0x1], 1 }
 0x46e   :  { %3310 = vsyncpa [#allocation8], 1 }
 0x46f   :  { %3311 = vsyncpa [#allocation6], 1 }
 0x470   :  { %3313 = vsyncpa [#allocation6 + $0x1], 1 }

</bundles_post_ra>
